<compile_context>
chip_gen: v6e
topology: v6e:2x2x1
jax: 0.10.0
libtpu: 0.0.40
codegen_flags: <defaults>
</compile_context>

<pallas_src>
import functools

import jax
import jax.numpy as jnp
from jax import lax
from jax.experimental import pallas as pl
from jax.experimental.pallas import tpu as pltpu

EPS = 1e-5
EXPANSION = 4
LANE = 128  # pad channel dims to a multiple of the TPU lane width


# --------------------------------------------------------------------------
# small helpers
# --------------------------------------------------------------------------
def _round_up(c, m=LANE):
    return ((c + m - 1) // m) * m


def _pad_last(a, to):
    p = to - a.shape[-1]
    if p == 0:
        return a
    return jnp.pad(a, [(0, 0)] * (a.ndim - 1) + [(0, p)])


def _pad_last2(a, to_r, to_c):
    pr, pc = to_r - a.shape[-2], to_c - a.shape[-1]
    if pr == 0 and pc == 0:
        return a
    return jnp.pad(a, [(0, 0)] * (a.ndim - 2) + [(0, pr), (0, pc)])


def _row_spec(rows, ch):
    """Per-grid-step (1, rows, ch) block of an (N, rows, ch) array."""
    return pl.BlockSpec((1, rows, ch), lambda n: (n, 0, 0))


def _const_spec(*shape):
    """Whole-array block, resident across the grid (weights / stats / affine)."""
    nd = len(shape)
    return pl.BlockSpec(shape, lambda n: (0,) * nd)


def _cparams(semantics, *block_nbytes):
    """dimension_semantics + explicit VMEM budget: double-buffered blocks plus
    headroom for in-kernel temporaries, clamped under v7x's 64 MiB physical VMEM."""
    limit = int(min(max(2 * sum(block_nbytes) + (16 << 20), 32 << 20), 48 << 20))
    return pltpu.CompilerParams(dimension_semantics=(semantics,),
                                vmem_limit_bytes=limit)


def _acc_stats(stat_ref, y):
    """Accumulate per-channel [sum; sum of squares] of y (rows, C) into stat_ref (2, C)."""
    stat_ref[...] += jnp.concatenate(
        [jnp.sum(y, axis=0, keepdims=True),
         jnp.sum(y * y, axis=0, keepdims=True)], axis=0)


def _finalize_bn(stats, gamma, beta, count):
    """(sum, sumsq) -> fused training-mode BN scale/shift:  y_norm = y*scale + shift."""
    mean = stats[0] / count
    var = stats[1] / count - mean * mean            # biased variance (training mode)
    scale = gamma * lax.rsqrt(var + EPS)
    shift = beta - mean * scale
    return jnp.stack([scale, shift], axis=0)        # (2, C)


def _shift_cols(a, ox):
    """b[:, j, :] = a[:, j + ox, :], zero-filled outside bounds (static ox)."""
    if ox == 0:
        return a
    H, W, C = a.shape
    z = jnp.zeros((H, abs(ox), C), a.dtype)
    if ox > 0:
        return jnp.concatenate([a[:, ox:, :], z], axis=1)
    return jnp.concatenate([z, a[:, :W + ox, :]], axis=1)


def _shift_rows(a, oy):
    """b[i, :, :] = a[i + oy, :, :], zero-filled outside bounds (static oy)."""
    if oy == 0:
        return a
    H, W, C = a.shape
    z = jnp.zeros((abs(oy), W, C), a.dtype)
    if oy > 0:
        return jnp.concatenate([a[oy:, :, :], z], axis=0)
    return jnp.concatenate([z, a[:H + oy, :, :]], axis=0)


# --------------------------------------------------------------------------
# kernels
# --------------------------------------------------------------------------
def _k1_conv1_downsample(x_ref, w1_ref, wd_ref, y1_ref, s1_ref, sc_ref, sd_ref,
                         *, H, W, stride, Cin_p):
    """conv1 (1x1) and the projection-shortcut 1x1 conv; emits pre-BN activations
    plus per-channel (sum, sumsq) accumulated across the batch grid axis."""
    n = pl.program_id(0)

    @pl.when(n == 0)
    def _():
        s1_ref[...] = jnp.zeros_like(s1_ref)
        sd_ref[...] = jnp.zeros_like(sd_ref)

    xb = x_ref[0].astype(jnp.bfloat16)                       # (H*W, Cin_p)
    # conv biases are dropped: a per-channel constant before training-mode BN
    # cancels exactly in the mean subtraction.
    y1 = jnp.dot(xb, w1_ref[...], preferred_element_type=jnp.float32)
    y1_ref[0] = y1
    _acc_stats(s1_ref, y1)

    if stride > 1:
        # TODO(synk): fold the stride subsampling into the BlockSpec index_map
        # (strided DMA) instead of an in-register strided slice.
        Ho = (H - 1) // stride + 1
        Wo = (W - 1) // stride + 1
        xs = xb.reshape(H, W, Cin_p)[::stride, ::stride, :].reshape(Ho * Wo, Cin_p)
    else:
        xs = xb
    sc = jnp.dot(xs, wd_ref[...], preferred_element_type=jnp.float32)
    sc_ref[0] = sc
    _acc_stats(sd_ref, sc)


def _k1_conv1(x_ref, w1_ref, y1_ref, s1_ref):
    """conv1 (1x1) only (identity shortcut)."""
    n = pl.program_id(0)

    @pl.when(n == 0)
    def _():
        s1_ref[...] = jnp.zeros_like(s1_ref)

    xb = x_ref[0].astype(jnp.bfloat16)
    y1 = jnp.dot(xb, w1_ref[...], preferred_element_type=jnp.float32)
    y1_ref[0] = y1
    _acc_stats(s1_ref, y1)


def _k2_conv2(y1_ref, aff1_ref, w2_ref, y2_ref, s2_ref, *, H, W, K, P_p):
    """BN1 (fused scale/shift) + ReLU, then the KxK same-conv as K*K shifted bf16
    matmuls accumulated in f32; emits pre-BN conv2 output plus its stats."""
    n = pl.program_id(0)

    @pl.when(n == 0)
    def _():
        s2_ref[...] = jnp.zeros_like(s2_ref)

    HW = H * W
    pad = K // 2
    h1 = jnp.maximum(y1_ref[0] * aff1_ref[0:1, :] + aff1_ref[1:2, :], 0.0)
    h1 = h1.reshape(H, W, P_p)

    # Shifted taps are built from in-register zero-filled slice+concat: no padded
    # VMEM scratch, no redundant whole-buffer zeroing, no scratch reloads.  The
    # sublane (W) shift is hoisted to the outer loop so only K (not K*K) of the
    # unaligned shuffles are emitted.
    # TODO(synk): the W shift could use pltpu.roll (XLU) + a column mask once the
    # sublane-axis rotate is validated on the target toolchain.
    acc = jnp.zeros((HW, P_p), jnp.float32)
    for dx in range(K):
        hx = _shift_cols(h1, dx - pad)
        for dy in range(K):
            tap = _shift_rows(hx, dy - pad).reshape(HW, P_p).astype(jnp.bfloat16)
            acc = acc + jnp.dot(tap, w2_ref[dy * K + dx],
                                preferred_element_type=jnp.float32)
    y2_ref[0] = acc
    _acc_stats(s2_ref, acc)


def _k3_conv3(y2_ref, aff2_ref, w3_ref, y3_ref, s3_ref, *, H, W, stride, P_p):
    """BN2 + ReLU, stride subsample, conv3 (1x1 -> plane*4); emits pre-BN output
    plus its stats."""
    n = pl.program_id(0)

    @pl.when(n == 0)
    def _():
        s3_ref[...] = jnp.zeros_like(s3_ref)

    h2 = jnp.maximum(y2_ref[0] * aff2_ref[0:1, :] + aff2_ref[1:2, :], 0.0)
    if stride > 1:
        # TODO(synk): move the subsampling into the BlockSpec index_map.
        Ho = (H - 1) // stride + 1
        Wo = (W - 1) // stride + 1
        h2 = h2.reshape(H, W, P_p)[::stride, ::stride, :].reshape(Ho * Wo, P_p)
    y3 = jnp.dot(h2.astype(jnp.bfloat16), w3_ref[...],
                 preferred_element_type=jnp.float32)
    y3_ref[0] = y3
    _acc_stats(s3_ref, y3)


def _k4_apply_downsample(y3_ref, sc_ref, aff_ref, o_ref):
    """BN3 / BNd (fused scale+shift), residual add, final ReLU."""
    h3 = y3_ref[0] * aff_ref[0:1, :] + aff_ref[1:2, :]
    sc = sc_ref[0] * aff_ref[2:3, :] + aff_ref[3:4, :]
    o_ref[0] = jnp.maximum(h3 + sc, 0.0)


def _k4_apply_identity(y3_ref, x_ref, aff_ref, o_ref):
    h3 = y3_ref[0] * aff_ref[0:1, :] + aff_ref[1:2, :]
    o_ref[0] = jnp.maximum(h3 + x_ref[0], 0.0)


# --------------------------------------------------------------------------
# wrapper
# --------------------------------------------------------------------------
def bottleneck_forward(x_nchw, params, *, plane, kernel_size, stride, has_downsample):
    x = jnp.transpose(x_nchw, (0, 2, 3, 1)).astype(jnp.float32)   # NCHW -> NHWC
    N, H, W, Cin = x.shape
    P, K = plane, kernel_size
    Cout = P * EXPANSION
    Ho = (H - 1) // stride + 1
    Wo = (W - 1) // stride + 1
    HW, HoWo = H * W, Ho * Wo
    if not has_downsample:
        assert stride == 1 and Cin == Cout, "identity shortcut needs stride=1, Cin=Cout"

    f32, bf16 = jnp.float32, jnp.bfloat16
    F, B = 4, 2  # bytes per element (f32 / bf16)
    Cin_p, P_p, Cout_p = _round_up(Cin), _round_up(P), _round_up(Cout)

    # host-side prep: lane-pad channels, flatten spatial, bf16 weights, f32 BN
    # params (gamma/beta padded with 0 so padded channels normalise to exactly 0).
    xp = _pad_last(x, Cin_p).reshape(N, HW, Cin_p)
    w1 = _pad_last2(params["w1"], Cin_p, P_p).astype(bf16)
    w2 = _pad_last2(params["w2"], P_p, P_p).astype(bf16).reshape(K * K, P_p, P_p)
    w3 = _pad_last2(params["w3"], P_p, Cout_p).astype(bf16)
    g1, be1 = _pad_last(params["g1"], P_p), _pad_last(params["be1"], P_p)
    g2, be2 = _pad_last(params["g2"], P_p), _pad_last(params["be2"], P_p)
    g3, be3 = _pad_last(params["g3"], Cout_p), _pad_last(params["be3"], Cout_p)

    grid = (N,)

    # -------------------- K1: conv1 (+ projection shortcut) --------------------
    if has_downsample:
        wd = _pad_last2(params["wd"], Cin_p, Cout_p).astype(bf16)
        gd, bed = _pad_last(params["gd"], Cout_p), _pad_last(params["bed"], Cout_p)
        y1, st1, sc, std = pl.pallas_call(
            functools.partial(_k1_conv1_downsample, H=H, W=W, stride=stride,
                              Cin_p=Cin_p),
            grid=grid,
            in_specs=[_row_spec(HW, Cin_p), _const_spec(Cin_p, P_p),
                      _const_spec(Cin_p, Cout_p)],
            out_specs=[_row_spec(HW, P_p), _const_spec(2, P_p),
                       _row_spec(HoWo, Cout_p), _const_spec(2, Cout_p)],
            out_shape=[jax.ShapeDtypeStruct((N, HW, P_p), f32),
                       jax.ShapeDtypeStruct((2, P_p), f32),
                       jax.ShapeDtypeStruct((N, HoWo, Cout_p), f32),
                       jax.ShapeDtypeStruct((2, Cout_p), f32)],
            compiler_params=_cparams(
                "arbitrary", HW * Cin_p * F, Cin_p * P_p * B, Cin_p * Cout_p * B,
                HW * P_p * F, HoWo * Cout_p * F),
        )(xp, w1, wd)
    else:
        y1, st1 = pl.pallas_call(
            _k1_conv1,
            grid=grid,
            in_specs=[_row_spec(HW, Cin_p), _const_spec(Cin_p, P_p)],
            out_specs=[_row_spec(HW, P_p), _const_spec(2, P_p)],
            out_shape=[jax.ShapeDtypeStruct((N, HW, P_p), f32),
                       jax.ShapeDtypeStruct((2, P_p), f32)],
            compiler_params=_cparams(
                "arbitrary", HW * Cin_p * F, Cin_p * P_p * B, HW * P_p * F),
        )(xp, w1)
    aff1 = _finalize_bn(st1, g1, be1, N * HW)

    # -------------------- K2: BN1 + ReLU + KxK conv --------------------
    y2, st2 = pl.pallas_call(
        functools.partial(_k2_conv2, H=H, W=W, K=K, P_p=P_p),
        grid=grid,
        in_specs=[_row_spec(HW, P_p), _const_spec(2, P_p),
                  _const_spec(K * K, P_p, P_p)],
        out_specs=[_row_spec(HW, P_p), _const_spec(2, P_p)],
        out_shape=[jax.ShapeDtypeStruct((N, HW, P_p), f32),
                   jax.ShapeDtypeStruct((2, P_p), f32)],
        compiler_params=_cparams(
            "arbitrary", HW * P_p * F, K * K * P_p * P_p * B, HW * P_p * F),
    )(y1, aff1, w2)
    aff2 = _finalize_bn(st2, g2, be2, N * HW)

    # -------------------- K3: BN2 + ReLU + conv3 (stride) --------------------
    y3, st3 = pl.pallas_call(
        functools.partial(_k3_conv3, H=H, W=W, stride=stride, P_p=P_p),
        grid=grid,
        in_specs=[_row_spec(HW, P_p), _const_spec(2, P_p),
                  _const_spec(P_p, Cout_p)],
        out_specs=[_row_spec(HoWo, Cout_p), _const_spec(2, Cout_p)],
        out_shape=[jax.ShapeDtypeStruct((N, HoWo, Cout_p), f32),
                   jax.ShapeDtypeStruct((2, Cout_p), f32)],
        compiler_params=_cparams(
            "arbitrary", HW * P_p * F, P_p * Cout_p * B, HoWo * Cout_p * F),
    )(y2, aff2, w3)
    aff3 = _finalize_bn(st3, g3, be3, N * HoWo)

    # -------------------- K4: BN3 (+BNd), residual add, ReLU --------------------
    if has_downsample:
        affd = _finalize_bn(std, gd, bed, N * HoWo)
        out_p = pl.pallas_call(
            _k4_apply_downsample,
            grid=grid,
            in_specs=[_row_spec(HoWo, Cout_p), _row_spec(HoWo, Cout_p),
                      _const_spec(4, Cout_p)],
            out_specs=_row_spec(HoWo, Cout_p),
            out_shape=jax.ShapeDtypeStruct((N, HoWo, Cout_p), f32),
            compiler_params=_cparams(
                "parallel", HoWo * Cout_p * F, HoWo * Cout_p * F, HoWo * Cout_p * F),
        )(y3, sc, jnp.concatenate([aff3, affd], axis=0))
    else:
        out_p = pl.pallas_call(
            _k4_apply_identity,
            grid=grid,
            in_specs=[_row_spec(HoWo, Cout_p), _row_spec(HW, Cin_p),
                      _const_spec(2, Cout_p)],
            out_specs=_row_spec(HoWo, Cout_p),
            out_shape=jax.ShapeDtypeStruct((N, HoWo, Cout_p), f32),
            compiler_params=_cparams(
                "parallel", HoWo * Cout_p * F, HW * Cin_p * F, HoWo * Cout_p * F),
        )(y3, xp, aff3)

    out = out_p[:, :, :Cout].reshape(N, Ho, Wo, Cout)
    return jnp.transpose(out, (0, 3, 1, 2))                       # NHWC -> NCHW


# --------------------------------------------------------------------------
# pure-JAX reference (training-mode BN; matmul inputs cast to bf16 with f32
# accumulation to mirror the kernel's MXU precision)
# --------------------------------------------------------------------------
def reference_forward(x_nchw, params, *, plane, kernel_size, stride, has_downsample):
    x = jnp.transpose(x_nchw, (0, 2, 3, 1)).astype(jnp.float32)
    K = kernel_size
    bf16, f32 = jnp.bfloat16, jnp.float32

    def bn(t, g, b):
        mean = t.mean(axis=(0, 1, 2), keepdims=True)
        var = ((t - mean) ** 2).mean(axis=(0, 1, 2), keepdims=True)
        return (g.reshape(1, 1, 1, -1) * (t - mean) * lax.rsqrt(var + EPS)
                + b.reshape(1, 1, 1, -1))

    def conv1x1(t, w, b, s=1):
        if s > 1:
            t = t[:, ::s, ::s, :]
        y = jnp.einsum("nhwc,cd->nhwd", t.astype(bf16), w.astype(bf16),
                       preferred_element_type=f32)
        return y + b.reshape(1, 1, 1, -1)

    def convk(t, w, b):
        y = lax.conv_general_dilated(
            t.astype(bf16), w.astype(bf16), (1, 1), [(K // 2, K // 2)] * 2,
            dimension_numbers=("NHWC", "HWIO", "NHWC"),
            preferred_element_type=f32)
        return y + b.reshape(1, 1, 1, -1)

    h = jnp.maximum(bn(conv1x1(x, params["w1"], params["b1"]),
                       params["g1"], params["be1"]), 0.0)
    h = jnp.maximum(bn(convk(h, params["w2"], params["b2"]),
                       params["g2"], params["be2"]), 0.0)
    h = bn(conv1x1(h, params["w3"], params["b3"], s=stride),
           params["g3"], params["be3"])
    if has_downsample:
        sc = bn(conv1x1(x, params["wd"], params["bd"], s=stride),
                params["gd"], params["bed"])
    else:
        sc = x if stride == 1 else x[:, ::stride, ::stride, :]
    out = jnp.maximum(h + sc, 0.0)
    return jnp.transpose(out, (0, 3, 1, 2))


def make_params(key, in_planes, plane, kernel_size):
    """Deterministic synthetic parameters (matmul-friendly layouts)."""
    Cout = plane * EXPANSION
    ks = jax.random.split(key, 16)

    def nrm(k, shape, scale=0.1):
        return (scale * jax.random.normal(k, shape)).astype(jnp.float32)

    return {
        # conv1: 1x1, in_planes -> plane          (weight stored as (Cin, Cout))
        "w1": nrm(ks[0], (in_planes, plane)),
        "b1": nrm(ks[1], (plane,)),
        "g1": 1.0 + nrm(ks[2], (plane,)),
        "be1": nrm(ks[3], (plane,)),
        # conv2: KxK, plane -> plane              (weight stored as HWIO)
        "w2": nrm(ks[4], (kernel_size, kernel_size, plane, plane)),
        "b2": nrm(ks[5], (plane,)),
        "g2": 1.0 + nrm(ks[6], (plane,)),
        "be2": nrm(ks[7], (plane,)),
        # conv3: 1x1, plane -> plane*4
        "w3": nrm(ks[8], (plane, Cout)),
        "b3": nrm(ks[9], (Cout,)),
        "g3": 1.0 + nrm(ks[10], (Cout,)),
        "be3": nrm(ks[11], (Cout,)),
        # downsample: 1x1 conv (stride) + BN, in_planes -> plane*4
        "wd": nrm(ks[12], (in_planes, Cout)),
        "bd": nrm(ks[13], (Cout,)),
        "gd": 1.0 + nrm(ks[14], (Cout,)),
        "bed": nrm(ks[15], (Cout,)),
    }


if __name__ == "__main__":
    # Small, module-consistent shapes.
    N, in_planes, H, W = 2, 16, 16, 16
    plane, kernel_size, stride = 8, 3, 1
    has_downsample = (stride != 1) or (in_planes != plane * EXPANSION)  # True here

    key = jax.random.PRNGKey(0)
    kx, kp = jax.random.split(key)
    x = jax.random.normal(kx, (N, in_planes, H, W), dtype=jnp.float32)  # NCHW like PyTorch
    params = make_params(kp, in_planes, plane, kernel_size)

    fwd = jax.jit(functools.partial(
        bottleneck_forward, plane=plane, kernel_size=kernel_size,
        stride=stride, has_downsample=has_downsample))
    out = jax.block_until_ready(fwd(x, params))

    ref = reference_forward(x, params, plane=plane, kernel_size=kernel_size,
                            stride=stride, has_downsample=has_downsample)
    assert out.shape == (N, plane * EXPANSION, H, W), out.shape
    err = float(jnp.max(jnp.abs(out - ref)))
    assert jnp.allclose(out, ref, atol=2e-3, rtol=2e-3), err

    print("KERNEL_OK")
</pallas_src>

<mosaic_0001>
module attributes {stable_mosaic.version = 11 : i64} {
  func.func @_k1_conv1_downsample(%arg0: i32, %arg1: memref<1x256x128xf32, #tpu.memory_space<vmem>>, %arg2: memref<128x128xbf16, #tpu.memory_space<vmem>>, %arg3: memref<128x128xbf16, #tpu.memory_space<vmem>>, %arg4: memref<1x256x128xf32, #tpu.memory_space<vmem>>, %arg5: memref<2x128xf32, #tpu.memory_space<vmem>>, %arg6: memref<1x256x128xf32, #tpu.memory_space<vmem>>, %arg7: memref<2x128xf32, #tpu.memory_space<vmem>>) attributes {dimension_semantics = [#tpu.dimension_semantics<arbitrary>], iteration_bounds = array<i64: 2>, scalar_prefetch = 0 : i64, scratch_operands = 0 : i64, tpu.core_type = #tpu.core_type<tc>, window_params = [{transform_indices = @transform_0, window_bounds = array<i64: 1, 256, 128>}, {pipeline_mode = #tpu.pipeline_mode<synchronous>, transform_indices = @transform_1, window_bounds = array<i64: 128, 128>}, {pipeline_mode = #tpu.pipeline_mode<synchronous>, transform_indices = @transform_2, window_bounds = array<i64: 128, 128>}, {transform_indices = @transform_3, window_bounds = array<i64: 1, 256, 128>}, {pipeline_mode = #tpu.pipeline_mode<synchronous>, transform_indices = @transform_4, window_bounds = array<i64: 2, 128>}, {transform_indices = @transform_5, window_bounds = array<i64: 1, 256, 128>}, {pipeline_mode = #tpu.pipeline_mode<synchronous>, transform_indices = @transform_6, window_bounds = array<i64: 2, 128>}]} {
    %c0_i32 = arith.constant 0 : i32
    %0 = arith.cmpi eq, %arg0, %c0_i32 : i32
    %1 = arith.extui %0 : i1 to i32
    %c0_i32_0 = arith.constant 0 : i32
    %2 = arith.cmpi ne, %1, %c0_i32_0 : i32
    scf.if %2 {
      %cst_26 = arith.constant 0.000000e+00 : f32
      %34 = vector.broadcast %cst_26 : f32 to vector<2x128xf32>
      %c0_27 = arith.constant 0 : index
      %c0_28 = arith.constant 0 : index
      %35 = vector.load %arg5[%c0_27, %c0_28] : memref<2x128xf32, #tpu.memory_space<vmem>>, vector<2x128xf32>
      tpu.vector_store %arg5[%c0_27, %c0_28], %34 {strides = array<i32>} : memref<2x128xf32, #tpu.memory_space<vmem>>, vector<2x128xf32>,
      %cst_29 = arith.constant 0.000000e+00 : f32
      %36 = vector.broadcast %cst_29 : f32 to vector<2x128xf32>
      %c0_30 = arith.constant 0 : index
      %c0_31 = arith.constant 0 : index
      %37 = vector.load %arg7[%c0_30, %c0_31] : memref<2x128xf32, #tpu.memory_space<vmem>>, vector<2x128xf32>
      tpu.vector_store %arg7[%c0_30, %c0_31], %36 {strides = array<i32>} : memref<2x128xf32, #tpu.memory_space<vmem>>, vector<2x128xf32>,
    } else {
    }
    %c0 = arith.constant 0 : index
    %c0_1 = arith.constant 0 : index
    %c0_2 = arith.constant 0 : index
    %3 = vector.load %arg1[%c0, %c0_1, %c0_2] : memref<1x256x128xf32, #tpu.memory_space<vmem>>, vector<1x256x128xf32>
    %4 = vector.shape_cast %3 : vector<1x256x128xf32> to vector<256x128xf32>
    %5 = arith.truncf %4 : vector<256x128xf32> to vector<256x128xbf16>
    %c0_3 = arith.constant 0 : index
    %c0_4 = arith.constant 0 : index
    %6 = vector.load %arg2[%c0_3, %c0_4] : memref<128x128xbf16, #tpu.memory_space<vmem>>, vector<128x128xbf16>
    %cst = arith.constant dense<0.000000e+00> : vector<256x128xf32>
    %7 = tpu.matmul %5, %6, %cst {dimension_numbers = #tpu.dot_dimension_numbers<[1], [0], [0], [1], [0, 0, 1, 1], [], []>} : vector<256x128xbf16>, vector<128x128xbf16>, vector<256x128xf32> -> vector<256x128xf32>
    %c0_5 = arith.constant 0 : index
    %c0_6 = arith.constant 0 : index
    %c0_7 = arith.constant 0 : index
    %8 = vector.load %arg4[%c0_5, %c0_6, %c0_7] : memref<1x256x128xf32, #tpu.memory_space<vmem>>, vector<1x256x128xf32>
    %9 = vector.shape_cast %8 : vector<1x256x128xf32> to vector<256x128xf32>
    %10 = vector.shape_cast %7 : vector<256x128xf32> to vector<1x256x128xf32>
    tpu.vector_store %arg4[%c0_5, %c0_6, %c0_7], %10 {strides = array<i32>} : memref<1x256x128xf32, #tpu.memory_space<vmem>>, vector<1x256x128xf32>,
    %c0_8 = arith.constant 0 : index
    %c0_9 = arith.constant 0 : index
    %11 = vector.load %arg5[%c0_8, %c0_9] : memref<2x128xf32, #tpu.memory_space<vmem>>, vector<2x128xf32>
    %cst_10 = arith.constant dense<0.000000e+00> : vector<128xf32>
    %12 = vector.multi_reduction <add>, %7, %cst_10 [0] : vector<256x128xf32> to vector<128xf32>
    %13 = vector.shape_cast %12 : vector<128xf32> to vector<1x128xf32>
    %14 = arith.mulf %7, %7 : vector<256x128xf32>
    %cst_11 = arith.constant dense<0.000000e+00> : vector<128xf32>
    %15 = vector.multi_reduction <add>, %14, %cst_11 [0] : vector<256x128xf32> to vector<128xf32>
    %16 = vector.shape_cast %15 : vector<128xf32> to vector<1x128xf32>
    %17 = tpu.concatenate %13, %16 in 0 : vector<1x128xf32>, vector<1x128xf32> -> vector<2x128xf32>
    %18 = arith.addf %11, %17 : vector<2x128xf32>
    %c0_12 = arith.constant 0 : index
    %c0_13 = arith.constant 0 : index
    %19 = vector.load %arg5[%c0_12, %c0_13] : memref<2x128xf32, #tpu.memory_space<vmem>>, vector<2x128xf32>
    tpu.vector_store %arg5[%c0_12, %c0_13], %18 {strides = array<i32>} : memref<2x128xf32, #tpu.memory_space<vmem>>, vector<2x128xf32>,
    %c0_14 = arith.constant 0 : index
    %c0_15 = arith.constant 0 : index
    %20 = vector.load %arg3[%c0_14, %c0_15] : memref<128x128xbf16, #tpu.memory_space<vmem>>, vector<128x128xbf16>
    %cst_16 = arith.constant dense<0.000000e+00> : vector<256x128xf32>
    %21 = tpu.matmul %5, %20, %cst_16 {dimension_numbers = #tpu.dot_dimension_numbers<[1], [0], [0], [1], [0, 0, 1, 1], [], []>} : vector<256x128xbf16>, vector<128x128xbf16>, vector<256x128xf32> -> vector<256x128xf32>
    %c0_17 = arith.constant 0 : index
    %c0_18 = arith.constant 0 : index
    %c0_19 = arith.constant 0 : index
    %22 = vector.load %arg6[%c0_17, %c0_18, %c0_19] : memref<1x256x128xf32, #tpu.memory_space<vmem>>, vector<1x256x128xf32>
    %23 = vector.shape_cast %22 : vector<1x256x128xf32> to vector<256x128xf32>
    %24 = vector.shape_cast %21 : vector<256x128xf32> to vector<1x256x128xf32>
    tpu.vector_store %arg6[%c0_17, %c0_18, %c0_19], %24 {strides = array<i32>} : memref<1x256x128xf32, #tpu.memory_space<vmem>>, vector<1x256x128xf32>,
    %c0_20 = arith.constant 0 : index
    %c0_21 = arith.constant 0 : index
    %25 = vector.load %arg7[%c0_20, %c0_21] : memref<2x128xf32, #tpu.memory_space<vmem>>, vector<2x128xf32>
    %cst_22 = arith.constant dense<0.000000e+00> : vector<128xf32>
    %26 = vector.multi_reduction <add>, %21, %cst_22 [0] : vector<256x128xf32> to vector<128xf32>
    %27 = vector.shape_cast %26 : vector<128xf32> to vector<1x128xf32>
    %28 = arith.mulf %21, %21 : vector<256x128xf32>
    %cst_23 = arith.constant dense<0.000000e+00> : vector<128xf32>
    %29 = vector.multi_reduction <add>, %28, %cst_23 [0] : vector<256x128xf32> to vector<128xf32>
    %30 = vector.shape_cast %29 : vector<128xf32> to vector<1x128xf32>
    %31 = tpu.concatenate %27, %30 in 0 : vector<1x128xf32>, vector<1x128xf32> -> vector<2x128xf32>
    %32 = arith.addf %25, %31 : vector<2x128xf32>
    %c0_24 = arith.constant 0 : index
    %c0_25 = arith.constant 0 : index
    %33 = vector.load %arg7[%c0_24, %c0_25] : memref<2x128xf32, #tpu.memory_space<vmem>>, vector<2x128xf32>
    tpu.vector_store %arg7[%c0_24, %c0_25], %32 {strides = array<i32>} : memref<2x128xf32, #tpu.memory_space<vmem>>, vector<2x128xf32>,
    return
  }
  func.func @transform_0(%arg0: i32) -> (i32, i32, i32) {
    %c0_i32 = arith.constant 0 : i32
    %c0_i32_0 = arith.constant 0 : i32
    %c0_i32_1 = arith.constant 0 : i32
    return %arg0, %c0_i32, %c0_i32_0 : i32, i32, i32
  }
  func.func @transform_1(%arg0: i32) -> (i32, i32) {
    %c0_i32 = arith.constant 0 : i32
    %c0_i32_0 = arith.constant 0 : i32
    %c0_i32_1 = arith.constant 0 : i32
    return %c0_i32, %c0_i32_0 : i32, i32
  }
  func.func @transform_2(%arg0: i32) -> (i32, i32) {
    %c0_i32 = arith.constant 0 : i32
    %c0_i32_0 = arith.constant 0 : i32
    %c0_i32_1 = arith.constant 0 : i32
    return %c0_i32, %c0_i32_0 : i32, i32
  }
  func.func @transform_3(%arg0: i32) -> (i32, i32, i32) {
    %c0_i32 = arith.constant 0 : i32
    %c0_i32_0 = arith.constant 0 : i32
    %c0_i32_1 = arith.constant 0 : i32
    return %arg0, %c0_i32, %c0_i32_0 : i32, i32, i32
  }
  func.func @transform_4(%arg0: i32) -> (i32, i32) {
    %c0_i32 = arith.constant 0 : i32
    %c0_i32_0 = arith.constant 0 : i32
    %c0_i32_1 = arith.constant 0 : i32
    return %c0_i32, %c0_i32_0 : i32, i32
  }
  func.func @transform_5(%arg0: i32) -> (i32, i32, i32) {
    %c0_i32 = arith.constant 0 : i32
    %c0_i32_0 = arith.constant 0 : i32
    %c0_i32_1 = arith.constant 0 : i32
    return %arg0, %c0_i32, %c0_i32_0 : i32, i32, i32
  }
  func.func @transform_6(%arg0: i32) -> (i32, i32) {
    %c0_i32 = arith.constant 0 : i32
    %c0_i32_0 = arith.constant 0 : i32
    %c0_i32_1 = arith.constant 0 : i32
    return %c0_i32, %c0_i32_0 : i32, i32
  }
}

module attributes {stable_mosaic.version = 11 : i64} {
  func.func @_k2_conv2(%arg0: i32, %arg1: memref<1x256x128xf32, #tpu.memory_space<vmem>>, %arg2: memref<2x128xf32, #tpu.memory_space<vmem>>, %arg3: memref<9x128x128xbf16, #tpu.memory_space<vmem>>, %arg4: memref<1x256x128xf32, #tpu.memory_space<vmem>>, %arg5: memref<2x128xf32, #tpu.memory_space<vmem>>) attributes {dimension_semantics = [#tpu.dimension_semantics<arbitrary>], iteration_bounds = array<i64: 2>, scalar_prefetch = 0 : i64, scratch_operands = 0 : i64, tpu.core_type = #tpu.core_type<tc>, window_params = [{transform_indices = @transform_0, window_bounds = array<i64: 1, 256, 128>}, {pipeline_mode = #tpu.pipeline_mode<synchronous>, transform_indices = @transform_1, window_bounds = array<i64: 2, 128>}, {pipeline_mode = #tpu.pipeline_mode<synchronous>, transform_indices = @transform_2, window_bounds = array<i64: 9, 128, 128>}, {transform_indices = @transform_3, window_bounds = array<i64: 1, 256, 128>}, {pipeline_mode = #tpu.pipeline_mode<synchronous>, transform_indices = @transform_4, window_bounds = array<i64: 2, 128>}]} {
    %c0_i32 = arith.constant 0 : i32
    %0 = arith.cmpi eq, %arg0, %c0_i32 : i32
    %1 = arith.extui %0 : i1 to i32
    %c0_i32_0 = arith.constant 0 : i32
    %2 = arith.cmpi ne, %1, %c0_i32_0 : i32
    scf.if %2 {
      %cst_53 = arith.constant 0.000000e+00 : f32
      %105 = vector.broadcast %cst_53 : f32 to vector<2x128xf32>
      %c0_54 = arith.constant 0 : index
      %c0_55 = arith.constant 0 : index
      %106 = vector.load %arg5[%c0_54, %c0_55] : memref<2x128xf32, #tpu.memory_space<vmem>>, vector<2x128xf32>
      tpu.vector_store %arg5[%c0_54, %c0_55], %105 {strides = array<i32>} : memref<2x128xf32, #tpu.memory_space<vmem>>, vector<2x128xf32>,
    } else {
    }
    %c0 = arith.constant 0 : index
    %c0_1 = arith.constant 0 : index
    %c0_2 = arith.constant 0 : index
    %3 = vector.load %arg1[%c0, %c0_1, %c0_2] : memref<1x256x128xf32, #tpu.memory_space<vmem>>, vector<1x256x128xf32>
    %4 = vector.shape_cast %3 : vector<1x256x128xf32> to vector<256x128xf32>
    %c0_3 = arith.constant 0 : index
    %c0_4 = arith.constant 0 : index
    %5 = vector.load %arg2[%c0_3, %c0_4] : memref<2x128xf32, #tpu.memory_space<vmem>>, vector<1x128xf32>
    %6 = vector.broadcast %5 : vector<1x128xf32> to vector<256x128xf32>
    %7 = arith.mulf %4, %6 : vector<256x128xf32>
    %c1 = arith.constant 1 : index
    %c0_5 = arith.constant 0 : index
    %8 = vector.load %arg2[%c1, %c0_5] : memref<2x128xf32, #tpu.memory_space<vmem>>, vector<1x128xf32>
    %9 = vector.broadcast %8 : vector<1x128xf32> to vector<256x128xf32>
    %10 = arith.addf %7, %9 : vector<256x128xf32>
    %cst = arith.constant 0.000000e+00 : f32
    %11 = vector.broadcast %cst : f32 to vector<256x128xf32>
    %12 = arith.maximumf %10, %11 : vector<256x128xf32>
    %13 = vector.shape_cast %12 : vector<256x128xf32> to vector<16x16x128xf32>
    %cst_6 = arith.constant 0.000000e+00 : f32
    %14 = vector.broadcast %cst_6 : f32 to vector<256x128xf32>
    %cst_7 = arith.constant 0.000000e+00 : f32
    %15 = vector.broadcast %cst_7 : f32 to vector<16x1x128xf32>
    %16 = vector.extract_strided_slice %13 {offsets = [0, 0, 0], sizes = [16, 15, 128], strides = [1, 1, 1]} : vector<16x16x128xf32> to vector<16x15x128xf32>
    %17 = tpu.concatenate %15, %16 in 1 : vector<16x1x128xf32>, vector<16x15x128xf32> -> vector<16x16x128xf32>
    %cst_8 = arith.constant 0.000000e+00 : f32
    %18 = vector.broadcast %cst_8 : f32 to vector<1x16x128xf32>
    %19 = vector.extract_strided_slice %17 {offsets = [0, 0, 0], sizes = [15, 16, 128], strides = [1, 1, 1]} : vector<16x16x128xf32> to vector<15x16x128xf32>
    %20 = tpu.concatenate %18, %19 in 0 : vector<1x16x128xf32>, vector<15x16x128xf32> -> vector<16x16x128xf32>
    %21 = vector.shape_cast %20 : vector<16x16x128xf32> to vector<256x128xf32>
    %22 = arith.truncf %21 : vector<256x128xf32> to vector<256x128xbf16>
    %c0_9 = arith.constant 0 : index
    %c0_10 = arith.constant 0 : index
    %c0_11 = arith.constant 0 : index
    %23 = vector.load %arg3[%c0_9, %c0_10, %c0_11] : memref<9x128x128xbf16, #tpu.memory_space<vmem>>, vector<1x128x128xbf16>
    %24 = vector.shape_cast %23 : vector<1x128x128xbf16> to vector<128x128xbf16>
    %cst_12 = arith.constant dense<0.000000e+00> : vector<256x128xf32>
    %25 = tpu.matmul %22, %24, %cst_12 {dimension_numbers = #tpu.dot_dimension_numbers<[1], [0], [0], [1], [0, 0, 1, 1], [], []>} : vector<256x128xbf16>, vector<128x128xbf16>, vector<256x128xf32> -> vector<256x128xf32>
    %26 = arith.addf %14, %25 : vector<256x128xf32>
    %27 = vector.shape_cast %17 : vector<16x16x128xf32> to vector<256x128xf32>
    %28 = arith.truncf %27 : vector<256x128xf32> to vector<256x128xbf16>
    %c3 = arith.constant 3 : index
    %c0_13 = arith.constant 0 : index
    %c0_14 = arith.constant 0 : index
    %29 = vector.load %arg3[%c3, %c0_13, %c0_14] : memref<9x128x128xbf16, #tpu.memory_space<vmem>>, vector<1x128x128xbf16>
    %30 = vector.shape_cast %29 : vector<1x128x128xbf16> to vector<128x128xbf16>
    %cst_15 = arith.constant dense<0.000000e+00> : vector<256x128xf32>
    %31 = tpu.matmul %28, %30, %cst_15 {dimension_numbers = #tpu.dot_dimension_numbers<[1], [0], [0], [1], [0, 0, 1, 1], [], []>} : vector<256x128xbf16>, vector<128x128xbf16>, vector<256x128xf32> -> vector<256x128xf32>
    %32 = arith.addf %26, %31 : vector<256x128xf32>
    %cst_16 = arith.constant 0.000000e+00 : f32
    %33 = vector.broadcast %cst_16 : f32 to vector<1x16x128xf32>
    %34 = vector.extract_strided_slice %17 {offsets = [1, 0, 0], sizes = [15, 16, 128], strides = [1, 1, 1]} : vector<16x16x128xf32> to vector<15x16x128xf32>
    %35 = tpu.concatenate %34, %33 in 0 : vector<15x16x128xf32>, vector<1x16x128xf32> -> vector<16x16x128xf32>
    %36 = vector.shape_cast %35 : vector<16x16x128xf32> to vector<256x128xf32>
    %37 = arith.truncf %36 : vector<256x128xf32> to vector<256x128xbf16>
    %c6 = arith.constant 6 : index
    %c0_17 = arith.constant 0 : index
    %c0_18 = arith.constant 0 : index
    %38 = vector.load %arg3[%c6, %c0_17, %c0_18] : memref<9x128x128xbf16, #tpu.memory_space<vmem>>, vector<1x128x128xbf16>
    %39 = vector.shape_cast %38 : vector<1x128x128xbf16> to vector<128x128xbf16>
    %cst_19 = arith.constant dense<0.000000e+00> : vector<256x128xf32>
    %40 = tpu.matmul %37, %39, %cst_19 {dimension_numbers = #tpu.dot_dimension_numbers<[1], [0], [0], [1], [0, 0, 1, 1], [], []>} : vector<256x128xbf16>, vector<128x128xbf16>, vector<256x128xf32> -> vector<256x128xf32>
    %41 = arith.addf %32, %40 : vector<256x128xf32>
    %cst_20 = arith.constant 0.000000e+00 : f32
    %42 = vector.broadcast %cst_20 : f32 to vector<1x16x128xf32>
    %43 = vector.extract_strided_slice %13 {offsets = [0, 0, 0], sizes = [15, 16, 128], strides = [1, 1, 1]} : vector<16x16x128xf32> to vector<15x16x128xf32>
    %44 = tpu.concatenate %42, %43 in 0 : vector<1x16x128xf32>, vector<15x16x128xf32> -> vector<16x16x128xf32>
    %45 = vector.shape_cast %44 : vector<16x16x128xf32> to vector<256x128xf32>
    %46 = arith.truncf %45 : vector<256x128xf32> to vector<256x128xbf16>
    %c1_21 = arith.constant 1 : index
    %c0_22 = arith.constant 0 : index
    %c0_23 = arith.constant 0 : index
    %47 = vector.load %arg3[%c1_21, %c0_22, %c0_23] : memref<9x128x128xbf16, #tpu.memory_space<vmem>>, vector<1x128x128xbf16>
    %48 = vector.shape_cast %47 : vector<1x128x128xbf16> to vector<128x128xbf16>
    %cst_24 = arith.constant dense<0.000000e+00> : vector<256x128xf32>
    %49 = tpu.matmul %46, %48, %cst_24 {dimension_numbers = #tpu.dot_dimension_numbers<[1], [0], [0], [1], [0, 0, 1, 1], [], []>} : vector<256x128xbf16>, vector<128x128xbf16>, vector<256x128xf32> -> vector<256x128xf32>
    %50 = arith.addf %41, %49 : vector<256x128xf32>
    %51 = vector.shape_cast %13 : vector<16x16x128xf32> to vector<256x128xf32>
    %52 = arith.truncf %51 : vector<256x128xf32> to vector<256x128xbf16>
    %c4 = arith.constant 4 : index
    %c0_25 = arith.constant 0 : index
    %c0_26 = arith.constant 0 : index
    %53 = vector.load %arg3[%c4, %c0_25, %c0_26] : memref<9x128x128xbf16, #tpu.memory_space<vmem>>, vector<1x128x128xbf16>
    %54 = vector.shape_cast %53 : vector<1x128x128xbf16> to vector<128x128xbf16>
    %cst_27 = arith.constant dense<0.000000e+00> : vector<256x128xf32>
    %55 = tpu.matmul %52, %54, %cst_27 {dimension_numbers = #tpu.dot_dimension_numbers<[1], [0], [0], [1], [0, 0, 1, 1], [], []>} : vector<256x128xbf16>, vector<128x128xbf16>, vector<256x128xf32> -> vector<256x128xf32>
    %56 = arith.addf %50, %55 : vector<256x128xf32>
    %cst_28 = arith.constant 0.000000e+00 : f32
    %57 = vector.broadcast %cst_28 : f32 to vector<1x16x128xf32>
    %58 = vector.extract_strided_slice %13 {offsets = [1, 0, 0], sizes = [15, 16, 128], strides = [1, 1, 1]} : vector<16x16x128xf32> to vector<15x16x128xf32>
    %59 = tpu.concatenate %58, %57 in 0 : vector<15x16x128xf32>, vector<1x16x128xf32> -> vector<16x16x128xf32>
    %60 = vector.shape_cast %59 : vector<16x16x128xf32> to vector<256x128xf32>
    %61 = arith.truncf %60 : vector<256x128xf32> to vector<256x128xbf16>
    %c7 = arith.constant 7 : index
    %c0_29 = arith.constant 0 : index
    %c0_30 = arith.constant 0 : index
    %62 = vector.load %arg3[%c7, %c0_29, %c0_30] : memref<9x128x128xbf16, #tpu.memory_space<vmem>>, vector<1x128x128xbf16>
    %63 = vector.shape_cast %62 : vector<1x128x128xbf16> to vector<128x128xbf16>
    %cst_31 = arith.constant dense<0.000000e+00> : vector<256x128xf32>
    %64 = tpu.matmul %61, %63, %cst_31 {dimension_numbers = #tpu.dot_dimension_numbers<[1], [0], [0], [1], [0, 0, 1, 1], [], []>} : vector<256x128xbf16>, vector<128x128xbf16>, vector<256x128xf32> -> vector<256x128xf32>
    %65 = arith.addf %56, %64 : vector<256x128xf32>
    %cst_32 = arith.constant 0.000000e+00 : f32
    %66 = vector.broadcast %cst_32 : f32 to vector<16x1x128xf32>
    %67 = vector.extract_strided_slice %13 {offsets = [0, 1, 0], sizes = [16, 15, 128], strides = [1, 1, 1]} : vector<16x16x128xf32> to vector<16x15x128xf32>
    %68 = tpu.concatenate %67, %66 in 1 : vector<16x15x128xf32>, vector<16x1x128xf32> -> vector<16x16x128xf32>
    %cst_33 = arith.constant 0.000000e+00 : f32
    %69 = vector.broadcast %cst_33 : f32 to vector<1x16x128xf32>
    %70 = vector.extract_strided_slice %68 {offsets = [0, 0, 0], sizes = [15, 16, 128], strides = [1, 1, 1]} : vector<16x16x128xf32> to vector<15x16x128xf32>
    %71 = tpu.concatenate %69, %70 in 0 : vector<1x16x128xf32>, vector<15x16x128xf32> -> vector<16x16x128xf32>
    %72 = vector.shape_cast %71 : vector<16x16x128xf32> to vector<256x128xf32>
    %73 = arith.truncf %72 : vector<256x128xf32> to vector<256x128xbf16>
    %c2 = arith.constant 2 : index
    %c0_34 = arith.constant 0 : index
    %c0_35 = arith.constant 0 : index
    %74 = vector.load %arg3[%c2, %c0_34, %c0_35] : memref<9x128x128xbf16, #tpu.memory_space<vmem>>, vector<1x128x128xbf16>
    %75 = vector.shape_cast %74 : vector<1x128x128xbf16> to vector<128x128xbf16>
    %cst_36 = arith.constant dense<0.000000e+00> : vector<256x128xf32>
    %76 = tpu.matmul %73, %75, %cst_36 {dimension_numbers = #tpu.dot_dimension_numbers<[1], [0], [0], [1], [0, 0, 1, 1], [], []>} : vector<256x128xbf16>, vector<128x128xbf16>, vector<256x128xf32> -> vector<256x128xf32>
    %77 = arith.addf %65, %76 : vector<256x128xf32>
    %78 = vector.shape_cast %68 : vector<16x16x128xf32> to vector<256x128xf32>
    %79 = arith.truncf %78 : vector<256x128xf32> to vector<256x128xbf16>
    %c5 = arith.constant 5 : index
    %c0_37 = arith.constant 0 : index
    %c0_38 = arith.constant 0 : index
    %80 = vector.load %arg3[%c5, %c0_37, %c0_38] : memref<9x128x128xbf16, #tpu.memory_space<vmem>>, vector<1x128x128xbf16>
    %81 = vector.shape_cast %80 : vector<1x128x128xbf16> to vector<128x128xbf16>
    %cst_39 = arith.constant dense<0.000000e+00> : vector<256x128xf32>
    %82 = tpu.matmul %79, %81, %cst_39 {dimension_numbers = #tpu.dot_dimension_numbers<[1], [0], [0], [1], [0, 0, 1, 1], [], []>} : vector<256x128xbf16>, vector<128x128xbf16>, vector<256x128xf32> -> vector<256x128xf32>
    %83 = arith.addf %77, %82 : vector<256x128xf32>
    %cst_40 = arith.constant 0.000000e+00 : f32
    %84 = vector.broadcast %cst_40 : f32 to vector<1x16x128xf32>
    %85 = vector.extract_strided_slice %68 {offsets = [1, 0, 0], sizes = [15, 16, 128], strides = [1, 1, 1]} : vector<16x16x128xf32> to vector<15x16x128xf32>
    %86 = tpu.concatenate %85, %84 in 0 : vector<15x16x128xf32>, vector<1x16x128xf32> -> vector<16x16x128xf32>
    %87 = vector.shape_cast %86 : vector<16x16x128xf32> to vector<256x128xf32>
    %88 = arith.truncf %87 : vector<256x128xf32> to vector<256x128xbf16>
    %c8 = arith.constant 8 : index
    %c0_41 = arith.constant 0 : index
    %c0_42 = arith.constant 0 : index
    %89 = vector.load %arg3[%c8, %c0_41, %c0_42] : memref<9x128x128xbf16, #tpu.memory_space<vmem>>, vector<1x128x128xbf16>
    %90 = vector.shape_cast %89 : vector<1x128x128xbf16> to vector<128x128xbf16>
    %cst_43 = arith.constant dense<0.000000e+00> : vector<256x128xf32>
    %91 = tpu.matmul %88, %90, %cst_43 {dimension_numbers = #tpu.dot_dimension_numbers<[1], [0], [0], [1], [0, 0, 1, 1], [], []>} : vector<256x128xbf16>, vector<128x128xbf16>, vector<256x128xf32> -> vector<256x128xf32>
    %92 = arith.addf %83, %91 : vector<256x128xf32>
    %c0_44 = arith.constant 0 : index
    %c0_45 = arith.constant 0 : index
    %c0_46 = arith.constant 0 : index
    %93 = vector.load %arg4[%c0_44, %c0_45, %c0_46] : memref<1x256x128xf32, #tpu.memory_space<vmem>>, vector<1x256x128xf32>
    %94 = vector.shape_cast %93 : vector<1x256x128xf32> to vector<256x128xf32>
    %95 = vector.shape_cast %92 : vector<256x128xf32> to vector<1x256x128xf32>
    tpu.vector_store %arg4[%c0_44, %c0_45, %c0_46], %95 {strides = array<i32>} : memref<1x256x128xf32, #tpu.memory_space<vmem>>, vector<1x256x128xf32>,
    %c0_47 = arith.constant 0 : index
    %c0_48 = arith.constant 0 : index
    %96 = vector.load %arg5[%c0_47, %c0_48] : memref<2x128xf32, #tpu.memory_space<vmem>>, vector<2x128xf32>
    %cst_49 = arith.constant dense<0.000000e+00> : vector<128xf32>
    %97 = vector.multi_reduction <add>, %92, %cst_49 [0] : vector<256x128xf32> to vector<128xf32>
    %98 = vector.shape_cast %97 : vector<128xf32> to vector<1x128xf32>
    %99 = arith.mulf %92, %92 : vector<256x128xf32>
    %cst_50 = arith.constant dense<0.000000e+00> : vector<128xf32>
    %100 = vector.multi_reduction <add>, %99, %cst_50 [0] : vector<256x128xf32> to vector<128xf32>
    %101 = vector.shape_cast %100 : vector<128xf32> to vector<1x128xf32>
    %102 = tpu.concatenate %98, %101 in 0 : vector<1x128xf32>, vector<1x128xf32> -> vector<2x128xf32>
    %103 = arith.addf %96, %102 : vector<2x128xf32>
    %c0_51 = arith.constant 0 : index
    %c0_52 = arith.constant 0 : index
    %104 = vector.load %arg5[%c0_51, %c0_52] : memref<2x128xf32, #tpu.memory_space<vmem>>, vector<2x128xf32>
    tpu.vector_store %arg5[%c0_51, %c0_52], %103 {strides = array<i32>} : memref<2x128xf32, #tpu.memory_space<vmem>>, vector<2x128xf32>,
    return
  }
  func.func @transform_0(%arg0: i32) -> (i32, i32, i32) {
    %c0_i32 = arith.constant 0 : i32
    %c0_i32_0 = arith.constant 0 : i32
    %c0_i32_1 = arith.constant 0 : i32
    return %arg0, %c0_i32, %c0_i32_0 : i32, i32, i32
  }
  func.func @transform_1(%arg0: i32) -> (i32, i32) {
    %c0_i32 = arith.constant 0 : i32
    %c0_i32_0 = arith.constant 0 : i32
    %c0_i32_1 = arith.constant 0 : i32
    return %c0_i32, %c0_i32_0 : i32, i32
  }
  func.func @transform_2(%arg0: i32) -> (i32, i32, i32) {
    %c0_i32 = arith.constant 0 : i32
    %c0_i32_0 = arith.constant 0 : i32
    %c0_i32_1 = arith.constant 0 : i32
    %c0_i32_2 = arith.constant 0 : i32
    return %c0_i32, %c0_i32_0, %c0_i32_1 : i32, i32, i32
  }
  func.func @transform_3(%arg0: i32) -> (i32, i32, i32) {
    %c0_i32 = arith.constant 0 : i32
    %c0_i32_0 = arith.constant 0 : i32
    %c0_i32_1 = arith.constant 0 : i32
    return %arg0, %c0_i32, %c0_i32_0 : i32, i32, i32
  }
  func.func @transform_4(%arg0: i32) -> (i32, i32) {
    %c0_i32 = arith.constant 0 : i32
    %c0_i32_0 = arith.constant 0 : i32
    %c0_i32_1 = arith.constant 0 : i32
    return %c0_i32, %c0_i32_0 : i32, i32
  }
}

module attributes {stable_mosaic.version = 11 : i64} {
  func.func @_k4_apply_downsample(%arg0: i32, %arg1: memref<1x256x128xf32, #tpu.memory_space<vmem>>, %arg2: memref<1x256x128xf32, #tpu.memory_space<vmem>>, %arg3: memref<4x128xf32, #tpu.memory_space<vmem>>, %arg4: memref<1x256x128xf32, #tpu.memory_space<vmem>>) attributes {dimension_semantics = [#tpu.dimension_semantics<parallel>], iteration_bounds = array<i64: 2>, scalar_prefetch = 0 : i64, scratch_operands = 0 : i64, tpu.core_type = #tpu.core_type<tc>, window_params = [{transform_indices = @transform_0, window_bounds = array<i64: 1, 256, 128>}, {transform_indices = @transform_1, window_bounds = array<i64: 1, 256, 128>}, {pipeline_mode = #tpu.pipeline_mode<synchronous>, transform_indices = @transform_2, window_bounds = array<i64: 4, 128>}, {transform_indices = @transform_3, window_bounds = array<i64: 1, 256, 128>}]} {
    %c0 = arith.constant 0 : index
    %c0_0 = arith.constant 0 : index
    %c0_1 = arith.constant 0 : index
    %0 = vector.load %arg1[%c0, %c0_0, %c0_1] : memref<1x256x128xf32, #tpu.memory_space<vmem>>, vector<1x256x128xf32>
    %1 = vector.shape_cast %0 : vector<1x256x128xf32> to vector<256x128xf32>
    %c0_2 = arith.constant 0 : index
    %c0_3 = arith.constant 0 : index
    %2 = vector.load %arg3[%c0_2, %c0_3] : memref<4x128xf32, #tpu.memory_space<vmem>>, vector<1x128xf32>
    %3 = vector.broadcast %2 : vector<1x128xf32> to vector<256x128xf32>
    %4 = arith.mulf %1, %3 : vector<256x128xf32>
    %c1 = arith.constant 1 : index
    %c0_4 = arith.constant 0 : index
    %5 = vector.load %arg3[%c1, %c0_4] : memref<4x128xf32, #tpu.memory_space<vmem>>, vector<1x128xf32>
    %6 = vector.broadcast %5 : vector<1x128xf32> to vector<256x128xf32>
    %7 = arith.addf %4, %6 : vector<256x128xf32>
    %c0_5 = arith.constant 0 : index
    %c0_6 = arith.constant 0 : index
    %c0_7 = arith.constant 0 : index
    %8 = vector.load %arg2[%c0_5, %c0_6, %c0_7] : memref<1x256x128xf32, #tpu.memory_space<vmem>>, vector<1x256x128xf32>
    %9 = vector.shape_cast %8 : vector<1x256x128xf32> to vector<256x128xf32>
    %c2 = arith.constant 2 : index
    %c0_8 = arith.constant 0 : index
    %10 = vector.load %arg3[%c2, %c0_8] : memref<4x128xf32, #tpu.memory_space<vmem>>, vector<1x128xf32>
    %11 = vector.broadcast %10 : vector<1x128xf32> to vector<256x128xf32>
    %12 = arith.mulf %9, %11 : vector<256x128xf32>
    %c3 = arith.constant 3 : index
    %c0_9 = arith.constant 0 : index
    %13 = vector.load %arg3[%c3, %c0_9] : memref<4x128xf32, #tpu.memory_space<vmem>>, vector<1x128xf32>
    %14 = vector.broadcast %13 : vector<1x128xf32> to vector<256x128xf32>
    %15 = arith.addf %12, %14 : vector<256x128xf32>
    %16 = arith.addf %7, %15 : vector<256x128xf32>
    %cst = arith.constant 0.000000e+00 : f32
    %17 = vector.broadcast %cst : f32 to vector<256x128xf32>
    %18 = arith.maximumf %16, %17 : vector<256x128xf32>
    %c0_10 = arith.constant 0 : index
    %c0_11 = arith.constant 0 : index
    %c0_12 = arith.constant 0 : index
    %19 = vector.load %arg4[%c0_10, %c0_11, %c0_12] : memref<1x256x128xf32, #tpu.memory_space<vmem>>, vector<1x256x128xf32>
    %20 = vector.shape_cast %19 : vector<1x256x128xf32> to vector<256x128xf32>
    %21 = vector.shape_cast %18 : vector<256x128xf32> to vector<1x256x128xf32>
    tpu.vector_store %arg4[%c0_10, %c0_11, %c0_12], %21 {strides = array<i32>} : memref<1x256x128xf32, #tpu.memory_space<vmem>>, vector<1x256x128xf32>,
    return
  }
  func.func @transform_0(%arg0: i32) -> (i32, i32, i32) {
    %c0_i32 = arith.constant 0 : i32
    %c0_i32_0 = arith.constant 0 : i32
    %c0_i32_1 = arith.constant 0 : i32
    return %arg0, %c0_i32, %c0_i32_0 : i32, i32, i32
  }
  func.func @transform_1(%arg0: i32) -> (i32, i32, i32) {
    %c0_i32 = arith.constant 0 : i32
    %c0_i32_0 = arith.constant 0 : i32
    %c0_i32_1 = arith.constant 0 : i32
    return %arg0, %c0_i32, %c0_i32_0 : i32, i32, i32
  }
  func.func @transform_2(%arg0: i32) -> (i32, i32) {
    %c0_i32 = arith.constant 0 : i32
    %c0_i32_0 = arith.constant 0 : i32
    %c0_i32_1 = arith.constant 0 : i32
    return %c0_i32, %c0_i32_0 : i32, i32
  }
  func.func @transform_3(%arg0: i32) -> (i32, i32, i32) {
    %c0_i32 = arith.constant 0 : i32
    %c0_i32_0 = arith.constant 0 : i32
    %c0_i32_1 = arith.constant 0 : i32
    return %arg0, %c0_i32, %c0_i32_0 : i32, i32, i32
  }
}

module attributes {stable_mosaic.version = 11 : i64} {
  func.func @_k3_conv3(%arg0: i32, %arg1: memref<1x256x128xf32, #tpu.memory_space<vmem>>, %arg2: memref<2x128xf32, #tpu.memory_space<vmem>>, %arg3: memref<128x128xbf16, #tpu.memory_space<vmem>>, %arg4: memref<1x256x128xf32, #tpu.memory_space<vmem>>, %arg5: memref<2x128xf32, #tpu.memory_space<vmem>>) attributes {dimension_semantics = [#tpu.dimension_semantics<arbitrary>], iteration_bounds = array<i64: 2>, scalar_prefetch = 0 : i64, scratch_operands = 0 : i64, tpu.core_type = #tpu.core_type<tc>, window_params = [{transform_indices = @transform_0, window_bounds = array<i64: 1, 256, 128>}, {pipeline_mode = #tpu.pipeline_mode<synchronous>, transform_indices = @transform_1, window_bounds = array<i64: 2, 128>}, {pipeline_mode = #tpu.pipeline_mode<synchronous>, transform_indices = @transform_2, window_bounds = array<i64: 128, 128>}, {transform_indices = @transform_3, window_bounds = array<i64: 1, 256, 128>}, {pipeline_mode = #tpu.pipeline_mode<synchronous>, transform_indices = @transform_4, window_bounds = array<i64: 2, 128>}]} {
    %c0_i32 = arith.constant 0 : i32
    %0 = arith.cmpi eq, %arg0, %c0_i32 : i32
    %1 = arith.extui %0 : i1 to i32
    %c0_i32_0 = arith.constant 0 : i32
    %2 = arith.cmpi ne, %1, %c0_i32_0 : i32
    scf.if %2 {
      %cst_18 = arith.constant 0.000000e+00 : f32
      %28 = vector.broadcast %cst_18 : f32 to vector<2x128xf32>
      %c0_19 = arith.constant 0 : index
      %c0_20 = arith.constant 0 : index
      %29 = vector.load %arg5[%c0_19, %c0_20] : memref<2x128xf32, #tpu.memory_space<vmem>>, vector<2x128xf32>
      tpu.vector_store %arg5[%c0_19, %c0_20], %28 {strides = array<i32>} : memref<2x128xf32, #tpu.memory_space<vmem>>, vector<2x128xf32>,
    } else {
    }
    %c0 = arith.constant 0 : index
    %c0_1 = arith.constant 0 : index
    %c0_2 = arith.constant 0 : index
    %3 = vector.load %arg1[%c0, %c0_1, %c0_2] : memref<1x256x128xf32, #tpu.memory_space<vmem>>, vector<1x256x128xf32>
    %4 = vector.shape_cast %3 : vector<1x256x128xf32> to vector<256x128xf32>
    %c0_3 = arith.constant 0 : index
    %c0_4 = arith.constant 0 : index
    %5 = vector.load %arg2[%c0_3, %c0_4] : memref<2x128xf32, #tpu.memory_space<vmem>>, vector<1x128xf32>
    %6 = vector.broadcast %5 : vector<1x128xf32> to vector<256x128xf32>
    %7 = arith.mulf %4, %6 : vector<256x128xf32>
    %c1 = arith.constant 1 : index
    %c0_5 = arith.constant 0 : index
    %8 = vector.load %arg2[%c1, %c0_5] : memref<2x128xf32, #tpu.memory_space<vmem>>, vector<1x128xf32>
    %9 = vector.broadcast %8 : vector<1x128xf32> to vector<256x128xf32>
    %10 = arith.addf %7, %9 : vector<256x128xf32>
    %cst = arith.constant 0.000000e+00 : f32
    %11 = vector.broadcast %cst : f32 to vector<256x128xf32>
    %12 = arith.maximumf %10, %11 : vector<256x128xf32>
    %13 = arith.truncf %12 : vector<256x128xf32> to vector<256x128xbf16>
    %c0_6 = arith.constant 0 : index
    %c0_7 = arith.constant 0 : index
    %14 = vector.load %arg3[%c0_6, %c0_7] : memref<128x128xbf16, #tpu.memory_space<vmem>>, vector<128x128xbf16>
    %cst_8 = arith.constant dense<0.000000e+00> : vector<256x128xf32>
    %15 = tpu.matmul %13, %14, %cst_8 {dimension_numbers = #tpu.dot_dimension_numbers<[1], [0], [0], [1], [0, 0, 1, 1], [], []>} : vector<256x128xbf16>, vector<128x128xbf16>, vector<256x128xf32> -> vector<256x128xf32>
    %c0_9 = arith.constant 0 : index
    %c0_10 = arith.constant 0 : index
    %c0_11 = arith.constant 0 : index
    %16 = vector.load %arg4[%c0_9, %c0_10, %c0_11] : memref<1x256x128xf32, #tpu.memory_space<vmem>>, vector<1x256x128xf32>
    %17 = vector.shape_cast %16 : vector<1x256x128xf32> to vector<256x128xf32>
    %18 = vector.shape_cast %15 : vector<256x128xf32> to vector<1x256x128xf32>
    tpu.vector_store %arg4[%c0_9, %c0_10, %c0_11], %18 {strides = array<i32>} : memref<1x256x128xf32, #tpu.memory_space<vmem>>, vector<1x256x128xf32>,
    %c0_12 = arith.constant 0 : index
    %c0_13 = arith.constant 0 : index
    %19 = vector.load %arg5[%c0_12, %c0_13] : memref<2x128xf32, #tpu.memory_space<vmem>>, vector<2x128xf32>
    %cst_14 = arith.constant dense<0.000000e+00> : vector<128xf32>
    %20 = vector.multi_reduction <add>, %15, %cst_14 [0] : vector<256x128xf32> to vector<128xf32>
    %21 = vector.shape_cast %20 : vector<128xf32> to vector<1x128xf32>
    %22 = arith.mulf %15, %15 : vector<256x128xf32>
    %cst_15 = arith.constant dense<0.000000e+00> : vector<128xf32>
    %23 = vector.multi_reduction <add>, %22, %cst_15 [0] : vector<256x128xf32> to vector<128xf32>
    %24 = vector.shape_cast %23 : vector<128xf32> to vector<1x128xf32>
    %25 = tpu.concatenate %21, %24 in 0 : vector<1x128xf32>, vector<1x128xf32> -> vector<2x128xf32>
    %26 = arith.addf %19, %25 : vector<2x128xf32>
    %c0_16 = arith.constant 0 : index
    %c0_17 = arith.constant 0 : index
    %27 = vector.load %arg5[%c0_16, %c0_17] : memref<2x128xf32, #tpu.memory_space<vmem>>, vector<2x128xf32>
    tpu.vector_store %arg5[%c0_16, %c0_17], %26 {strides = array<i32>} : memref<2x128xf32, #tpu.memory_space<vmem>>, vector<2x128xf32>,
    return
  }
  func.func @transform_0(%arg0: i32) -> (i32, i32, i32) {
    %c0_i32 = arith.constant 0 : i32
    %c0_i32_0 = arith.constant 0 : i32
    %c0_i32_1 = arith.constant 0 : i32
    return %arg0, %c0_i32, %c0_i32_0 : i32, i32, i32
  }
  func.func @transform_1(%arg0: i32) -> (i32, i32) {
    %c0_i32 = arith.constant 0 : i32
    %c0_i32_0 = arith.constant 0 : i32
    %c0_i32_1 = arith.constant 0 : i32
    return %c0_i32, %c0_i32_0 : i32, i32
  }
  func.func @transform_2(%arg0: i32) -> (i32, i32) {
    %c0_i32 = arith.constant 0 : i32
    %c0_i32_0 = arith.constant 0 : i32
    %c0_i32_1 = arith.constant 0 : i32
    return %c0_i32, %c0_i32_0 : i32, i32
  }
  func.func @transform_3(%arg0: i32) -> (i32, i32, i32) {
    %c0_i32 = arith.constant 0 : i32
    %c0_i32_0 = arith.constant 0 : i32
    %c0_i32_1 = arith.constant 0 : i32
    return %arg0, %c0_i32, %c0_i32_0 : i32, i32, i32
  }
  func.func @transform_4(%arg0: i32) -> (i32, i32) {
    %c0_i32 = arith.constant 0 : i32
    %c0_i32_0 = arith.constant 0 : i32
    %c0_i32_1 = arith.constant 0 : i32
    return %c0_i32, %c0_i32_0 : i32, i32
  }
}

</mosaic_0001>

<bundles_post_ra>
// kernel: bottleneck_forward.7
= control target key start
LH: loop header
LB: loop body
LE: loop exit
PB: predicated region body
PF: predicated region fallthrough
CT: control target
= control target key end

     0   :  { %8 = vsyncpa [#allocation3], 0  ;;  %s1095_s0 = inlined_call_operand.vmem [shape: f32[2,256,128], index: 0, kind: input, shape index: {}]   ;;  %s1096_s1 = inlined_call_operand.vmem [shape: f32[2,256,128], index: 1, kind: input, shape index: {}]   ;;  %s1097_s2 = inlined_call_operand.vmem [shape: f32[4,128], index: 2, kind: input, shape index: {}]   ;;  %s1098_s3 = inlined_call_operand.hbm [shape: f32[2,256,128], index: 3, kind: output, shape index: {}]  }
   0x1   :  { %10 = vsyncpa [#allocation3 + $0x1], 0  ;;  %s732_s12 = smov 0   ;;  %s734_s13 = smov 0  }
   0x2   :  { %s736_s14 = smov 0   ;;  %s738_s15 = smov 0  }
   0x3 LB: > { %s753_s16 = sadd.s32 4294967295, %s707_s15   ;;  %s585_s17 = sadd.s32 4294967294, %s707_s15   ;;  %s707_s15 = sphi %s738_s15, %s1104_s15   ;;  %s703_s14 = sphi %s736_s14, %s1103_s14   ;;  %s699_s13 = sphi %s734_s13, %s1102_s13   ;;  %s695_s12 = sphi %s732_s12, %s1101_s12  }
   0x4   : > { %s757_s18 = sadd.s32 1, %s707_s15   ;;  %s96_s19 = sadd.s32 1, %s703_s14 }
   0x5   : > { %s93_s20 = ssub.s32 %s707_s15, %s757_s18  ;;  %p106_p0 = scmp.ne.s32.totalorder %s703_s14, %s699_s13 }
   0x6   : > { %p94_p1 = scmp.eq.s32.totalorder %s93_s20, 0  ;;  %p107_p2 = scmp.eq.s32.totalorder %s753_s16, 1 }
   0x7   : > { %p112_p3 = scmp.ne.s32.totalorder %s699_s13, %s695_s12  ;;  %p113_p4 = scmp.eq.s32.totalorder %s585_s17, 1 }
   0x8   : > { %s768_s21 = scalar_select %p94_p1, %s703_s14, %s96_s19  }
   0x9   : > { %p770_p5 = por %p107_p2, %p106_p0  ;;  %p774_p6 = por %p113_p4, %p112_p3 }
   0xa   : > { %p588_p7 = scmp.ge.s32.totalorder %s707_s15, 1  ;;  %p150_p8 = scmp.lt.s32.totalorder %s707_s15, 3 }
   0xc   : > { %p151_p9 = pnand %p588_p7, %p150_p8 }
   0xd   : > { %p179_p10 = scmp.lt.s32.totalorder (!%p151_p9), %s753_s16, 1  ;;  %s176_s19 = sand.u32 (!%p151_p9), 1, %s699_s13  }
   0xe   : > { %154 = sbr.rel (%p151_p9) target bundleno = 91 (0x5b), region = 32  ;;  %s830_s20 = sshll.u32 (!%p151_p9), %s176_s19, 8 }
   0xf   : > { %s709_s4 = smov (!%p151_p9), [#allocation2]  }
  0x13   : > { %s180_s24 = scalar_select %p179_p10, %s753_s16, 1  ;;  %v785_v0 = vld [vmem:[%s1097_s2] ss:$0 sm:$0xff]  ;;  %v790_v1 = vld [vmem:[%s1097_s2 + $0x2] ss:$0 sm:$0xff] }
  0x14   : > { %v805_v2 = vld [vmem:[%s1097_s2 + $0x1] ss:$0 sm:$0xff]  ;;  %v810_v3 = vld [vmem:[%s1097_s2 + $0x3] ss:$0 sm:$0xff] }
  0x15   : > { %s603_s25 = sshll.u32 %s180_s24, 8  ;;  %s858_s24 = scalar_lea.vmem [#allocation2], %s830_s20 }
  0x16   : > { %s795_s5 = scalar_lea.vmem %s1095_s0, %s603_s25  ;;  %s800_s8 = scalar_lea.vmem %s1096_s1, %s603_s25 }
  0x17   : > { %v189_v4 = vld [vmem:[%s795_s5] sm:$0xff]  ;;  %v190_v6 = vld [vmem:[%s795_s5 + $0x8] sm:$0xff]  ;;  %v191_v11 = vld [vmem:[%s795_s5 + $0x10] sm:$0xff]  ;;  %s605_s25 = sshll.u32 %s753_s16, 12  ;;  %s511_s26 = sshll.u32 %s858_s24, 4  ;;  %s1049_s26 = int_to_ptr.vmem [resolvable:$true] %s511_s26 }
  0x18   : > { %v295_v5 = vld [vmem:[%s800_s8] sm:$0xff]  ;;  %v226_v7 = vmul.f32 %v785_v0, %v189_v4  ;;  %v227_v9 = vmul.f32 %v785_v0, %v190_v6  ;;  %v296_v10 = vld [vmem:[%s800_s8 + $0x8] sm:$0xff]  ;;  %v297_v12 = vld [vmem:[%s800_s8 + $0x10] sm:$0xff]  ;;  %v228_v14 = vmul.f32 %v785_v0, %v191_v11  ;;  %s1047_s29 = scalar_lea.hbm %s1098_s3, %s605_s25  ;;  %s1055_s16 = scalar_lea.sflag [#allocation3], %s176_s19 }
  0x19   : > { %v332_v8 = vmul.f32 %v790_v1, %v295_v5  ;;  %v333_v13 = vmul.f32 %v790_v1, %v296_v10  ;;  %v334_v15 = vmul.f32 %v790_v1, %v297_v12  ;;  %v192_v16 = vld [vmem:[%s795_s5 + $0x18] sm:$0xff]  ;;  %v193_v18 = vld [vmem:[%s795_s5 + $0x20] sm:$0xff]  ;;  %v194_v24 = vld [vmem:[%s795_s5 + $0x28] sm:$0xff]  ;;  %s647_s30 = scalar_lea.vmem %s1049_s26, 4096 }
  0x1a   : > { %v298_v17 = vld [vmem:[%s800_s8 + $0x18] sm:$0xff]  ;;  %v263_v19 = vadd.f32 %v805_v2, %v226_v7  ;;  %v264_v21 = vadd.f32 %v805_v2, %v227_v9  ;;  %v229_v22 = vmul.f32 %v785_v0, %v192_v16  ;;  %v299_v23 = vld [vmem:[%s800_s8 + $0x20] sm:$0xff]  ;;  %v265_v26 = vadd.f32 %v805_v2, %v228_v14  ;;  %v300_v29 = vld [vmem:[%s800_s8 + $0x28] sm:$0xff]  ;;  %p648_p11 = scmp.ne.s32.totalorder %s1049_s26, %s647_s30 }
  0x1b   : > { %v369_v20 = vadd.f32 %v810_v3, %v332_v8  ;;  %v370_v25 = vadd.f32 %v810_v3, %v333_v13  ;;  %v371_v27 = vadd.f32 %v810_v3, %v334_v15  ;;  %v335_v28 = vmul.f32 %v790_v1, %v298_v17  ;;  %v195_v38 = vld [vmem:[%s795_s5 + $0x30] sm:$0xff]  ;;  %v196_v44 = vld [vmem:[%s795_s5 + $0x38] sm:$0xff]  ;;  %v197_v46 = vld [vmem:[%s795_s5 + $0x40] sm:$0xff] }
  0x1c   : > { %v266_v31 = vadd.f32 %v805_v2, %v229_v22  ;;  %v230_v32 = vmul.f32 %v785_v0, %v193_v18  ;;  %v336_v33 = vmul.f32 %v790_v1, %v299_v23  ;;  %v231_v37 = vmul.f32 %v785_v0, %v194_v24  ;;  %v301_v39 = vld [vmem:[%s800_s8 + $0x30] sm:$0xff]  ;;  %v302_v45 = vld [vmem:[%s800_s8 + $0x38] sm:$0xff]  ;;  %v303_v55 = vld [vmem:[%s800_s8 + $0x40] sm:$0xff]  ;;  %p649_p12 = pnand %p648_p11, %p770_p5 }
  0x1d   : > { %v401_v30 = vadd.f32 %v369_v20, %v263_v19  ;;  %v402_v34 = vadd.f32 %v370_v25, %v264_v21  ;;  %v403_v35 = vadd.f32 %v371_v27, %v265_v26  ;;  %v372_v36 = vadd.f32 %v810_v3, %v335_v28  ;;  %v198_v60 = vld [vmem:[%s795_s5 + $0x48] sm:$0xff]  ;;  %v199_v6 = vld [vmem:[%s795_s5 + $0x50] sm:$0xff]  ;;  %v200_v12 = vld [vmem:[%s795_s5 + $0x58] sm:$0xff] }
  0x1e   : > { %v267_v41 = vadd.f32 %v805_v2, %v230_v32  ;;  %v373_v42 = vadd.f32 %v810_v3, %v336_v33  ;;  %v337_v43 = vmul.f32 %v790_v1, %v300_v29  ;;  %v268_v50 = vadd.f32 %v805_v2, %v231_v37  ;;  %v304_v61 = vld [vmem:[%s800_s8 + $0x48] sm:$0xff]  ;;  %v305_v7 = vld [vmem:[%s800_s8 + $0x50] sm:$0xff]  ;;  %v306_v21 = vld [vmem:[%s800_s8 + $0x58] sm:$0xff]  ;;  %p650_p13 = pneg %p649_p12 }
  0x1f   : > { %v433_v40 = vmax.f32 %v401_v30, 0.0  ;;  %v434_v47 = vmax.f32 %v402_v34, 0.0  ;;  %v435_v48 = vmax.f32 %v403_v35, 0.0  ;;  %v404_v49 = vadd.f32 %v372_v36, %v266_v31  ;;  %v201_v22 = vld [vmem:[%s795_s5 + $0x60] sm:$0xff]  ;;  %v202_v28 = vld [vmem:[%s795_s5 + $0x68] sm:$0xff] }
  0x20   : > { %v405_v51 = vadd.f32 %v373_v42, %v267_v41  ;;  %v374_v52 = vadd.f32 %v810_v3, %v337_v43  ;;  %v232_v53 = vmul.f32 %v785_v0, %v195_v38  ;;  %v338_v54 = vmul.f32 %v790_v1, %v301_v39  ;;  %v307_v27 = vld [vmem:[%s800_s8 + $0x60] sm:$0xff]  ;;  %v308_v33 = vld [vmem:[%s800_s8 + $0x68] sm:$0xff]  ;;  %v203_v38 = vld [vmem:[%s795_s5 + $0x70] sm:$0xff] }
  0x21   : > { %465 = vst [vmem:[%s858_s24] sm:$0xff] %v433_v40  ;;  %466 = vst [vmem:[%s858_s24 + $0x8] sm:$0xff] %v434_v47  ;;  %v436_v56 = vmax.f32 %v404_v49, 0.0  ;;  %v233_v57 = vmul.f32 %v785_v0, %v196_v44  ;;  %v339_v58 = vmul.f32 %v790_v1, %v302_v45  ;;  %v234_v59 = vmul.f32 %v785_v0, %v197_v46  ;;  %v309_v43 = vld [vmem:[%s800_s8 + $0x70] sm:$0xff]  ;;  %v204_v44 = vld [vmem:[%s795_s5 + $0x78] sm:$0xff] }
  0x22   : > { %467 = vst [vmem:[%s858_s24 + $0x10] sm:$0xff] %v435_v48  ;;  %v437_v62 = vmax.f32 %v405_v51, 0.0  ;;  %v406_v63 = vadd.f32 %v374_v52, %v268_v50  ;;  %v269_v4 = vadd.f32 %v805_v2, %v232_v53  ;;  %v375_v5 = vadd.f32 %v810_v3, %v338_v54  ;;  %v310_v49 = vld [vmem:[%s800_s8 + $0x78] sm:$0xff]  ;;  %v205_v50 = vld [vmem:[%s795_s5 + $0x80] sm:$0xff] }
  0x23   : > { %468 = vst [vmem:[%s858_s24 + $0x18] sm:$0xff] %v436_v56  ;;  %v270_v8 = vadd.f32 %v805_v2, %v233_v57  ;;  %v376_v9 = vadd.f32 %v810_v3, %v339_v58  ;;  %v271_v10 = vadd.f32 %v805_v2, %v234_v59  ;;  %v340_v11 = vmul.f32 %v790_v1, %v303_v55  ;;  %v311_v59 = vld [vmem:[%s800_s8 + $0x80] sm:$0xff] }
  0x24   : > { %469 = vst [vmem:[%s858_s24 + $0x20] sm:$0xff] %v437_v62  ;;  %v438_v13 = vmax.f32 %v406_v63, 0.0  ;;  %v407_v14 = vadd.f32 %v375_v5, %v269_v4  ;;  %v235_v15 = vmul.f32 %v785_v0, %v198_v60  ;;  %v341_v16 = vmul.f32 %v790_v1, %v304_v61  ;;  %v206_v4 = vld [vmem:[%s795_s5 + $0x88] sm:$0xff] }
  0x25   : > { %v408_v17 = vadd.f32 %v376_v9, %v270_v8  ;;  %v377_v18 = vadd.f32 %v810_v3, %v340_v11  ;;  %v236_v19 = vmul.f32 %v785_v0, %v199_v6  ;;  %v342_v20 = vmul.f32 %v790_v1, %v305_v7  ;;  %v312_v5 = vld [vmem:[%s800_s8 + $0x88] sm:$0xff]  ;;  %v313_v11 = vld [vmem:[%s800_s8 + $0x90] sm:$0xff] }
  0x26   : > { %470 = vst [vmem:[%s858_s24 + $0x28] sm:$0xff] %v438_v13  ;;  %v439_v23 = vmax.f32 %v407_v14, 0.0  ;;  %v272_v24 = vadd.f32 %v805_v2, %v235_v15  ;;  %v378_v25 = vadd.f32 %v810_v3, %v341_v16  ;;  %v237_v26 = vmul.f32 %v785_v0, %v200_v12  ;;  %v208_v16 = vld [vmem:[%s795_s5 + $0x98] sm:$0xff] }
  0x27   : > { %v440_v29 = vmax.f32 %v408_v17, 0.0  ;;  %v409_v30 = vadd.f32 %v377_v18, %v271_v10  ;;  %v273_v31 = vadd.f32 %v805_v2, %v236_v19  ;;  %v379_v32 = vadd.f32 %v810_v3, %v342_v20  ;;  %v207_v10 = vld [vmem:[%s795_s5 + $0x90] sm:$0xff] }
  0x28   : > { %471 = vst [vmem:[%s858_s24 + $0x30] sm:$0xff] %v439_v23  ;;  %v410_v34 = vadd.f32 %v378_v25, %v272_v24  ;;  %v274_v35 = vadd.f32 %v805_v2, %v237_v26  ;;  %v343_v36 = vmul.f32 %v790_v1, %v306_v21  ;;  %v238_v37 = vmul.f32 %v785_v0, %v201_v22  ;;  %v314_v25 = vld [vmem:[%s800_s8 + $0x98] sm:$0xff]  ;;  %v209_v26 = vld [vmem:[%s795_s5 + $0xa0] sm:$0xff] }
  0x29   : > { %472 = vst [vmem:[%s858_s24 + $0x38] sm:$0xff] %v440_v29  ;;  %v441_v39 = vmax.f32 %v409_v30, 0.0  ;;  %v411_v40 = vadd.f32 %v379_v32, %v273_v31  ;;  %v344_v41 = vmul.f32 %v790_v1, %v307_v27  ;;  %v239_v42 = vmul.f32 %v785_v0, %v202_v28  ;;  %v315_v31 = vld [vmem:[%s800_s8 + $0xa0] sm:$0xff]  ;;  %v210_v32 = vld [vmem:[%s795_s5 + $0xa8] sm:$0xff] }
  0x2a   : > { %v442_v45 = vmax.f32 %v410_v34, 0.0  ;;  %v380_v46 = vadd.f32 %v810_v3, %v343_v36  ;;  %v275_v47 = vadd.f32 %v805_v2, %v238_v37  ;;  %v345_v48 = vmul.f32 %v790_v1, %v308_v33  ;;  %v316_v37 = vld [vmem:[%s800_s8 + $0xa8] sm:$0xff] }
  0x2b   : > { %473 = vst [vmem:[%s858_s24 + $0x40] sm:$0xff] %v441_v39  ;;  %v443_v51 = vmax.f32 %v411_v40, 0.0  ;;  %v381_v52 = vadd.f32 %v810_v3, %v344_v41  ;;  %v276_v53 = vadd.f32 %v805_v2, %v239_v42  ;;  %v240_v54 = vmul.f32 %v785_v0, %v203_v38  ;;  %v211_v42 = vld [vmem:[%s795_s5 + $0xb0] sm:$0xff] }
  0x2c   : > { %474 = vst [vmem:[%s858_s24 + $0x48] sm:$0xff] %v442_v45  ;;  %v412_v55 = vadd.f32 %v380_v46, %v274_v35  ;;  %v382_v56 = vadd.f32 %v810_v3, %v345_v48  ;;  %v346_v57 = vmul.f32 %v790_v1, %v309_v43  ;;  %v241_v58 = vmul.f32 %v785_v0, %v204_v44  ;;  %v212_v48 = vld [vmem:[%s795_s5 + $0xb8] sm:$0xff] }
  0x2d   : > { %475 = vst [vmem:[%s858_s24 + $0x50] sm:$0xff] %v443_v51  ;;  %v413_v60 = vadd.f32 %v381_v52, %v275_v47  ;;  %v277_v61 = vadd.f32 %v805_v2, %v240_v54  ;;  %v347_v62 = vmul.f32 %v790_v1, %v310_v49  ;;  %v242_v63 = vmul.f32 %v785_v0, %v205_v50  ;;  %v317_v47 = vld [vmem:[%s800_s8 + $0xb0] sm:$0xff]  ;;  %v213_v54 = vld [vmem:[%s795_s5 + $0xc0] sm:$0xff] }
  0x2e   : > { %v444_v6 = vmax.f32 %v412_v55, 0.0  ;;  %v414_v7 = vadd.f32 %v382_v56, %v276_v53  ;;  %v383_v8 = vadd.f32 %v810_v3, %v346_v57  ;;  %v278_v9 = vadd.f32 %v805_v2, %v241_v58  ;;  %v318_v53 = vld [vmem:[%s800_s8 + $0xb8] sm:$0xff] }
  0x2f   : > { %v445_v12 = vmax.f32 %v413_v60, 0.0  ;;  %v384_v13 = vadd.f32 %v810_v3, %v347_v62  ;;  %v279_v14 = vadd.f32 %v805_v2, %v242_v63  ;;  %v348_v15 = vmul.f32 %v790_v1, %v311_v59  ;;  %v319_v63 = vld [vmem:[%s800_s8 + $0xc0] sm:$0xff] }
  0x30   : > { %476 = vst [vmem:[%s858_s24 + $0x58] sm:$0xff] %v444_v6  ;;  %v446_v17 = vmax.f32 %v414_v7, 0.0  ;;  %v415_v18 = vadd.f32 %v383_v8, %v277_v61  ;;  %v243_v19 = vmul.f32 %v785_v0, %v206_v4  ;;  %v349_v20 = vmul.f32 %v790_v1, %v312_v5  ;;  %v214_v8 = vld [vmem:[%s795_s5 + $0xc8] sm:$0xff] }
  0x31   : > { %477 = vst [vmem:[%s858_s24 + $0x60] sm:$0xff] %v445_v12  ;;  %v416_v21 = vadd.f32 %v384_v13, %v278_v9  ;;  %v385_v22 = vadd.f32 %v810_v3, %v348_v15  ;;  %v244_v23 = vmul.f32 %v785_v0, %v207_v10  ;;  %v350_v24 = vmul.f32 %v790_v1, %v313_v11  ;;  %v320_v9 = vld [vmem:[%s800_s8 + $0xc8] sm:$0xff]  ;;  %v321_v15 = vld [vmem:[%s800_s8 + $0xd0] sm:$0xff] }
  0x32   : > { %478 = vst [vmem:[%s858_s24 + $0x68] sm:$0xff] %v446_v17  ;;  %v447_v27 = vmax.f32 %v415_v18, 0.0  ;;  %v280_v28 = vadd.f32 %v805_v2, %v243_v19  ;;  %v386_v29 = vadd.f32 %v810_v3, %v349_v20  ;;  %v245_v30 = vmul.f32 %v785_v0, %v208_v16  ;;  %v216_v20 = vld [vmem:[%s795_s5 + $0xd8] sm:$0xff] }
  0x33   : > { %v448_v33 = vmax.f32 %v416_v21, 0.0  ;;  %v417_v34 = vadd.f32 %v385_v22, %v279_v14  ;;  %v281_v35 = vadd.f32 %v805_v2, %v244_v23  ;;  %v387_v36 = vadd.f32 %v810_v3, %v350_v24  ;;  %v215_v14 = vld [vmem:[%s795_s5 + $0xd0] sm:$0xff] }
  0x34   : > { %479 = vst [vmem:[%s858_s24 + $0x70] sm:$0xff] %v447_v27  ;;  %v418_v38 = vadd.f32 %v386_v29, %v280_v28  ;;  %v282_v39 = vadd.f32 %v805_v2, %v245_v30  ;;  %v351_v40 = vmul.f32 %v790_v1, %v314_v25  ;;  %v246_v41 = vmul.f32 %v785_v0, %v209_v26  ;;  %v322_v29 = vld [vmem:[%s800_s8 + $0xd8] sm:$0xff]  ;;  %v217_v30 = vld [vmem:[%s795_s5 + $0xe0] sm:$0xff] }
  0x35   : > { %480 = vst [vmem:[%s858_s24 + $0x78] sm:$0xff] %v448_v33  ;;  %v449_v43 = vmax.f32 %v417_v34, 0.0  ;;  %v419_v44 = vadd.f32 %v387_v36, %v281_v35  ;;  %v352_v45 = vmul.f32 %v790_v1, %v315_v31  ;;  %v247_v46 = vmul.f32 %v785_v0, %v210_v32  ;;  %v323_v35 = vld [vmem:[%s800_s8 + $0xe0] sm:$0xff]  ;;  %v218_v36 = vld [vmem:[%s795_s5 + $0xe8] sm:$0xff] }
  0x36   : > { %v450_v49 = vmax.f32 %v418_v38, 0.0  ;;  %v388_v50 = vadd.f32 %v810_v3, %v351_v40  ;;  %v283_v51 = vadd.f32 %v805_v2, %v246_v41  ;;  %v353_v52 = vmul.f32 %v790_v1, %v316_v37  ;;  %v324_v41 = vld [vmem:[%s800_s8 + $0xe8] sm:$0xff] }
  0x37   : > { %481 = vst [vmem:[%s858_s24 + $0x80] sm:$0xff] %v449_v43  ;;  %v451_v55 = vmax.f32 %v419_v44, 0.0  ;;  %v389_v56 = vadd.f32 %v810_v3, %v352_v45  ;;  %v284_v57 = vadd.f32 %v805_v2, %v247_v46  ;;  %v248_v58 = vmul.f32 %v785_v0, %v211_v42  ;;  %v219_v46 = vld [vmem:[%s795_s5 + $0xf0] sm:$0xff] }
  0x38   : > { %482 = vst [vmem:[%s858_s24 + $0x88] sm:$0xff] %v450_v49  ;;  %v420_v59 = vadd.f32 %v388_v50, %v282_v39  ;;  %v390_v60 = vadd.f32 %v810_v3, %v353_v52  ;;  %v354_v61 = vmul.f32 %v790_v1, %v317_v47  ;;  %v249_v62 = vmul.f32 %v785_v0, %v212_v48  ;;  %v220_v52 = vld [vmem:[%s795_s5 + $0xf8] sm:$0xff]  ;;  %s651_s5 = sshll.u32 %s709_s4, 4  ;;  %s652_s5 = int_to_ptr.vmem [resolvable:$false] %s651_s5 }
  0x39   : > { %483 = vst [vmem:[%s858_s24 + $0x90] sm:$0xff] %v451_v55  ;;  %v421_v4 = vadd.f32 %v389_v56, %v283_v51  ;;  %v285_v5 = vadd.f32 %v805_v2, %v248_v58  ;;  %v355_v6 = vmul.f32 %v790_v1, %v318_v53  ;;  %v250_v7 = vmul.f32 %v785_v0, %v213_v54  ;;  %v325_v51 = vld [vmem:[%s800_s8 + $0xf0] sm:$0xff]  ;;  %s653_s6 = scalar_lea.vmem %s652_s5, 8192  ;;  %p654_p0 = scmp.lt.s32.totalorder %s1049_s26, %s652_s5 }
  0x3a   : > { %v452_v10 = vmax.f32 %v420_v59, 0.0  ;;  %v422_v11 = vadd.f32 %v390_v60, %v284_v57  ;;  %v391_v12 = vadd.f32 %v810_v3, %v354_v61  ;;  %v286_v13 = vadd.f32 %v805_v2, %v249_v62  ;;  %v326_v57 = vld [vmem:[%s800_s8 + $0xf8] sm:$0xff]  ;;  %p655_p1 = scmp.lt.s32.totalorder %s653_s6, %s647_s30 }
  0x3b   : > { %v453_v16 = vmax.f32 %v421_v4, 0.0  ;;  %v392_v17 = vadd.f32 %v810_v3, %v355_v6  ;;  %v287_v18 = vadd.f32 %v805_v2, %v250_v7  ;;  %v356_v19 = vmul.f32 %v790_v1, %v319_v63 }
  0x3c   : > { %484 = vst [vmem:[%s858_s24 + $0x98] sm:$0xff] %v452_v10  ;;  %v454_v21 = vmax.f32 %v422_v11, 0.0  ;;  %v423_v22 = vadd.f32 %v391_v12, %v285_v5  ;;  %v251_v23 = vmul.f32 %v785_v0, %v214_v8  ;;  %v357_v24 = vmul.f32 %v790_v1, %v320_v9  ;;  %p656_p2 = por %p655_p1, %p654_p0 }
  0x3d   : > { %485 = vst [vmem:[%s858_s24 + $0xa0] sm:$0xff] %v453_v16  ;;  %v424_v25 = vadd.f32 %v392_v17, %v286_v13  ;;  %v393_v26 = vadd.f32 %v810_v3, %v356_v19  ;;  %v252_v27 = vmul.f32 %v785_v0, %v215_v14  ;;  %v358_v28 = vmul.f32 %v790_v1, %v321_v15 }
  0x3e   : > { %486 = vst [vmem:[%s858_s24 + $0xa8] sm:$0xff] %v454_v21  ;;  %v455_v31 = vmax.f32 %v423_v22, 0.0  ;;  %v288_v32 = vadd.f32 %v805_v2, %v251_v23  ;;  %v394_v33 = vadd.f32 %v810_v3, %v357_v24  ;;  %v253_v34 = vmul.f32 %v785_v0, %v216_v20  ;;  %p657_p3 = pnand %p656_p2, %p650_p13 }
  0x3f   : > { %v456_v37 = vmax.f32 %v424_v25, 0.0  ;;  %v425_v38 = vadd.f32 %v393_v26, %v287_v18  ;;  %v289_v39 = vadd.f32 %v805_v2, %v252_v27  ;;  %v395_v40 = vadd.f32 %v810_v3, %v358_v28 }
  0x40   : > { %487 = vst [vmem:[%s858_s24 + $0xb0] sm:$0xff] %v455_v31  ;;  %v426_v42 = vadd.f32 %v394_v33, %v288_v32  ;;  %v290_v43 = vadd.f32 %v805_v2, %v253_v34  ;;  %v359_v44 = vmul.f32 %v790_v1, %v322_v29  ;;  %v254_v45 = vmul.f32 %v785_v0, %v217_v30 }
  0x41   : > { %488 = vst [vmem:[%s858_s24 + $0xb8] sm:$0xff] %v456_v37  ;;  %v457_v47 = vmax.f32 %v425_v38, 0.0  ;;  %v427_v48 = vadd.f32 %v395_v40, %v289_v39  ;;  %v360_v49 = vmul.f32 %v790_v1, %v323_v35  ;;  %v255_v50 = vmul.f32 %v785_v0, %v218_v36 }
  0x42   : > { %v458_v53 = vmax.f32 %v426_v42, 0.0  ;;  %v396_v54 = vadd.f32 %v810_v3, %v359_v44  ;;  %v291_v55 = vadd.f32 %v805_v2, %v254_v45  ;;  %v361_v56 = vmul.f32 %v790_v1, %v324_v41 }
  0x43   : > { %489 = vst [vmem:[%s858_s24 + $0xc0] sm:$0xff] %v457_v47  ;;  %v459_v58 = vmax.f32 %v427_v48, 0.0  ;;  %v397_v59 = vadd.f32 %v810_v3, %v360_v49  ;;  %v292_v60 = vadd.f32 %v805_v2, %v255_v50  ;;  %v256_v61 = vmul.f32 %v785_v0, %v219_v46 }
  0x44   : > { %490 = vst [vmem:[%s858_s24 + $0xc8] sm:$0xff] %v458_v53  ;;  %v428_v62 = vadd.f32 %v396_v54, %v290_v43  ;;  %v398_v63 = vadd.f32 %v810_v3, %v361_v56  ;;  %v362_v4 = vmul.f32 %v790_v1, %v325_v51  ;;  %v257_v5 = vmul.f32 %v785_v0, %v220_v52 }
  0x45   : > { %491 = vst [vmem:[%s858_s24 + $0xd0] sm:$0xff] %v459_v58  ;;  %v429_v6 = vadd.f32 %v397_v59, %v291_v55  ;;  %v293_v7 = vadd.f32 %v805_v2, %v256_v61  ;;  %v363_v8 = vmul.f32 %v790_v1, %v326_v57 }
  0x46   : > { %v460_v9 = vmax.f32 %v428_v62, 0.0  ;;  %v430_v10 = vadd.f32 %v398_v63, %v292_v60  ;;  %v399_v11 = vadd.f32 %v810_v3, %v362_v4  ;;  %v294_v12 = vadd.f32 %v805_v2, %v257_v5 }
  0x47   : > { %v461_v13 = vmax.f32 %v429_v6, 0.0  ;;  %v400_v0 = vadd.f32 %v810_v3, %v363_v8 }
  0x48   : > { %492 = vst [vmem:[%s858_s24 + $0xd8] sm:$0xff] %v460_v9  ;;  %v462_v14 = vmax.f32 %v430_v10, 0.0  ;;  %v431_v15 = vadd.f32 %v399_v11, %v293_v7 }
  0x49   : > { %493 = vst [vmem:[%s858_s24 + $0xe0] sm:$0xff] %v461_v13  ;;  %v432_v1 = vadd.f32 %v400_v0, %v294_v12 }
  0x4a   : > { %494 = vst [vmem:[%s858_s24 + $0xe8] sm:$0xff] %v462_v14  ;;  %v463_v16 = vmax.f32 %v431_v15, 0.0 }
  0x4b   : > { %v464_v2 = vmax.f32 %v432_v1, 0.0 }
  0x4c   : > { %495 = vst [vmem:[%s858_s24 + $0xf0] sm:$0xff] %v463_v16 }
  0x4d   : > { %496 = vst [vmem:[%s858_s24 + $0xf8] sm:$0xff] %v464_v2 }
  0x4e   : > { %660 = shalt.err (!%p657_p3)
}
  0x4f   : > { %s661_s7 = scalar_lea.hbm %s1047_s29, 4096  ;;  %s665_s10 = scalar_lea.hbm %s1098_s3, 8192 }
  0x50   : > { %p662_p4 = scmp.ne.s32.totalorder %s1047_s29, %s661_s7  ;;  %p666_p9 = scmp.lt.s32.totalorder %s1047_s29, %s1098_s3 }
  0x51   : > { %p667_p10 = scmp.lt.s32.totalorder %s665_s10, %s661_s7 }
  0x52   : > { %p663_p7 = pnand %p662_p4, %p770_p5 }
  0x53   : > { %p668_p11 = por %p667_p10, %p666_p9 }
  0x54   : > { %p664_p8 = pneg %p663_p7 }
  0x56   : > { %p669_p12 = pnand %p668_p11, %p664_p8 }
  0x58   : > { %672 = shalt.err (!%p669_p12)
}
  0x59   : > { %s710_s19 = smov 128   ;;  %s711_s20 = smov 8  }
  0x5a   : > { %606 = dma.vmem_to_hbm [thread:$0]  (%p770_p5), %s1049_s26, 4096, %s1047_s29, %s1055_s16, %s710_s19, %s710_s19, %s711_s20  }
  0x5b PF: > { %p612_p13 = scmp.ge.s32.totalorder %s707_s15, 2  ;;  %s526_s24 = sand.u32 1, %s695_s12  }
  0x5c   : > { %s527_s25 = scalar_lea.sflag [#allocation3], %s526_s24 }
  0x5d   : > { %p609_p0 = pnand %p612_p13, %p774_p6 }
  0x5f   : > { %p610_p1 = pneg %p609_p0 }
  0x61   : > { %690 = dma.done.wait (%p610_p1), %s527_s25, 4096  }
  0x62   : > { %692 = vsyncadd (%p610_p1), %s527_s25, 4294963200  ;;  %p13_p2 = scmp.ge.s32.totalorder %s757_s18, 4   ;;  %s1101_s12 = smov %s699_s13 }
  0x63   : > { %s1102_s13 = smov %s703_s14  ;;  %s1103_s14 = smov %s768_s21 }
  0x64   : > { %s1104_s15 = smov %s757_s18  ;;  %15 = sbr.rel (!%p13_p2) target bundleno = 3 (0x3), region = 70 }
  0x69   :  { %532 = vsyncpa [#allocation3], 1 }
  0x6a   :  { %534 = vsyncpa [#allocation3 + $0x1], 1 }

// kernel: bottleneck_forward.4
= control target key start
LH: loop header
LB: loop body
LE: loop exit
PB: predicated region body
PF: predicated region fallthrough
CT: control target
= control target key end

     0   :  { %s1395_s21 = smov 0   ;;  %s1583_s0 = inlined_call_operand.vmem [shape: f32[2,256,128], index: 0, kind: input, shape index: {}]   ;;  %s1584_s1 = inlined_call_operand.vmem [shape: bf16[128,128], index: 1, kind: input, shape index: {}]   ;;  %s1585_s2 = inlined_call_operand.vmem [shape: bf16[128,128], index: 2, kind: input, shape index: {}]   ;;  %s1586_s3 = inlined_call_operand.vmem [shape: f32[2,256,128], index: 3, kind: output, shape index: {0}]   ;;  %s1587_s4 = inlined_call_operand.vmem [shape: f32[2,128], index: 4, kind: output, shape index: {1}]   ;;  %s1588_s5 = inlined_call_operand.vmem [shape: f32[2,256,128], index: 5, kind: output, shape index: {2}]   ;;  %s1589_s6 = inlined_call_operand.vmem [shape: f32[2,128], index: 6, kind: output, shape index: {3}]  }
   0x1 LB: > { %s1149_s22 = sadd.s32 4294967295, %s1357_s21   ;;  %p1153_p0 = scmp.ge.s32.totalorder %s1357_s21, 1  ;;  %s1357_s21 = sphi %s1395_s21, %s17_s21  }
   0x2   : > { %p209_p1 = scmp.lt.s32.totalorder %s1357_s21, 3 }
   0x4   : > { %p210_p2 = pnand %p1153_p0, %p209_p1 }
   0x5   : > { %p244_p3 = scmp.lt.s32.totalorder (!%p210_p2), %s1149_s22, 1  ;;  %p1160_p4 = scmp.ne.s32.totalorder (!%p210_p2), %s1149_s22, 0 }
   0x6   : > { %213 = sbr.rel (%p210_p2) target bundleno = 332 (0x14c), region = 32 }
   0xb   : > { %s245_s23 = scalar_select %p244_p3, %s1149_s22, 1 }
   0xc   : > { %263 = sbr.rel (%p1160_p4) target bundleno = 19 (0x13), region = 36 }
   0xd   : > { %s1179_s24 = sshll.u32 %s245_s23, 8 }
   0xe   : > { %s1406_s27 = scalar_lea.vmem %s1583_s0, %s1179_s24  ;;  %s1411_s30 = scalar_lea.vmem %s1586_s3, %s1179_s24 }
   0xf   : > { %s1416_s9 = scalar_lea.vmem %s1588_s5, %s1179_s24 }
  0x11   : > { %v1359_v0 = vmov 0.0  }
  0x12   : > { %264 = vst [vmem:[%s1587_s4] sm:$0x3] %v1359_v0  ;;  %265 = vst [vmem:[%s1589_s6] sm:$0x3] %v1359_v0 }
  0x13 PF: > { %v1335_v1 = vld [vmem:[%s1584_s1 + $0x38] sm:$0xff]   ;;  %v1337_v3 = vld [vmem:[%s1584_s1 + $0x30] sm:$0xff]   ;;  %v1339_v5 = vld [vmem:[%s1584_s1 + $0x28] sm:$0xff]   ;;  %vm678_vm0 = vcmask 1040384  }
  0x14   : > { %v1336_v2 = vld [vmem:[%s1585_s2 + $0x38] sm:$0xff]   ;;  %1230 = vmatprep.subr.bf16.mxu0 %v1335_v1  ;;  %v1338_v4 = vld [vmem:[%s1585_s2 + $0x30] sm:$0xff]   ;;  %v1340_v6 = vld [vmem:[%s1585_s2 + $0x28] sm:$0xff]  }
  0x15   : > { %1278 = vmatprep.subr.bf16.mxu1 %v1336_v2  ;;  %1231 = vmatpush3.bf16.msra.mxu0 %v1335_v1  ;;  %v1341_v7 = vld [vmem:[%s1584_s1 + $0x20] sm:$0xff]   ;;  %v1343_v9 = vld [vmem:[%s1584_s1 + $0x18] sm:$0xff]   ;;  %v1345_v11 = vld [vmem:[%s1584_s1 + $0x10] sm:$0xff]  }
  0x16   : > { %1279 = vmatpush3.bf16.msra.mxu1 %v1336_v2  ;;  %1232 = vmatprep.subr.bf16.mxu0 %v1337_v3  ;;  %v1342_v8 = vld [vmem:[%s1585_s2 + $0x20] sm:$0xff]   ;;  %v1344_v10 = vld [vmem:[%s1585_s2 + $0x18] sm:$0xff]   ;;  %v267_v13 = vld [vmem:[%s1406_s27 + $0x8] sm:$0xff] }
  0x17   : > { %1280 = vmatprep.subr.bf16.mxu1 %v1338_v4  ;;  %v266_v12 = vld [vmem:[%s1406_s27] sm:$0xff]  ;;  %v1346_v14 = vld [vmem:[%s1585_s2 + $0x10] sm:$0xff]   ;;  %v1347_v16 = vld [vmem:[%s1584_s1 + $0x8] sm:$0xff]  }
  0x18   : > { %v298_v15 = vpack.c.bf16 %v267_v13, %v266_v12  ;;  %v1348_v17 = vld [vmem:[%s1585_s2 + $0x8] sm:$0xff]   ;;  %v1349_v18 = vld [vmem:[%s1584_s1] sm:$0xff]   ;;  %v268_v20 = vld [vmem:[%s1406_s27 + $0x10] sm:$0xff] }
  0x19   : > { %1233 = vmatpush3.bf16.msra.mxu0 %v1337_v3  ;;  %v1350_v19 = vld [vmem:[%s1585_s2] sm:$0xff]   ;;  %v269_v21 = vld [vmem:[%s1406_s27 + $0x18] sm:$0xff]  ;;  %v271_v23 = vld [vmem:[%s1406_s27 + $0x28] sm:$0xff] }
  0x1a   : > { %1281 = vmatpush3.bf16.msra.mxu1 %v1338_v4  ;;  %1234 = vmatprep.subr.bf16.mxu0 %v1339_v5  ;;  %v270_v22 = vld [vmem:[%s1406_s27 + $0x20] sm:$0xff]  ;;  %v299_v24 = vpack.c.bf16 %v269_v21, %v268_v20  ;;  %v272_v26 = vld [vmem:[%s1406_s27 + $0x30] sm:$0xff]  ;;  %v273_v27 = vld [vmem:[%s1406_s27 + $0x38] sm:$0xff] }
  0x1b   : > { %1282 = vmatprep.subr.bf16.mxu1 %v1340_v6  ;;  %1246 = vmatprep.mubr.bf16.mxu0 %v298_v15  ;;  %v300_v25 = vpack.c.bf16 %v271_v23, %v270_v22  ;;  %v274_v28 = vld [vmem:[%s1406_s27 + $0x40] sm:$0xff]  ;;  %v275_v29 = vld [vmem:[%s1406_s27 + $0x48] sm:$0xff]  ;;  %v301_v30 = vpack.c.bf16 %v273_v27, %v272_v26  ;;  %v276_v32 = vld [vmem:[%s1406_s27 + $0x50] sm:$0xff] }
  0x1c   : > { %1294 = vmatprep.mubr.bf16.mxu1 %v298_v15  ;;  %v302_v31 = vpack.c.bf16 %v275_v29, %v274_v28  ;;  %v277_v33 = vld [vmem:[%s1406_s27 + $0x58] sm:$0xff]  ;;  %v278_v34 = vld [vmem:[%s1406_s27 + $0x60] sm:$0xff]  ;;  %v279_v35 = vld [vmem:[%s1406_s27 + $0x68] sm:$0xff] }
  0x1d   : > { %1235 = vmatpush3.bf16.msra.mxu0 %v1339_v5  ;;  %v303_v36 = vpack.c.bf16 %v277_v33, %v276_v32  ;;  %v304_v37 = vpack.c.bf16 %v279_v35, %v278_v34  ;;  %v280_v38 = vld [vmem:[%s1406_s27 + $0x70] sm:$0xff]  ;;  %v281_v39 = vld [vmem:[%s1406_s27 + $0x78] sm:$0xff]  ;;  %v282_v40 = vld [vmem:[%s1406_s27 + $0x80] sm:$0xff] }
  0x1e   : > { %1283 = vmatpush3.bf16.msra.mxu1 %v1340_v6  ;;  %1236 = vmatprep.subr.bf16.mxu0 %v1341_v7  ;;  %v283_v41 = vld [vmem:[%s1406_s27 + $0x88] sm:$0xff]  ;;  %v305_v42 = vpack.c.bf16 %v281_v39, %v280_v38  ;;  %v284_v44 = vld [vmem:[%s1406_s27 + $0x90] sm:$0xff]  ;;  %v285_v45 = vld [vmem:[%s1406_s27 + $0x98] sm:$0xff] }
  0x1f   : > { %1284 = vmatprep.subr.bf16.mxu1 %v1342_v8  ;;  %v306_v43 = vpack.c.bf16 %v283_v41, %v282_v40  ;;  %v286_v46 = vld [vmem:[%s1406_s27 + $0xa0] sm:$0xff]  ;;  %v287_v47 = vld [vmem:[%s1406_s27 + $0xa8] sm:$0xff]  ;;  %v307_v48 = vpack.c.bf16 %v285_v45, %v284_v44  ;;  %v288_v50 = vld [vmem:[%s1406_s27 + $0xb0] sm:$0xff] }
  0x20   : > { %v308_v49 = vpack.c.bf16 %v287_v47, %v286_v46  ;;  %v289_v51 = vld [vmem:[%s1406_s27 + $0xb8] sm:$0xff]  ;;  %v290_v52 = vld [vmem:[%s1406_s27 + $0xc0] sm:$0xff]  ;;  %v291_v53 = vld [vmem:[%s1406_s27 + $0xc8] sm:$0xff] }
  0x21   : > { %1237 = vmatpush3.bf16.msra.mxu0 %v1341_v7  ;;  %v309_v54 = vpack.c.bf16 %v289_v51, %v288_v50  ;;  %v310_v55 = vpack.c.bf16 %v291_v53, %v290_v52  ;;  %v292_v56 = vld [vmem:[%s1406_s27 + $0xd0] sm:$0xff]  ;;  %v293_v57 = vld [vmem:[%s1406_s27 + $0xd8] sm:$0xff]  ;;  %v294_v58 = vld [vmem:[%s1406_s27 + $0xe0] sm:$0xff] }
  0x22   : > { %1285 = vmatpush3.bf16.msra.mxu1 %v1342_v8  ;;  %1238 = vmatprep.subr.bf16.mxu0 %v1343_v9  ;;  %v295_v59 = vld [vmem:[%s1406_s27 + $0xe8] sm:$0xff]  ;;  %v311_v60 = vpack.c.bf16 %v293_v57, %v292_v56  ;;  %v296_v62 = vld [vmem:[%s1406_s27 + $0xf0] sm:$0xff]  ;;  %v297_v63 = vld [vmem:[%s1406_s27 + $0xf8] sm:$0xff] }
  0x23   : > { %1286 = vmatprep.subr.bf16.mxu1 %v1344_v10  ;;  %v312_v61 = vpack.c.bf16 %v295_v59, %v294_v58  ;;  %v313_v0 = vpack.c.bf16 %v297_v63, %v296_v62 }
  0x25   : > { %1239 = vmatpush3.bf16.msra.mxu0 %v1343_v9 }
  0x26   : > { %1287 = vmatpush3.bf16.msra.mxu1 %v1344_v10  ;;  %1240 = vmatprep.subr.bf16.mxu0 %v1345_v11 }
  0x27   : > { %1288 = vmatprep.subr.bf16.mxu1 %v1346_v14 }
  0x29   : > { %1241 = vmatpush3.bf16.msra.mxu0 %v1345_v11 }
  0x2a   : > { %1289 = vmatpush3.bf16.msra.mxu1 %v1346_v14  ;;  %1242 = vmatprep.subr.bf16.mxu0 %v1347_v16 }
  0x2b   : > { %1290 = vmatprep.subr.bf16.mxu1 %v1348_v17 }
  0x2d   : > { %1243 = vmatpush3.bf16.msra.mxu0 %v1347_v16 }
  0x2e   : > { %1291 = vmatpush3.bf16.msra.mxu1 %v1348_v17  ;;  %1244 = vmatprep.subr.bf16.mxu0 %v1349_v18 }
  0x2f   : > { %1292 = vmatprep.subr.bf16.mxu1 %v1350_v19 }
  0x31   : > { %1245 = vmatpush3.bf16.msra.mxu0 %v1349_v18 }
  0x32   : > { %1293 = vmatpush3.bf16.msra.mxu1 %v1350_v19 }
  0x34   : > { %1247 = vmatmul.mubr.bf16.vlgmr.msra.gmra.mxu0 %v299_v24 }
  0x35   : > { %1295 = vmatmul.mubr.bf16.vlgmr.msra.gmra.mxu1 %v299_v24  ;;  %1250 = vmatprep.mubr.bf16.mxu0 %v300_v25 }
  0x36   : > { %1298 = vmatprep.mubr.bf16.mxu1 %v300_v25 }
  0x3c   : > { %1251 = vmatmul.mubr.bf16.gmra.mxu0 %v301_v30 }
  0x3d   : > { %1299 = vmatmul.mubr.bf16.gmra.mxu1 %v301_v30  ;;  %1254 = vmatprep.mubr.bf16.mxu0 %v302_v31 }
  0x3e   : > { %1302 = vmatprep.mubr.bf16.mxu1 %v302_v31 }
  0x44   : > { %1255 = vmatmul.mubr.bf16.gmra.mxu0 %v303_v36 }
  0x45   : > { %1303 = vmatmul.mubr.bf16.gmra.mxu1 %v303_v36  ;;  %1258 = vmatprep.mubr.bf16.mxu0 %v304_v37 }
  0x46   : > { %1306 = vmatprep.mubr.bf16.mxu1 %v304_v37 }
  0x4c   : > { %1259 = vmatmul.mubr.bf16.gmra.mxu0 %v305_v42 }
  0x4d   : > { %1307 = vmatmul.mubr.bf16.gmra.mxu1 %v305_v42  ;;  %1262 = vmatprep.mubr.bf16.mxu0 %v306_v43 }
  0x4e   : > { %1310 = vmatprep.mubr.bf16.mxu1 %v306_v43 }
  0x54   : > { %1263 = vmatmul.mubr.bf16.gmra.mxu0 %v307_v48 }
  0x55   : > { %1311 = vmatmul.mubr.bf16.gmra.mxu1 %v307_v48  ;;  %1266 = vmatprep.mubr.bf16.mxu0 %v308_v49 }
  0x56   : > { %1314 = vmatprep.mubr.bf16.mxu1 %v308_v49 }
  0x5c   : > { %1267 = vmatmul.mubr.bf16.gmra.mxu0 %v309_v54 }
  0x5d   : > { %1315 = vmatmul.mubr.bf16.gmra.mxu1 %v309_v54  ;;  %1270 = vmatprep.mubr.bf16.mxu0 %v310_v55 }
  0x5e   : > { %1318 = vmatprep.mubr.bf16.mxu1 %v310_v55 }
  0x64   : > { %1271 = vmatmul.mubr.bf16.gmra.mxu0 %v311_v60 }
  0x65   : > { %1319 = vmatmul.mubr.bf16.gmra.mxu1 %v311_v60  ;;  %1274 = vmatprep.mubr.bf16.mxu0 %v312_v61 }
  0x66   : > { %1322 = vmatprep.mubr.bf16.mxu1 %v312_v61 }
  0x6c   : > { %1275 = vmatmul.mubr.bf16.gmra.mxu0 %v313_v0 }
  0x6d   : > { %1323 = vmatmul.mubr.bf16.gmra.mxu1 %v313_v0 }
  0xf4   : > { %v1248_v1 = vpop.f32.mrf.mxu0 }
  0xf5   : > { %541 = vst [vmem:[%s1411_s30 + $0x10] sm:$0xff] %v1248_v1  ;;  %v1296_v2 = vpop.f32.mrf.mxu1  ;;  %v611_v16 = vmul.f32 %v1248_v1, %v1248_v1 }
  0xf6   : > { %909 = vst [vmem:[%s1416_s9 + $0x10] sm:$0xff] %v1296_v2  ;;  %v412_v3 = vpop.f32.mrf.mxu0  ;;  %v979_v20 = vmul.f32 %v1296_v2, %v1296_v2 }
  0xf7   : > { %539 = vst [vmem:[%s1411_s30] sm:$0xff] %v412_v3  ;;  %v780_v4 = vpop.f32.mrf.mxu1  ;;  %v609_v8 = vmul.f32 %v412_v3, %v412_v3 }
  0xf8   : > { %907 = vst [vmem:[%s1416_s9] sm:$0xff] %v780_v4  ;;  %v1249_v5 = vpop.f32.mrf.mxu0  ;;  %v977_v12 = vmul.f32 %v780_v4, %v780_v4 }
  0xf9   : > { %542 = vst [vmem:[%s1411_s30 + $0x18] sm:$0xff] %v1249_v5  ;;  %v1297_v6 = vpop.f32.mrf.mxu1  ;;  %v612_v24 = vmul.f32 %v1249_v5, %v1249_v5 }
  0xfa   : > { %910 = vst [vmem:[%s1416_s9 + $0x18] sm:$0xff] %v1297_v6  ;;  %v415_v7 = vpop.f32.mrf.mxu0  ;;  %v980_v28 = vmul.f32 %v1297_v6, %v1297_v6 }
  0xfb   : > { %540 = vst [vmem:[%s1411_s30 + $0x8] sm:$0xff] %v415_v7  ;;  %v572_v9 = vadd.f32 %v415_v7, %v412_v3  ;;  %v610_v10 = vmul.f32 %v415_v7, %v415_v7  ;;  %v783_v11 = vpop.f32.mrf.mxu1 }
  0xfc   : > { %908 = vst [vmem:[%s1416_s9 + $0x8] sm:$0xff] %v783_v11  ;;  %v940_v13 = vadd.f32 %v783_v11, %v780_v4  ;;  %v978_v14 = vmul.f32 %v783_v11, %v783_v11  ;;  %v1252_v15 = vpop.f32.mrf.mxu0 }
  0xfd   : > { %v573_v17 = vadd.f32 %v1248_v1, %v572_v9  ;;  %v641_v18 = vadd.f32 %v610_v10, %v609_v8  ;;  %545 = vst [vmem:[%s1411_s30 + $0x30] sm:$0xff] %v1252_v15  ;;  %v1300_v19 = vpop.f32.mrf.mxu1  ;;  %v615_v48 = vmul.f32 %v1252_v15, %v1252_v15 }
  0xfe   : > { %v941_v21 = vadd.f32 %v1296_v2, %v940_v13  ;;  %v1009_v22 = vadd.f32 %v978_v14, %v977_v12  ;;  %913 = vst [vmem:[%s1416_s9 + $0x30] sm:$0xff] %v1300_v19  ;;  %v428_v23 = vpop.f32.mrf.mxu0  ;;  %v983_v52 = vmul.f32 %v1300_v19, %v1300_v19 }
  0xff   : > { %v642_v25 = vadd.f32 %v641_v18, %v611_v16  ;;  %543 = vst [vmem:[%s1411_s30 + $0x20] sm:$0xff] %v428_v23  ;;  %v574_v26 = vadd.f32 %v1249_v5, %v573_v17  ;;  %v796_v27 = vpop.f32.mrf.mxu1  ;;  %v613_v33 = vmul.f32 %v428_v23, %v428_v23 }
 0x100   : > { %v1010_v29 = vadd.f32 %v1009_v22, %v979_v20  ;;  %911 = vst [vmem:[%s1416_s9 + $0x20] sm:$0xff] %v796_v27  ;;  %v942_v30 = vadd.f32 %v1297_v6, %v941_v21  ;;  %v1253_v31 = vpop.f32.mrf.mxu0  ;;  %v981_v37 = vmul.f32 %v796_v27, %v796_v27 }
 0x101   : > { %v575_v32 = vadd.f32 %v574_v26, %v428_v23  ;;  %v643_v34 = vadd.f32 %v642_v25, %v612_v24  ;;  %546 = vst [vmem:[%s1411_s30 + $0x38] sm:$0xff] %v1253_v31  ;;  %v1301_v35 = vpop.f32.mrf.mxu1  ;;  %v616_v56 = vmul.f32 %v1253_v31, %v1253_v31 }
 0x102   : > { %v943_v36 = vadd.f32 %v942_v30, %v796_v27  ;;  %v1011_v38 = vadd.f32 %v1010_v29, %v980_v28  ;;  %914 = vst [vmem:[%s1416_s9 + $0x38] sm:$0xff] %v1301_v35  ;;  %v431_v39 = vpop.f32.mrf.mxu0  ;;  %v984_v60 = vmul.f32 %v1301_v35, %v1301_v35 }
 0x103   : > { %v644_v40 = vadd.f32 %v643_v34, %v613_v33  ;;  %544 = vst [vmem:[%s1411_s30 + $0x28] sm:$0xff] %v431_v39  ;;  %v576_v41 = vadd.f32 %v575_v32, %v431_v39  ;;  %v614_v42 = vmul.f32 %v431_v39, %v431_v39  ;;  %v799_v43 = vpop.f32.mrf.mxu1 }
 0x104   : > { %v1012_v44 = vadd.f32 %v1011_v38, %v981_v37  ;;  %912 = vst [vmem:[%s1416_s9 + $0x28] sm:$0xff] %v799_v43  ;;  %v944_v45 = vadd.f32 %v943_v36, %v799_v43  ;;  %v982_v46 = vmul.f32 %v799_v43, %v799_v43  ;;  %v1256_v47 = vpop.f32.mrf.mxu0 }
 0x105   : > { %v577_v49 = vadd.f32 %v1252_v15, %v576_v41  ;;  %v645_v50 = vadd.f32 %v644_v40, %v614_v42  ;;  %549 = vst [vmem:[%s1411_s30 + $0x50] sm:$0xff] %v1256_v47  ;;  %v1304_v51 = vpop.f32.mrf.mxu1  ;;  %v619_v16 = vmul.f32 %v1256_v47, %v1256_v47 }
 0x106   : > { %v945_v53 = vadd.f32 %v1300_v19, %v944_v45  ;;  %v1013_v54 = vadd.f32 %v1012_v44, %v982_v46  ;;  %917 = vst [vmem:[%s1416_s9 + $0x50] sm:$0xff] %v1304_v51  ;;  %v444_v55 = vpop.f32.mrf.mxu0  ;;  %v987_v20 = vmul.f32 %v1304_v51, %v1304_v51 }
 0x107   : > { %v646_v57 = vadd.f32 %v645_v50, %v615_v48  ;;  %547 = vst [vmem:[%s1411_s30 + $0x40] sm:$0xff] %v444_v55  ;;  %v578_v58 = vadd.f32 %v1253_v31, %v577_v49  ;;  %v812_v59 = vpop.f32.mrf.mxu1  ;;  %v617_v1 = vmul.f32 %v444_v55, %v444_v55 }
 0x108   : > { %v1014_v61 = vadd.f32 %v1013_v54, %v983_v52  ;;  %915 = vst [vmem:[%s1416_s9 + $0x40] sm:$0xff] %v812_v59  ;;  %v946_v62 = vadd.f32 %v1301_v35, %v945_v53  ;;  %v1257_v63 = vpop.f32.mrf.mxu0  ;;  %v985_v5 = vmul.f32 %v812_v59, %v812_v59 }
 0x109   : > { %v579_v0 = vadd.f32 %v578_v58, %v444_v55  ;;  %v647_v2 = vadd.f32 %v646_v57, %v616_v56  ;;  %550 = vst [vmem:[%s1411_s30 + $0x58] sm:$0xff] %v1257_v63  ;;  %v1305_v3 = vpop.f32.mrf.mxu1  ;;  %v620_v24 = vmul.f32 %v1257_v63, %v1257_v63 }
 0x10a   : > { %v947_v4 = vadd.f32 %v946_v62, %v812_v59  ;;  %v1015_v6 = vadd.f32 %v1014_v61, %v984_v60  ;;  %918 = vst [vmem:[%s1416_s9 + $0x58] sm:$0xff] %v1305_v3  ;;  %v447_v7 = vpop.f32.mrf.mxu0  ;;  %v988_v28 = vmul.f32 %v1305_v3, %v1305_v3 }
 0x10b   : > { %v648_v8 = vadd.f32 %v647_v2, %v617_v1  ;;  %548 = vst [vmem:[%s1411_s30 + $0x48] sm:$0xff] %v447_v7  ;;  %v580_v9 = vadd.f32 %v579_v0, %v447_v7  ;;  %v618_v10 = vmul.f32 %v447_v7, %v447_v7  ;;  %v815_v11 = vpop.f32.mrf.mxu1 }
 0x10c   : > { %v1016_v12 = vadd.f32 %v1015_v6, %v985_v5  ;;  %916 = vst [vmem:[%s1416_s9 + $0x48] sm:$0xff] %v815_v11  ;;  %v948_v13 = vadd.f32 %v947_v4, %v815_v11  ;;  %v986_v14 = vmul.f32 %v815_v11, %v815_v11  ;;  %v1260_v15 = vpop.f32.mrf.mxu0 }
 0x10d   : > { %v581_v17 = vadd.f32 %v1256_v47, %v580_v9  ;;  %v649_v18 = vadd.f32 %v648_v8, %v618_v10  ;;  %553 = vst [vmem:[%s1411_s30 + $0x70] sm:$0xff] %v1260_v15  ;;  %v1308_v19 = vpop.f32.mrf.mxu1  ;;  %v623_v48 = vmul.f32 %v1260_v15, %v1260_v15 }
 0x10e   : > { %v949_v21 = vadd.f32 %v1304_v51, %v948_v13  ;;  %v1017_v22 = vadd.f32 %v1016_v12, %v986_v14  ;;  %921 = vst [vmem:[%s1416_s9 + $0x70] sm:$0xff] %v1308_v19  ;;  %v460_v23 = vpop.f32.mrf.mxu0  ;;  %v991_v52 = vmul.f32 %v1308_v19, %v1308_v19 }
 0x10f   : > { %v650_v25 = vadd.f32 %v649_v18, %v619_v16  ;;  %551 = vst [vmem:[%s1411_s30 + $0x60] sm:$0xff] %v460_v23  ;;  %v582_v26 = vadd.f32 %v1257_v63, %v581_v17  ;;  %v828_v27 = vpop.f32.mrf.mxu1  ;;  %v621_v33 = vmul.f32 %v460_v23, %v460_v23 }
 0x110   : > { %v1018_v29 = vadd.f32 %v1017_v22, %v987_v20  ;;  %919 = vst [vmem:[%s1416_s9 + $0x60] sm:$0xff] %v828_v27  ;;  %v950_v30 = vadd.f32 %v1305_v3, %v949_v21  ;;  %v1261_v31 = vpop.f32.mrf.mxu0  ;;  %v989_v37 = vmul.f32 %v828_v27, %v828_v27 }
 0x111   : > { %v583_v32 = vadd.f32 %v582_v26, %v460_v23  ;;  %v651_v34 = vadd.f32 %v650_v25, %v620_v24  ;;  %554 = vst [vmem:[%s1411_s30 + $0x78] sm:$0xff] %v1261_v31  ;;  %v1309_v35 = vpop.f32.mrf.mxu1  ;;  %v624_v56 = vmul.f32 %v1261_v31, %v1261_v31 }
 0x112   : > { %v951_v36 = vadd.f32 %v950_v30, %v828_v27  ;;  %v1019_v38 = vadd.f32 %v1018_v29, %v988_v28  ;;  %922 = vst [vmem:[%s1416_s9 + $0x78] sm:$0xff] %v1309_v35  ;;  %v463_v39 = vpop.f32.mrf.mxu0  ;;  %v992_v60 = vmul.f32 %v1309_v35, %v1309_v35 }
 0x113   : > { %v652_v40 = vadd.f32 %v651_v34, %v621_v33  ;;  %552 = vst [vmem:[%s1411_s30 + $0x68] sm:$0xff] %v463_v39  ;;  %v584_v41 = vadd.f32 %v583_v32, %v463_v39  ;;  %v622_v42 = vmul.f32 %v463_v39, %v463_v39  ;;  %v831_v43 = vpop.f32.mrf.mxu1 }
 0x114   : > { %v1020_v44 = vadd.f32 %v1019_v38, %v989_v37  ;;  %920 = vst [vmem:[%s1416_s9 + $0x68] sm:$0xff] %v831_v43  ;;  %v952_v45 = vadd.f32 %v951_v36, %v831_v43  ;;  %v990_v46 = vmul.f32 %v831_v43, %v831_v43  ;;  %v1264_v47 = vpop.f32.mrf.mxu0 }
 0x115   : > { %v585_v49 = vadd.f32 %v1260_v15, %v584_v41  ;;  %v653_v50 = vadd.f32 %v652_v40, %v622_v42  ;;  %557 = vst [vmem:[%s1411_s30 + $0x90] sm:$0xff] %v1264_v47  ;;  %v1312_v51 = vpop.f32.mrf.mxu1  ;;  %v627_v16 = vmul.f32 %v1264_v47, %v1264_v47 }
 0x116   : > { %v953_v53 = vadd.f32 %v1308_v19, %v952_v45  ;;  %v1021_v54 = vadd.f32 %v1020_v44, %v990_v46  ;;  %925 = vst [vmem:[%s1416_s9 + $0x90] sm:$0xff] %v1312_v51  ;;  %v476_v55 = vpop.f32.mrf.mxu0  ;;  %v995_v20 = vmul.f32 %v1312_v51, %v1312_v51 }
 0x117   : > { %v654_v57 = vadd.f32 %v653_v50, %v623_v48  ;;  %555 = vst [vmem:[%s1411_s30 + $0x80] sm:$0xff] %v476_v55  ;;  %v586_v58 = vadd.f32 %v1261_v31, %v585_v49  ;;  %v844_v59 = vpop.f32.mrf.mxu1  ;;  %v625_v1 = vmul.f32 %v476_v55, %v476_v55 }
 0x118   : > { %v1022_v61 = vadd.f32 %v1021_v54, %v991_v52  ;;  %923 = vst [vmem:[%s1416_s9 + $0x80] sm:$0xff] %v844_v59  ;;  %v954_v62 = vadd.f32 %v1309_v35, %v953_v53  ;;  %v1265_v63 = vpop.f32.mrf.mxu0  ;;  %v993_v5 = vmul.f32 %v844_v59, %v844_v59 }
 0x119   : > { %v587_v0 = vadd.f32 %v586_v58, %v476_v55  ;;  %v655_v2 = vadd.f32 %v654_v57, %v624_v56  ;;  %558 = vst [vmem:[%s1411_s30 + $0x98] sm:$0xff] %v1265_v63  ;;  %v1313_v3 = vpop.f32.mrf.mxu1  ;;  %v628_v24 = vmul.f32 %v1265_v63, %v1265_v63 }
 0x11a   : > { %v955_v4 = vadd.f32 %v954_v62, %v844_v59  ;;  %v1023_v6 = vadd.f32 %v1022_v61, %v992_v60  ;;  %926 = vst [vmem:[%s1416_s9 + $0x98] sm:$0xff] %v1313_v3  ;;  %v479_v7 = vpop.f32.mrf.mxu0  ;;  %v996_v28 = vmul.f32 %v1313_v3, %v1313_v3 }
 0x11b   : > { %v656_v8 = vadd.f32 %v655_v2, %v625_v1  ;;  %556 = vst [vmem:[%s1411_s30 + $0x88] sm:$0xff] %v479_v7  ;;  %v588_v9 = vadd.f32 %v587_v0, %v479_v7  ;;  %v626_v10 = vmul.f32 %v479_v7, %v479_v7  ;;  %v847_v11 = vpop.f32.mrf.mxu1 }
 0x11c   : > { %v1024_v12 = vadd.f32 %v1023_v6, %v993_v5  ;;  %924 = vst [vmem:[%s1416_s9 + $0x88] sm:$0xff] %v847_v11  ;;  %v956_v13 = vadd.f32 %v955_v4, %v847_v11  ;;  %v994_v14 = vmul.f32 %v847_v11, %v847_v11  ;;  %v1268_v15 = vpop.f32.mrf.mxu0 }
 0x11d   : > { %v589_v17 = vadd.f32 %v1264_v47, %v588_v9  ;;  %v657_v18 = vadd.f32 %v656_v8, %v626_v10  ;;  %561 = vst [vmem:[%s1411_s30 + $0xb0] sm:$0xff] %v1268_v15  ;;  %v1316_v19 = vpop.f32.mrf.mxu1  ;;  %v631_v48 = vmul.f32 %v1268_v15, %v1268_v15 }
 0x11e   : > { %v957_v21 = vadd.f32 %v1312_v51, %v956_v13  ;;  %v1025_v22 = vadd.f32 %v1024_v12, %v994_v14  ;;  %929 = vst [vmem:[%s1416_s9 + $0xb0] sm:$0xff] %v1316_v19  ;;  %v492_v23 = vpop.f32.mrf.mxu0  ;;  %v999_v52 = vmul.f32 %v1316_v19, %v1316_v19 }
 0x11f   : > { %v658_v25 = vadd.f32 %v657_v18, %v627_v16  ;;  %559 = vst [vmem:[%s1411_s30 + $0xa0] sm:$0xff] %v492_v23  ;;  %v590_v26 = vadd.f32 %v1265_v63, %v589_v17  ;;  %v860_v27 = vpop.f32.mrf.mxu1  ;;  %v629_v33 = vmul.f32 %v492_v23, %v492_v23 }
 0x120   : > { %v1026_v29 = vadd.f32 %v1025_v22, %v995_v20  ;;  %927 = vst [vmem:[%s1416_s9 + $0xa0] sm:$0xff] %v860_v27  ;;  %v958_v30 = vadd.f32 %v1313_v3, %v957_v21  ;;  %v1269_v31 = vpop.f32.mrf.mxu0  ;;  %v997_v37 = vmul.f32 %v860_v27, %v860_v27 }
 0x121   : > { %v591_v32 = vadd.f32 %v590_v26, %v492_v23  ;;  %v659_v34 = vadd.f32 %v658_v25, %v628_v24  ;;  %562 = vst [vmem:[%s1411_s30 + $0xb8] sm:$0xff] %v1269_v31  ;;  %v1317_v35 = vpop.f32.mrf.mxu1  ;;  %v632_v56 = vmul.f32 %v1269_v31, %v1269_v31 }
 0x122   : > { %v959_v36 = vadd.f32 %v958_v30, %v860_v27  ;;  %v1027_v38 = vadd.f32 %v1026_v29, %v996_v28  ;;  %930 = vst [vmem:[%s1416_s9 + $0xb8] sm:$0xff] %v1317_v35  ;;  %v495_v39 = vpop.f32.mrf.mxu0  ;;  %v1000_v60 = vmul.f32 %v1317_v35, %v1317_v35 }
 0x123   : > { %v660_v40 = vadd.f32 %v659_v34, %v629_v33  ;;  %560 = vst [vmem:[%s1411_s30 + $0xa8] sm:$0xff] %v495_v39  ;;  %v592_v41 = vadd.f32 %v591_v32, %v495_v39  ;;  %v630_v42 = vmul.f32 %v495_v39, %v495_v39  ;;  %v863_v43 = vpop.f32.mrf.mxu1 }
 0x124   : > { %v1028_v44 = vadd.f32 %v1027_v38, %v997_v37  ;;  %928 = vst [vmem:[%s1416_s9 + $0xa8] sm:$0xff] %v863_v43  ;;  %v960_v45 = vadd.f32 %v959_v36, %v863_v43  ;;  %v998_v46 = vmul.f32 %v863_v43, %v863_v43  ;;  %v1272_v47 = vpop.f32.mrf.mxu0 }
 0x125   : > { %v593_v49 = vadd.f32 %v1268_v15, %v592_v41  ;;  %v661_v50 = vadd.f32 %v660_v40, %v630_v42  ;;  %565 = vst [vmem:[%s1411_s30 + $0xd0] sm:$0xff] %v1272_v47  ;;  %v1320_v51 = vpop.f32.mrf.mxu1  ;;  %v635_v16 = vmul.f32 %v1272_v47, %v1272_v47 }
 0x126   : > { %v961_v53 = vadd.f32 %v1316_v19, %v960_v45  ;;  %v1029_v54 = vadd.f32 %v1028_v44, %v998_v46  ;;  %933 = vst [vmem:[%s1416_s9 + $0xd0] sm:$0xff] %v1320_v51  ;;  %v508_v55 = vpop.f32.mrf.mxu0  ;;  %v1003_v20 = vmul.f32 %v1320_v51, %v1320_v51 }
 0x127   : > { %v662_v57 = vadd.f32 %v661_v50, %v631_v48  ;;  %563 = vst [vmem:[%s1411_s30 + $0xc0] sm:$0xff] %v508_v55  ;;  %v594_v58 = vadd.f32 %v1269_v31, %v593_v49  ;;  %v876_v59 = vpop.f32.mrf.mxu1  ;;  %v633_v1 = vmul.f32 %v508_v55, %v508_v55 }
 0x128   : > { %v1030_v61 = vadd.f32 %v1029_v54, %v999_v52  ;;  %931 = vst [vmem:[%s1416_s9 + $0xc0] sm:$0xff] %v876_v59  ;;  %v962_v62 = vadd.f32 %v1317_v35, %v961_v53  ;;  %v1273_v63 = vpop.f32.mrf.mxu0  ;;  %v1001_v5 = vmul.f32 %v876_v59, %v876_v59 }
 0x129   : > { %v595_v0 = vadd.f32 %v594_v58, %v508_v55  ;;  %v663_v2 = vadd.f32 %v662_v57, %v632_v56  ;;  %566 = vst [vmem:[%s1411_s30 + $0xd8] sm:$0xff] %v1273_v63  ;;  %v1321_v3 = vpop.f32.mrf.mxu1  ;;  %v636_v24 = vmul.f32 %v1273_v63, %v1273_v63 }
 0x12a   : > { %v963_v4 = vadd.f32 %v962_v62, %v876_v59  ;;  %v1031_v6 = vadd.f32 %v1030_v61, %v1000_v60  ;;  %934 = vst [vmem:[%s1416_s9 + $0xd8] sm:$0xff] %v1321_v3  ;;  %v511_v7 = vpop.f32.mrf.mxu0  ;;  %v1004_v28 = vmul.f32 %v1321_v3, %v1321_v3 }
 0x12b   : > { %v664_v8 = vadd.f32 %v663_v2, %v633_v1  ;;  %564 = vst [vmem:[%s1411_s30 + $0xc8] sm:$0xff] %v511_v7  ;;  %v596_v9 = vadd.f32 %v595_v0, %v511_v7  ;;  %v634_v10 = vmul.f32 %v511_v7, %v511_v7  ;;  %v879_v11 = vpop.f32.mrf.mxu1 }
 0x12c   : > { %v1032_v12 = vadd.f32 %v1031_v6, %v1001_v5  ;;  %932 = vst [vmem:[%s1416_s9 + $0xc8] sm:$0xff] %v879_v11  ;;  %v964_v13 = vadd.f32 %v963_v4, %v879_v11  ;;  %v1002_v14 = vmul.f32 %v879_v11, %v879_v11  ;;  %v1276_v15 = vpop.f32.mrf.mxu0 }
 0x12d   : > { %v597_v17 = vadd.f32 %v1272_v47, %v596_v9  ;;  %v665_v18 = vadd.f32 %v664_v8, %v634_v10  ;;  %569 = vst [vmem:[%s1411_s30 + $0xf0] sm:$0xff] %v1276_v15  ;;  %v1324_v19 = vpop.f32.mrf.mxu1  ;;  %v639_v47 = vmul.f32 %v1276_v15, %v1276_v15 }
 0x12e   : > { %v965_v21 = vadd.f32 %v1320_v51, %v964_v13  ;;  %v1033_v22 = vadd.f32 %v1032_v12, %v1002_v14  ;;  %937 = vst [vmem:[%s1416_s9 + $0xf0] sm:$0xff] %v1324_v19  ;;  %v524_v23 = vpop.f32.mrf.mxu0  ;;  %v1007_v50 = vmul.f32 %v1324_v19, %v1324_v19 }
 0x12f   : > { %v666_v25 = vadd.f32 %v665_v18, %v635_v16  ;;  %567 = vst [vmem:[%s1411_s30 + $0xe0] sm:$0xff] %v524_v23  ;;  %v598_v26 = vadd.f32 %v1273_v63, %v597_v17  ;;  %v892_v27 = vpop.f32.mrf.mxu1  ;;  %v637_v33 = vmul.f32 %v524_v23, %v524_v23  ;;  %v571_v17 = vld [vmem:[%s1587_s4] sm:$0x3] }
 0x130   : > { %v1034_v29 = vadd.f32 %v1033_v22, %v1003_v20  ;;  %935 = vst [vmem:[%s1416_s9 + $0xe0] sm:$0xff] %v892_v27  ;;  %v966_v30 = vadd.f32 %v1321_v3, %v965_v21  ;;  %v1277_v31 = vpop.f32.mrf.mxu0  ;;  %v1005_v37 = vmul.f32 %v892_v27, %v892_v27  ;;  %v939_v20 = vld [vmem:[%s1589_s6] sm:$0x3] }
 0x131   : > { %v599_v32 = vadd.f32 %v598_v26, %v524_v23  ;;  %v667_v34 = vadd.f32 %v666_v25, %v636_v24  ;;  %570 = vst [vmem:[%s1411_s30 + $0xf8] sm:$0xff] %v1277_v31  ;;  %v1325_v35 = vpop.f32.mrf.mxu1  ;;  %v640_v53 = vmul.f32 %v1277_v31, %v1277_v31 }
 0x132   : > { %v967_v36 = vadd.f32 %v966_v30, %v892_v27  ;;  %v1035_v38 = vadd.f32 %v1034_v29, %v1004_v28  ;;  %938 = vst [vmem:[%s1416_s9 + $0xf8] sm:$0xff] %v1325_v35  ;;  %v527_v39 = vpop.f32.mrf.mxu0  ;;  %v1008_v56 = vmul.f32 %v1325_v35, %v1325_v35 }
 0x133   : > { %v668_v40 = vadd.f32 %v667_v34, %v637_v33  ;;  %568 = vst [vmem:[%s1411_s30 + $0xe8] sm:$0xff] %v527_v39  ;;  %v600_v41 = vadd.f32 %v599_v32, %v527_v39  ;;  %v638_v42 = vmul.f32 %v527_v39, %v527_v39  ;;  %v895_v43 = vpop.f32.mrf.mxu1 }
 0x134   : > { %v1036_v44 = vadd.f32 %v1035_v38, %v1005_v37  ;;  %936 = vst [vmem:[%s1416_s9 + $0xe8] sm:$0xff] %v895_v43  ;;  %v968_v45 = vadd.f32 %v967_v36, %v895_v43  ;;  %v1006_v46 = vmul.f32 %v895_v43, %v895_v43 }
 0x135   : > { %v601_v48 = vadd.f32 %v1276_v15, %v600_v41  ;;  %v669_v49 = vadd.f32 %v668_v40, %v638_v42 }
 0x136   : > { %v969_v51 = vadd.f32 %v1324_v19, %v968_v45  ;;  %v1037_v52 = vadd.f32 %v1036_v44, %v1006_v46 }
 0x137   : > { %v602_v54 = vadd.f32 %v1277_v31, %v601_v48  ;;  %v670_v55 = vadd.f32 %v669_v49, %v639_v47 }
 0x138   : > { %v970_v57 = vadd.f32 %v1325_v35, %v969_v51  ;;  %v1038_v58 = vadd.f32 %v1037_v52, %v1007_v50 }
 0x139   : > { %v603_v59 = vrot.slane %v602_v54, 4  ;;  %v671_v60 = vadd.f32 %v670_v55, %v640_v53 }
 0x13a   : > { %v971_v61 = vrot.slane %v970_v57, 4  ;;  %v1039_v62 = vadd.f32 %v1038_v58, %v1008_v56 }
 0x13b   : > { %v604_v63 = vadd.f32 %v603_v59, %v602_v54  ;;  %v672_v0 = vrot.slane %v671_v60, 4 }
 0x13c   : > { %v972_v1 = vadd.f32 %v971_v61, %v970_v57  ;;  %v1040_v2 = vrot.slane %v1039_v62, 4 }
 0x13d   : > { %v605_v3 = vrot.slane %v604_v63, 2  ;;  %v673_v4 = vadd.f32 %v672_v0, %v671_v60 }
 0x13e   : > { %v973_v5 = vrot.slane %v972_v1, 2  ;;  %v1041_v6 = vadd.f32 %v1040_v2, %v1039_v62 }
 0x13f   : > { %v606_v7 = vadd.f32 %v605_v3, %v604_v63  ;;  %v674_v8 = vrot.slane %v673_v4, 2 }
 0x140   : > { %v974_v9 = vadd.f32 %v973_v5, %v972_v1  ;;  %v1042_v10 = vrot.slane %v1041_v6, 2 }
 0x141   : > { %v607_v11 = vrot.slane %v606_v7, 1  ;;  %v675_v12 = vadd.f32 %v674_v8, %v673_v4 }
 0x142   : > { %v975_v13 = vrot.slane %v974_v9, 1  ;;  %v1043_v14 = vadd.f32 %v1042_v10, %v1041_v6 }
 0x143   : > { %v676_v15 = vrot.slane %v675_v12, 1  ;;  %v608_v18 = vadd.f32 %v607_v11, %v606_v7 }
 0x144   : > { %v1044_v16 = vrot.slane %v1043_v14, 1  ;;  %v976_v21 = vadd.f32 %v975_v13, %v974_v9 }
 0x145   : > { %v677_v19 = vadd.f32 %v676_v15, %v675_v12 }
 0x146   : > { %v1045_v22 = vadd.f32 %v1044_v16, %v1043_v14 }
 0x147   : > { %v679_v23 = vsel %vm678_vm0, %v608_v18, %v677_v19 }
 0x148   : > { %v680_v24 = vadd.f32 %v679_v23, %v571_v17  ;;  %v1046_v25 = vsel %vm678_vm0, %v976_v21, %v1045_v22 }
 0x149   : > { %v1047_v26 = vadd.f32 %v1046_v25, %v939_v20 }
 0x14a   : > { %681 = vst [vmem:[%s1587_s4] sm:$0x3] %v680_v24 }
 0x14b   : > { %1048 = vst [vmem:[%s1589_s6] sm:$0x3] %v1047_v26 }
 0x14c PF: > { %s17_s21 = sadd.s32 1, %s1357_s21  }
 0x14d   : > { %p14_p5 = scmp.ge.s32.totalorder %s17_s21, 4  }
 0x14f   :  { %16 = sbr.rel (!%p14_p5) target bundleno = 1 (0x1), region = 94 }

// kernel: bottleneck_forward.6
= control target key start
LH: loop header
LB: loop body
LE: loop exit
PB: predicated region body
PF: predicated region fallthrough
CT: control target
= control target key end

     0   :  { %s948_s15 = smov 0   ;;  %s1245_s0 = inlined_call_operand.vmem [shape: f32[2,256,128], index: 0, kind: input, shape index: {}]   ;;  %s1246_s1 = inlined_call_operand.vmem [shape: f32[2,128], index: 1, kind: input, shape index: {}]   ;;  %s1247_s2 = inlined_call_operand.vmem [shape: bf16[128,128], index: 2, kind: input, shape index: {}]   ;;  %s1248_s3 = inlined_call_operand.vmem [shape: f32[2,256,128], index: 3, kind: output, shape index: {0}]   ;;  %s1249_s4 = inlined_call_operand.vmem [shape: f32[2,128], index: 4, kind: output, shape index: {1}]  }
   0x1 LB: > { %s785_s16 = sadd.s32 4294967295, %s920_s15   ;;  %p789_p0 = scmp.ge.s32.totalorder %s920_s15, 1  ;;  %s920_s15 = sphi %s948_s15, %s15_s15  }
   0x2   : > { %p160_p1 = scmp.lt.s32.totalorder %s920_s15, 3 }
   0x4   : > { %p161_p2 = pnand %p789_p0, %p160_p1 }
   0x5   : > { %p186_p3 = scmp.lt.s32.totalorder (!%p161_p2), %s785_s16, 1  ;;  %p794_p4 = scmp.ne.s32.totalorder (!%p161_p2), %s785_s16, 0 }
   0x6   : > { %164 = sbr.rel (%p161_p2) target bundleno = 331 (0x14b), region = 32 }
   0xb   : > { %s187_s17 = scalar_select %p186_p3, %s785_s16, 1 }
   0xc   : > { %200 = sbr.rel (%p794_p4) target bundleno = 19 (0x13), region = 36 }
   0xd   : > { %s807_s18 = sshll.u32 %s187_s17, 8 }
   0xe   : > { %s959_s21 = scalar_lea.vmem %s1245_s0, %s807_s18  ;;  %s964_s24 = scalar_lea.vmem %s1248_s3, %s807_s18 }
  0x11   : > { %v922_v0 = vmov 0.0  }
  0x12   : > { %201 = vst [vmem:[%s1249_s4] sm:$0x3] %v922_v0 }
  0x13 PF: > { %v906_v1 = vld [vmem:[%s1247_s2 + $0x38] sm:$0xff]   ;;  %v907_v2 = vld [vmem:[%s1247_s2 + $0x30] sm:$0xff]   ;;  %v908_v3 = vld [vmem:[%s1247_s2 + $0x28] sm:$0xff]   ;;  %vm720_vm0 = vcmask 1040384  }
  0x14   : > { %833 = vmatprep.subr.bf16.mxu0 %v906_v1  ;;  %881 = vmatprep.subr.bf16.mxu1 %v906_v1  ;;  %v909_v4 = vld [vmem:[%s1247_s2 + $0x20] sm:$0xff]   ;;  %v203_v6 = vld [vmem:[%s959_s21 + $0x8] sm:$0xff]  ;;  %v204_v11 = vld [vmem:[%s959_s21 + $0x10] sm:$0xff] }
  0x15   : > { %834 = vmatpush3.bf16.msra.mxu0 %v906_v1  ;;  %889 = vmatpush3.bf16.msra.mxu1 %v906_v1  ;;  %v202_v5 = vld [vmem:[%s959_s21] sm:$0xff]  ;;  %v205_v12 = vld [vmem:[%s959_s21 + $0x18] sm:$0xff]  ;;  %v207_v21 = vld [vmem:[%s959_s21 + $0x28] sm:$0xff] }
  0x16   : > { %835 = vmatprep.subr.bf16.mxu0 %v907_v2  ;;  %882 = vmatprep.subr.bf16.mxu1 %v907_v2  ;;  %v986_v7 = vld [vmem:[%s1246_s1] ss:$0 sm:$0xff]  ;;  %v993_v10 = vld [vmem:[%s1246_s1 + $0x1] ss:$0 sm:$0xff]  ;;  %v910_v18 = vld [vmem:[%s1247_s2 + $0x18] sm:$0xff]  }
  0x17   : > { %v239_v8 = vmul.f32 %v986_v7, %v202_v5  ;;  %v240_v9 = vmul.f32 %v986_v7, %v203_v6  ;;  %v241_v13 = vmul.f32 %v986_v7, %v204_v11  ;;  %v242_v16 = vmul.f32 %v986_v7, %v205_v12  ;;  %v206_v17 = vld [vmem:[%s959_s21 + $0x20] sm:$0xff]  ;;  %v208_v26 = vld [vmem:[%s959_s21 + $0x30] sm:$0xff]  ;;  %v209_v29 = vld [vmem:[%s959_s21 + $0x38] sm:$0xff] }
  0x18   : > { %v243_v22 = vmul.f32 %v986_v7, %v206_v17  ;;  %v911_v27 = vld [vmem:[%s1247_s2 + $0x10] sm:$0xff]   ;;  %v244_v28 = vmul.f32 %v986_v7, %v207_v21  ;;  %v245_v30 = vmul.f32 %v986_v7, %v208_v26  ;;  %v210_v31 = vld [vmem:[%s959_s21 + $0x40] sm:$0xff]  ;;  %v912_v36 = vld [vmem:[%s1247_s2 + $0x8] sm:$0xff]   ;;  %v246_v40 = vmul.f32 %v986_v7, %v209_v29 }
  0x19   : > { %836 = vmatpush3.bf16.msra.mxu0 %v907_v2  ;;  %890 = vmatpush3.bf16.msra.mxu1 %v907_v2  ;;  %v276_v14 = vadd.f32 %v993_v10, %v239_v8  ;;  %v277_v15 = vadd.f32 %v993_v10, %v240_v9  ;;  %v278_v24 = vadd.f32 %v993_v10, %v241_v13  ;;  %v218_v35 = vld [vmem:[%s959_s21 + $0x80] sm:$0xff]  ;;  %v211_v38 = vld [vmem:[%s959_s21 + $0x48] sm:$0xff]  ;;  %v220_v42 = vld [vmem:[%s959_s21 + $0x90] sm:$0xff] }
  0x1a   : > { %837 = vmatprep.subr.bf16.mxu0 %v908_v3  ;;  %883 = vmatprep.subr.bf16.mxu1 %v908_v3  ;;  %v279_v25 = vadd.f32 %v993_v10, %v242_v16  ;;  %v1018_v34 = vadd.f32 %v993_v10, %v243_v22  ;;  %v1025_v37 = vadd.f32 %v993_v10, %v244_v28  ;;  %v219_v39 = vld [vmem:[%s959_s21 + $0x88] sm:$0xff]  ;;  %v221_v43 = vld [vmem:[%s959_s21 + $0x98] sm:$0xff]  ;;  %v222_v46 = vld [vmem:[%s959_s21 + $0xa0] sm:$0xff] }
  0x1b   : > { %v308_v19 = vmax.f32 %v276_v14, 0.0  ;;  %v309_v20 = vmax.f32 %v277_v15, 0.0  ;;  %v310_v32 = vmax.f32 %v278_v24, 0.0  ;;  %v247_v41 = vmul.f32 %v986_v7, %v210_v31  ;;  %v223_v51 = vld [vmem:[%s959_s21 + $0xa8] sm:$0xff]  ;;  %v913_v52 = vld [vmem:[%s1247_s2] sm:$0xff]   ;;  %v224_v57 = vld [vmem:[%s959_s21 + $0xb0] sm:$0xff] }
  0x1c   : > { %v311_v33 = vmax.f32 %v279_v25, 0.0  ;;  %v1034_v44 = vadd.f32 %v993_v10, %v245_v30  ;;  %v255_v45 = vmul.f32 %v986_v7, %v218_v35  ;;  %v312_v48 = vmax.f32 %v1018_v34, 0.0  ;;  %v225_v62 = vld [vmem:[%s959_s21 + $0xb8] sm:$0xff]  ;;  %v227_v9 = vld [vmem:[%s959_s21 + $0xc8] sm:$0xff]  ;;  %v212_v11 = vld [vmem:[%s959_s21 + $0x50] sm:$0xff] }
  0x1d   : > { %838 = vmatpush3.bf16.msra.mxu0 %v908_v3  ;;  %891 = vmatpush3.bf16.msra.mxu1 %v908_v3  ;;  %v340_v23 = vpack.c.bf16 %v309_v20, %v308_v19  ;;  %v248_v49 = vmul.f32 %v986_v7, %v211_v38  ;;  %v256_v50 = vmul.f32 %v986_v7, %v219_v39  ;;  %v313_v53 = vmax.f32 %v1025_v37, 0.0  ;;  %v226_v3 = vld [vmem:[%s959_s21 + $0xc0] sm:$0xff]  ;;  %v213_v16 = vld [vmem:[%s959_s21 + $0x58] sm:$0xff]  ;;  %v215_v22 = vld [vmem:[%s959_s21 + $0x68] sm:$0xff] }
  0x1e   : > { %839 = vmatprep.subr.bf16.mxu0 %v909_v4  ;;  %884 = vmatprep.subr.bf16.mxu1 %v909_v4  ;;  %v1038_v47 = vpack.c.bf16 %v311_v33, %v310_v32  ;;  %v292_v54 = vadd.f32 %v993_v10, %v255_v45  ;;  %v257_v55 = vmul.f32 %v986_v7, %v220_v42  ;;  %v214_v21 = vld [vmem:[%s959_s21 + $0x60] sm:$0xff]  ;;  %v314_v28 = vmax.f32 %v1034_v44, 0.0  ;;  %v228_v31 = vld [vmem:[%s959_s21 + $0xd0] sm:$0xff]  ;;  %v229_v32 = vld [vmem:[%s959_s21 + $0xd8] sm:$0xff] }
  0x1f   : > { %849 = vmatprep.mubr.bf16.mxu0 %v340_v23  ;;  %v258_v56 = vmul.f32 %v986_v7, %v221_v43  ;;  %v1053_v58 = vadd.f32 %v993_v10, %v246_v40  ;;  %v1056_v59 = vadd.f32 %v993_v10, %v247_v41  ;;  %v293_v60 = vadd.f32 %v993_v10, %v256_v50  ;;  %v230_v37 = vld [vmem:[%s959_s21 + $0xe0] sm:$0xff]  ;;  %v231_v38 = vld [vmem:[%s959_s21 + $0xe8] sm:$0xff] }
  0x20   : > { %v259_v61 = vmul.f32 %v986_v7, %v222_v46  ;;  %v324_v63 = vmax.f32 %v292_v54, 0.0  ;;  %v294_v0 = vadd.f32 %v993_v10, %v257_v55  ;;  %v260_v2 = vmul.f32 %v986_v7, %v223_v51 }
  0x21   : > { %840 = vmatpush3.bf16.msra.mxu0 %v909_v4  ;;  %892 = vmatpush3.bf16.msra.mxu1 %v909_v4  ;;  %v295_v1 = vadd.f32 %v993_v10, %v258_v56  ;;  %v1066_v4 = vadd.f32 %v993_v10, %v248_v49  ;;  %v325_v5 = vmax.f32 %v293_v60, 0.0  ;;  %v261_v8 = vmul.f32 %v986_v7, %v224_v57  ;;  %v216_v56 = vld [vmem:[%s959_s21 + $0x70] sm:$0xff]  ;;  %v217_v57 = vld [vmem:[%s959_s21 + $0x78] sm:$0xff] }
  0x22   : > { %841 = vmatprep.subr.bf16.mxu0 %v910_v18  ;;  %885 = vmatprep.subr.bf16.mxu1 %v910_v18  ;;  %v296_v6 = vadd.f32 %v993_v10, %v259_v61  ;;  %v326_v12 = vmax.f32 %v294_v0, 0.0  ;;  %v297_v14 = vadd.f32 %v993_v10, %v260_v2  ;;  %v262_v15 = vmul.f32 %v986_v7, %v225_v62  ;;  %v233_v2 = vld [vmem:[%s959_s21 + $0xf8] sm:$0xff] }
  0x23   : > { %v327_v13 = vmax.f32 %v295_v1, 0.0  ;;  %v348_v17 = vpack.c.bf16 %v325_v5, %v324_v63  ;;  %v298_v19 = vadd.f32 %v993_v10, %v261_v8  ;;  %v263_v20 = vmul.f32 %v986_v7, %v226_v3  ;;  %v232_v1 = vld [vmem:[%s959_s21 + $0xf0] sm:$0xff] }
  0x24   : > { %v329_v24 = vmax.f32 %v297_v14, 0.0  ;;  %v299_v25 = vadd.f32 %v993_v10, %v262_v15  ;;  %v264_v26 = vmul.f32 %v986_v7, %v227_v9  ;;  %v249_v29 = vmul.f32 %v986_v7, %v212_v11 }
  0x25   : > { %842 = vmatpush3.bf16.msra.mxu0 %v910_v18  ;;  %893 = vmatpush3.bf16.msra.mxu1 %v910_v18  ;;  %v328_v18 = vmax.f32 %v296_v6, 0.0  ;;  %v349_v23 = vpack.c.bf16 %v327_v13, %v326_v12  ;;  %v300_v30 = vadd.f32 %v993_v10, %v263_v20  ;;  %v315_v33 = vmax.f32 %v1053_v58, 0.0 }
  0x26   : > { %843 = vmatprep.subr.bf16.mxu0 %v911_v27  ;;  %886 = vmatprep.subr.bf16.mxu1 %v911_v27  ;;  %v250_v34 = vmul.f32 %v986_v7, %v213_v16  ;;  %v316_v39 = vmax.f32 %v1056_v59, 0.0  ;;  %v317_v40 = vmax.f32 %v1066_v4, 0.0  ;;  %v251_v41 = vmul.f32 %v986_v7, %v214_v21 }
  0x27   : > { %865 = vmatprep.mubr.bf16.mxu1 %v348_v17  ;;  %v350_v35 = vpack.c.bf16 %v329_v24, %v328_v18  ;;  %v252_v42 = vmul.f32 %v986_v7, %v215_v22  ;;  %v330_v43 = vmax.f32 %v298_v19, 0.0  ;;  %v331_v44 = vmax.f32 %v299_v25, 0.0 }
  0x28   : > { %v265_v45 = vmul.f32 %v986_v7, %v228_v31  ;;  %v266_v46 = vmul.f32 %v986_v7, %v229_v32  ;;  %v267_v50 = vmul.f32 %v986_v7, %v230_v37  ;;  %v268_v51 = vmul.f32 %v986_v7, %v231_v38 }
  0x29   : > { %844 = vmatpush3.bf16.msra.mxu0 %v911_v27  ;;  %894 = vmatpush3.bf16.msra.mxu1 %v911_v27  ;;  %v342_v27 = vpack.c.bf16 %v313_v53, %v312_v48  ;;  %v332_v48 = vmax.f32 %v300_v30, 0.0  ;;  %v287_v53 = vadd.f32 %v993_v10, %v250_v34  ;;  %v288_v54 = vadd.f32 %v993_v10, %v251_v41 }
  0x2a   : > { %845 = vmatprep.subr.bf16.mxu0 %v912_v36  ;;  %887 = vmatprep.subr.bf16.mxu1 %v912_v36  ;;  %v289_v55 = vadd.f32 %v993_v10, %v252_v42  ;;  %v351_v58 = vpack.c.bf16 %v331_v44, %v330_v43  ;;  %v302_v59 = vadd.f32 %v993_v10, %v265_v45 }
  0x2b   : > { %v303_v60 = vadd.f32 %v993_v10, %v266_v46  ;;  %v344_v61 = vpack.c.bf16 %v317_v40, %v316_v39  ;;  %v304_v63 = vadd.f32 %v993_v10, %v267_v50  ;;  %v305_v0 = vadd.f32 %v993_v10, %v268_v51 }
  0x2c   : > { %v319_v4 = vmax.f32 %v287_v53, 0.0  ;;  %v253_v5 = vmul.f32 %v986_v7, %v216_v56  ;;  %v254_v6 = vmul.f32 %v986_v7, %v217_v57  ;;  %v334_v8 = vmax.f32 %v302_v59, 0.0 }
  0x2d   : > { %846 = vmatpush3.bf16.msra.mxu0 %v912_v36  ;;  %895 = vmatpush3.bf16.msra.mxu1 %v912_v36  ;;  %v301_v36 = vadd.f32 %v993_v10, %v264_v26  ;;  %v335_v9 = vmax.f32 %v303_v60, 0.0  ;;  %v269_v11 = vmul.f32 %v986_v7, %v232_v1  ;;  %v270_v12 = vmul.f32 %v986_v7, %v233_v2 }
  0x2e   : > { %847 = vmatprep.subr.bf16.mxu0 %v913_v52  ;;  %888 = vmatprep.subr.bf16.mxu1 %v913_v52  ;;  %v320_v13 = vmax.f32 %v288_v54, 0.0  ;;  %v321_v14 = vmax.f32 %v289_v55, 0.0  ;;  %v336_v15 = vmax.f32 %v304_v63, 0.0  ;;  %v337_v16 = vmax.f32 %v305_v0, 0.0 }
  0x2f   : > { %v333_v49 = vmax.f32 %v301_v36, 0.0  ;;  %v290_v18 = vadd.f32 %v993_v10, %v253_v5  ;;  %v291_v19 = vadd.f32 %v993_v10, %v254_v6  ;;  %v353_v20 = vpack.c.bf16 %v335_v9, %v334_v8 }
  0x30   : > { %v306_v21 = vadd.f32 %v993_v10, %v269_v11  ;;  %v307_v22 = vadd.f32 %v993_v10, %v270_v12  ;;  %v354_v24 = vpack.c.bf16 %v337_v16, %v336_v15 }
  0x31   : > { %848 = vmatpush3.bf16.msra.mxu0 %v913_v52  ;;  %896 = vmatpush3.bf16.msra.mxu1 %v913_v52  ;;  %v286_v52 = vadd.f32 %v993_v10, %v249_v29  ;;  %v352_v62 = vpack.c.bf16 %v333_v49, %v332_v48  ;;  %v322_v7 = vmax.f32 %v290_v18, 0.0  ;;  %v323_v25 = vmax.f32 %v291_v19, 0.0 }
  0x32   : > { %v338_v26 = vmax.f32 %v306_v21, 0.0 }
  0x33   : > { %v318_v3 = vmax.f32 %v286_v52, 0.0 }
  0x34   : > { %850 = vmatmul.mubr.bf16.vlgmr.msra.gmra.mxu0 %v1038_v47  ;;  %866 = vmatmul.mubr.bf16.vlgmr.msra.gmra.mxu1 %v349_v23  ;;  %v343_v47 = vpack.c.bf16 %v315_v33, %v314_v28  ;;  %v346_v23 = vpack.c.bf16 %v321_v14, %v320_v13  ;;  %v347_v28 = vpack.c.bf16 %v323_v25, %v322_v7 }
  0x35   : > { %853 = vmatprep.mubr.bf16.mxu0 %v342_v27  ;;  %869 = vmatprep.mubr.bf16.mxu1 %v350_v35  ;;  %v345_v17 = vpack.c.bf16 %v319_v4, %v318_v3  ;;  %v339_v27 = vmax.f32 %v307_v22, 0.0 }
  0x37   : > { %v355_v29 = vpack.c.bf16 %v339_v27, %v338_v26 }
  0x3c   : > { %854 = vmatmul.mubr.bf16.gmra.mxu0 %v343_v47  ;;  %870 = vmatmul.mubr.bf16.gmra.mxu1 %v351_v58 }
  0x3d   : > { %857 = vmatprep.mubr.bf16.mxu0 %v344_v61  ;;  %873 = vmatprep.mubr.bf16.mxu1 %v352_v62 }
  0x44   : > { %858 = vmatmul.mubr.bf16.gmra.mxu0 %v345_v17  ;;  %874 = vmatmul.mubr.bf16.gmra.mxu1 %v353_v20 }
  0x45   : > { %861 = vmatprep.mubr.bf16.mxu0 %v346_v23  ;;  %877 = vmatprep.mubr.bf16.mxu1 %v354_v24 }
  0x4c   : > { %862 = vmatmul.mubr.bf16.gmra.mxu0 %v347_v28  ;;  %878 = vmatmul.mubr.bf16.gmra.mxu1 %v355_v29 }
  0xf4   : > { %v851_v10 = vpop.f32.mrf.mxu0  ;;  %v1120_v30 = vpop.f32.mrf.mxu1 }
  0xf5   : > { %583 = vst [vmem:[%s964_s24 + $0x10] sm:$0xff] %v851_v10  ;;  %599 = vst [vmem:[%s964_s24 + $0x90] sm:$0xff] %v1120_v30  ;;  %v653_v42 = vmul.f32 %v851_v10, %v851_v10 }
  0xf6   : > { %v454_v31 = vpop.f32.mrf.mxu0  ;;  %v1125_v32 = vpop.f32.mrf.mxu1 }
  0xf7   : > { %581 = vst [vmem:[%s964_s24] sm:$0xff] %v454_v31  ;;  %597 = vst [vmem:[%s964_s24 + $0x80] sm:$0xff] %v1125_v32  ;;  %v651_v37 = vmul.f32 %v454_v31, %v454_v31 }
  0xf8   : > { %v852_v33 = vpop.f32.mrf.mxu0  ;;  %v1130_v34 = vpop.f32.mrf.mxu1 }
  0xf9   : > { %584 = vst [vmem:[%s964_s24 + $0x18] sm:$0xff] %v852_v33  ;;  %600 = vst [vmem:[%s964_s24 + $0x98] sm:$0xff] %v1130_v34  ;;  %v654_v48 = vmul.f32 %v852_v33, %v852_v33 }
  0xfa   : > { %v457_v35 = vpop.f32.mrf.mxu0  ;;  %v1135_v36 = vpop.f32.mrf.mxu1 }
  0xfb   : > { %582 = vst [vmem:[%s964_s24 + $0x8] sm:$0xff] %v457_v35  ;;  %v614_v38 = vadd.f32 %v457_v35, %v454_v31  ;;  %v652_v39 = vmul.f32 %v457_v35, %v457_v35  ;;  %598 = vst [vmem:[%s964_s24 + $0x88] sm:$0xff] %v1135_v36 }
  0xfc   : > { %v855_v40 = vpop.f32.mrf.mxu0  ;;  %v1140_v41 = vpop.f32.mrf.mxu1 }
  0xfd   : > { %v615_v43 = vadd.f32 %v851_v10, %v614_v38  ;;  %v683_v44 = vadd.f32 %v652_v39, %v651_v37  ;;  %587 = vst [vmem:[%s964_s24 + $0x30] sm:$0xff] %v855_v40  ;;  %603 = vst [vmem:[%s964_s24 + $0xb0] sm:$0xff] %v1140_v41  ;;  %v657_v62 = vmul.f32 %v855_v40, %v855_v40 }
  0xfe   : > { %v470_v45 = vpop.f32.mrf.mxu0  ;;  %v1145_v46 = vpop.f32.mrf.mxu1 }
  0xff   : > { %v684_v49 = vadd.f32 %v683_v44, %v653_v42  ;;  %585 = vst [vmem:[%s964_s24 + $0x20] sm:$0xff] %v470_v45  ;;  %v616_v50 = vadd.f32 %v852_v33, %v615_v43  ;;  %601 = vst [vmem:[%s964_s24 + $0xa0] sm:$0xff] %v1145_v46  ;;  %v655_v53 = vmul.f32 %v470_v45, %v470_v45 }
 0x100   : > { %v856_v51 = vpop.f32.mrf.mxu0  ;;  %v1150_v47 = vpop.f32.mrf.mxu1 }
 0x101   : > { %v617_v52 = vadd.f32 %v616_v50, %v470_v45  ;;  %v685_v54 = vadd.f32 %v684_v49, %v654_v48  ;;  %588 = vst [vmem:[%s964_s24 + $0x38] sm:$0xff] %v856_v51  ;;  %604 = vst [vmem:[%s964_s24 + $0xb8] sm:$0xff] %v1150_v47  ;;  %v658_v3 = vmul.f32 %v856_v51, %v856_v51 }
 0x102   : > { %v473_v55 = vpop.f32.mrf.mxu0  ;;  %v1155_v56 = vpop.f32.mrf.mxu1  ;;  %v667_v49 = vmul.f32 %v1125_v32, %v1125_v32 }
 0x103   : > { %v686_v57 = vadd.f32 %v685_v54, %v655_v53  ;;  %586 = vst [vmem:[%s964_s24 + $0x28] sm:$0xff] %v473_v55  ;;  %v618_v58 = vadd.f32 %v617_v52, %v473_v55  ;;  %v656_v59 = vmul.f32 %v473_v55, %v473_v55  ;;  %602 = vst [vmem:[%s964_s24 + $0xa8] sm:$0xff] %v1155_v56 }
 0x104   : > { %v859_v60 = vpop.f32.mrf.mxu0  ;;  %v1160_v61 = vpop.f32.mrf.mxu1  ;;  %v668_v53 = vmul.f32 %v1135_v36, %v1135_v36  ;;  %v669_v55 = vmul.f32 %v1120_v30, %v1120_v30 }
 0x105   : > { %v619_v63 = vadd.f32 %v855_v40, %v618_v58  ;;  %v687_v0 = vadd.f32 %v686_v57, %v656_v59  ;;  %591 = vst [vmem:[%s964_s24 + $0x50] sm:$0xff] %v859_v60  ;;  %607 = vst [vmem:[%s964_s24 + $0xd0] sm:$0xff] %v1160_v61  ;;  %v661_v20 = vmul.f32 %v859_v60, %v859_v60 }
 0x106   : > { %v486_v1 = vpop.f32.mrf.mxu0  ;;  %v1165_v2 = vpop.f32.mrf.mxu1  ;;  %v670_v59 = vmul.f32 %v1130_v34, %v1130_v34 }
 0x107   : > { %v688_v4 = vadd.f32 %v687_v0, %v657_v62  ;;  %589 = vst [vmem:[%s964_s24 + $0x40] sm:$0xff] %v486_v1  ;;  %v620_v5 = vadd.f32 %v856_v51, %v619_v63  ;;  %605 = vst [vmem:[%s964_s24 + $0xc0] sm:$0xff] %v1165_v2  ;;  %v659_v11 = vmul.f32 %v486_v1, %v486_v1 }
 0x108   : > { %v860_v6 = vpop.f32.mrf.mxu0  ;;  %v1170_v8 = vpop.f32.mrf.mxu1  ;;  %v671_v63 = vmul.f32 %v1145_v46, %v1145_v46 }
 0x109   : > { %v621_v9 = vadd.f32 %v620_v5, %v486_v1  ;;  %v689_v12 = vadd.f32 %v688_v4, %v658_v3  ;;  %592 = vst [vmem:[%s964_s24 + $0x58] sm:$0xff] %v860_v6  ;;  %608 = vst [vmem:[%s964_s24 + $0xd8] sm:$0xff] %v1170_v8  ;;  %v662_v7 = vmul.f32 %v860_v6, %v860_v6 }
 0x10a   : > { %v489_v13 = vpop.f32.mrf.mxu0  ;;  %v1175_v14 = vpop.f32.mrf.mxu1  ;;  %v672_v3 = vmul.f32 %v1155_v56, %v1155_v56 }
 0x10b   : > { %v690_v15 = vadd.f32 %v689_v12, %v659_v11  ;;  %590 = vst [vmem:[%s964_s24 + $0x48] sm:$0xff] %v489_v13  ;;  %v622_v16 = vadd.f32 %v621_v9, %v489_v13  ;;  %v660_v17 = vmul.f32 %v489_v13, %v489_v13  ;;  %606 = vst [vmem:[%s964_s24 + $0xc8] sm:$0xff] %v1175_v14 }
 0x10c   : > { %v863_v18 = vpop.f32.mrf.mxu0  ;;  %v1180_v19 = vpop.f32.mrf.mxu1  ;;  %v675_v11 = vmul.f32 %v1165_v2, %v1165_v2 }
 0x10d   : > { %v623_v21 = vadd.f32 %v859_v60, %v622_v16  ;;  %v691_v22 = vadd.f32 %v690_v15, %v660_v17  ;;  %595 = vst [vmem:[%s964_s24 + $0x70] sm:$0xff] %v863_v18  ;;  %611 = vst [vmem:[%s964_s24 + $0xf0] sm:$0xff] %v1180_v19  ;;  %v665_v40 = vmul.f32 %v863_v18, %v863_v18 }
 0x10e   : > { %v502_v23 = vpop.f32.mrf.mxu0  ;;  %v566_v24 = vpop.f32.mrf.mxu1  ;;  %v676_v15 = vmul.f32 %v1175_v14, %v1175_v14 }
 0x10f   : > { %v692_v25 = vadd.f32 %v691_v22, %v661_v20  ;;  %593 = vst [vmem:[%s964_s24 + $0x60] sm:$0xff] %v502_v23  ;;  %v624_v26 = vadd.f32 %v860_v6, %v623_v21  ;;  %609 = vst [vmem:[%s964_s24 + $0xe0] sm:$0xff] %v566_v24  ;;  %v663_v10 = vmul.f32 %v502_v23, %v502_v23 }
 0x110   : > { %v864_v27 = vpop.f32.mrf.mxu0  ;;  %v1187_v28 = vpop.f32.mrf.mxu1  ;;  %v679_v21 = vmul.f32 %v566_v24, %v566_v24 }
 0x111   : > { %v625_v29 = vadd.f32 %v624_v26, %v502_v23  ;;  %v693_v31 = vadd.f32 %v692_v25, %v662_v7  ;;  %596 = vst [vmem:[%s964_s24 + $0x78] sm:$0xff] %v864_v27  ;;  %612 = vst [vmem:[%s964_s24 + $0xf8] sm:$0xff] %v1187_v28  ;;  %v666_v44 = vmul.f32 %v864_v27, %v864_v27 }
 0x112   : > { %v505_v33 = vpop.f32.mrf.mxu0  ;;  %v569_v35 = vpop.f32.mrf.mxu1 }
 0x113   : > { %v694_v37 = vadd.f32 %v693_v31, %v663_v10  ;;  %594 = vst [vmem:[%s964_s24 + $0x68] sm:$0xff] %v505_v33  ;;  %v626_v38 = vadd.f32 %v625_v29, %v505_v33  ;;  %v664_v39 = vmul.f32 %v505_v33, %v505_v33  ;;  %610 = vst [vmem:[%s964_s24 + $0xe8] sm:$0xff] %v569_v35 }
 0x114   : > { %v680_v25 = vmul.f32 %v569_v35, %v569_v35 }
 0x115   : > { %v627_v42 = vadd.f32 %v863_v18, %v626_v38  ;;  %v695_v43 = vadd.f32 %v694_v37, %v664_v39 }
 0x117   : > { %v628_v45 = vadd.f32 %v864_v27, %v627_v42  ;;  %v696_v48 = vadd.f32 %v695_v43, %v665_v40 }
 0x119   : > { %v697_v50 = vadd.f32 %v696_v48, %v666_v44  ;;  %v629_v51 = vadd.f32 %v628_v45, %v1125_v32 }
 0x11b   : > { %v630_v52 = vadd.f32 %v629_v51, %v1135_v36  ;;  %v698_v54 = vadd.f32 %v697_v50, %v667_v49 }
 0x11d   : > { %v631_v57 = vadd.f32 %v1120_v30, %v630_v52  ;;  %v699_v58 = vadd.f32 %v698_v54, %v668_v53  ;;  %v673_v30 = vmul.f32 %v1140_v41, %v1140_v41 }
 0x11f   : > { %v700_v60 = vadd.f32 %v699_v58, %v669_v55  ;;  %v632_v62 = vadd.f32 %v1130_v34, %v631_v57  ;;  %v674_v34 = vmul.f32 %v1150_v47, %v1150_v47 }
 0x121   : > { %v633_v32 = vadd.f32 %v632_v62, %v1145_v46  ;;  %v701_v0 = vadd.f32 %v700_v60, %v670_v59 }
 0x123   : > { %v702_v36 = vadd.f32 %v701_v0, %v671_v63  ;;  %v634_v1 = vadd.f32 %v633_v32, %v1155_v56 }
 0x125   : > { %v635_v4 = vadd.f32 %v1140_v41, %v634_v1  ;;  %v703_v5 = vadd.f32 %v702_v36, %v672_v3  ;;  %v677_v41 = vmul.f32 %v1160_v61, %v1160_v61 }
 0x127   : > { %v704_v6 = vadd.f32 %v703_v5, %v673_v30  ;;  %v636_v9 = vadd.f32 %v1150_v47, %v635_v4  ;;  %v678_v47 = vmul.f32 %v1170_v8, %v1170_v8 }
 0x129   : > { %v637_v46 = vadd.f32 %v636_v9, %v1165_v2  ;;  %v705_v12 = vadd.f32 %v704_v6, %v674_v34 }
 0x12b   : > { %v706_v13 = vadd.f32 %v705_v12, %v675_v11  ;;  %v638_v56 = vadd.f32 %v637_v46, %v1175_v14  ;;  %v681_v14 = vmul.f32 %v1180_v19, %v1180_v19 }
 0x12d   : > { %v639_v16 = vadd.f32 %v1160_v61, %v638_v56  ;;  %v707_v17 = vadd.f32 %v706_v13, %v676_v15  ;;  %v682_v61 = vmul.f32 %v1187_v28, %v1187_v28 }
 0x12f   : > { %v708_v18 = vadd.f32 %v707_v17, %v677_v41  ;;  %v640_v20 = vadd.f32 %v1170_v8, %v639_v16 }
 0x131   : > { %v641_v2 = vadd.f32 %v640_v20, %v566_v24  ;;  %v709_v22 = vadd.f32 %v708_v18, %v678_v47 }
 0x133   : > { %v710_v23 = vadd.f32 %v709_v22, %v679_v21  ;;  %v642_v7 = vadd.f32 %v641_v2, %v569_v35 }
 0x135   : > { %v643_v26 = vadd.f32 %v1180_v19, %v642_v7  ;;  %v711_v27 = vadd.f32 %v710_v23, %v680_v25  ;;  %v613_v19 = vld [vmem:[%s1249_s4] sm:$0x3] }
 0x137   : > { %v644_v29 = vadd.f32 %v1187_v28, %v643_v26  ;;  %v712_v10 = vadd.f32 %v711_v27, %v681_v14 }
 0x139   : > { %v645_v31 = vrot.slane %v644_v29, 4  ;;  %v713_v8 = vadd.f32 %v712_v10, %v682_v61 }
 0x13b   : > { %v646_v33 = vadd.f32 %v645_v31, %v644_v29  ;;  %v714_v24 = vrot.slane %v713_v8, 4 }
 0x13d   : > { %v647_v37 = vrot.slane %v646_v33, 2  ;;  %v715_v38 = vadd.f32 %v714_v24, %v713_v8 }
 0x13f   : > { %v648_v39 = vadd.f32 %v647_v37, %v646_v33  ;;  %v716_v35 = vrot.slane %v715_v38, 2 }
 0x141   : > { %v649_v40 = vrot.slane %v648_v39, 1  ;;  %v717_v42 = vadd.f32 %v716_v35, %v715_v38 }
 0x143   : > { %v718_v43 = vrot.slane %v717_v42, 1  ;;  %v650_v44 = vadd.f32 %v649_v40, %v648_v39 }
 0x145   : > { %v719_v45 = vadd.f32 %v718_v43, %v717_v42 }
 0x147   : > { %v721_v28 = vsel %vm720_vm0, %v650_v44, %v719_v45 }
 0x148   : > { %v722_v48 = vadd.f32 %v721_v28, %v613_v19 }
 0x14a   : > { %723 = vst [vmem:[%s1249_s4] sm:$0x3] %v722_v48 }
 0x14b PF: > { %s15_s15 = sadd.s32 1, %s920_s15  }
 0x14c   : > { %p12_p5 = scmp.ge.s32.totalorder %s15_s15, 4  }
 0x14e   :  { %14 = sbr.rel (!%p12_p5) target bundleno = 1 (0x1), region = 74 }

// kernel: bottleneck_forward.5
= control target key start
LH: loop header
LB: loop body
LE: loop exit
PB: predicated region body
PF: predicated region fallthrough
CT: control target
= control target key end

     0   :  { %s4396_s15 = smov 0   ;;  %s5892_s0 = inlined_call_operand.vmem [shape: f32[2,256,128], index: 0, kind: input, shape index: {}]   ;;  %s5893_s1 = inlined_call_operand.vmem [shape: f32[2,128], index: 1, kind: input, shape index: {}]   ;;  %s5894_s2 = inlined_call_operand.vmem [shape: bf16[9,128,128], index: 2, kind: input, shape index: {}]   ;;  %s5895_s3 = inlined_call_operand.vmem [shape: f32[2,256,128], index: 3, kind: output, shape index: {0}]   ;;  %s5896_s4 = inlined_call_operand.vmem [shape: f32[2,128], index: 4, kind: output, shape index: {1}]  }
   0x1 LB: > { %s3075_s16 = sadd.s32 4294967295, %s4366_s15   ;;  %p3079_p0 = scmp.ge.s32.totalorder %s4366_s15, 1  ;;  %s4366_s15 = sphi %s4396_s15, %s15_s15  }
   0x2   : > { %p160_p1 = scmp.lt.s32.totalorder %s4366_s15, 3 }
   0x4   : > { %p161_p2 = pnand %p3079_p0, %p160_p1 }
   0x6   : > { %164 = sbr.rel (%p161_p2) target bundleno = 562 (0x232), region = 32 }
   0xb   : > { %p186_p3 = scmp.lt.s32.totalorder %s3075_s16, 1  ;;  %p3084_p4 = scmp.ne.s32.totalorder %s3075_s16, 0 }
   0xd   : > { %s187_s17 = scalar_select %p186_p3, %s3075_s16, 1 }
   0xe   : > { %200 = sbr.rel (%p3084_p4) target bundleno = 21 (0x15), region = 36 }
   0xf   : > { %s3611_s18 = sshll.u32 %s187_s17, 8 }
  0x10   : > { %s4407_s21 = scalar_lea.vmem %s5892_s0, %s3611_s18  ;;  %s4412_s24 = scalar_lea.vmem %s5895_s3, %s3611_s18 }
  0x13   : > { %v4368_v0 = vmov 0.0  }
  0x14   : > { %201 = vst [vmem:[%s5896_s4] sm:$0x3] %v4368_v0 }
  0x15 PF: > { %v4288_v1 = vld [vmem:[%s5894_s2 + $0xf8] sm:$0xff]   ;;  %v4289_v2 = vld [vmem:[%s5894_s2 + $0xf0] sm:$0xff]   ;;  %v4290_v3 = vld [vmem:[%s5894_s2 + $0xe8] sm:$0xff]   ;;  %vm372_vm0 = vcmask 1040384   ;;  %vm1985_vm1 = vcmask 1046528   ;;  %vm4369_vm3 = vmmov 1  }
  0x16   : > { %3829 = vmatprep.subr.bf16.mxu0 %v4288_v1  ;;  %4261 = vmatprep.subr.bf16.mxu1 %v4288_v1  ;;  %v4291_v4 = vld [vmem:[%s5894_s2 + $0xe0] sm:$0xff]   ;;  %v203_v6 = vld [vmem:[%s4407_s21 + $0x8] sm:$0xff]  ;;  %v204_v14 = vld [vmem:[%s4407_s21 + $0x10] sm:$0xff] }
  0x17   : > { %3830 = vmatpush3.bf16.msra.mxu0 %v4288_v1  ;;  %4269 = vmatpush3.bf16.msra.mxu1 %v4288_v1  ;;  %v202_v5 = vld [vmem:[%s4407_s21] sm:$0xff]  ;;  %v219_v12 = vld [vmem:[%s4407_s21 + $0x88] sm:$0xff]  ;;  %v4292_v15 = vld [vmem:[%s5894_s2 + $0xd8] sm:$0xff]  }
  0x18   : > { %3831 = vmatprep.subr.bf16.mxu0 %v4289_v2  ;;  %4262 = vmatprep.subr.bf16.mxu1 %v4289_v2  ;;  %v4434_v7 = vld [vmem:[%s5893_s1] ss:$0 sm:$0xff]  ;;  %v4441_v10 = vld [vmem:[%s5893_s1 + $0x1] ss:$0 sm:$0xff]  ;;  %v205_v19 = vld [vmem:[%s4407_s21 + $0x18] sm:$0xff] }
  0x19   : > { %v239_v8 = vmul.f32 %v4434_v7, %v202_v5  ;;  %v240_v9 = vmul.f32 %v4434_v7, %v203_v6  ;;  %v218_v11 = vld [vmem:[%s4407_s21 + $0x80] sm:$0xff]  ;;  %v256_v18 = vmul.f32 %v4434_v7, %v219_v12  ;;  %v220_v20 = vld [vmem:[%s4407_s21 + $0x90] sm:$0xff]  ;;  %v241_v22 = vmul.f32 %v4434_v7, %v204_v14  ;;  %v221_v24 = vld [vmem:[%s4407_s21 + $0x98] sm:$0xff] }
  0x1a   : > { %v255_v13 = vmul.f32 %v4434_v7, %v218_v11  ;;  %v242_v23 = vmul.f32 %v4434_v7, %v205_v19  ;;  %v257_v28 = vmul.f32 %v4434_v7, %v220_v20  ;;  %v4293_v29 = vld [vmem:[%s5894_s2 + $0xd0] sm:$0xff]   ;;  %v258_v33 = vmul.f32 %v4434_v7, %v221_v24  ;;  %vm4476_vm2 = vmneg %vm372_vm0  ;;  %v206_v47 = vld [vmem:[%s4407_s21 + $0x20] sm:$0xff] }
  0x1b   : > { %3832 = vmatpush3.bf16.msra.mxu0 %v4289_v2  ;;  %4270 = vmatpush3.bf16.msra.mxu1 %v4289_v2  ;;  %v276_v16 = vadd.f32 %v4441_v10, %v239_v8  ;;  %v277_v17 = vadd.f32 %v4441_v10, %v240_v9  ;;  %v293_v27 = vadd.f32 %v4441_v10, %v256_v18  ;;  %vm4501_vm4 = vmpackc.low %vm4369_vm3, %vm4476_vm2  ;;  %v207_v53 = vld [vmem:[%s4407_s21 + $0x28] sm:$0xff]  ;;  %v222_v54 = vld [vmem:[%s4407_s21 + $0xa0] sm:$0xff] }
  0x1c   : > { %3833 = vmatprep.subr.bf16.mxu0 %v4290_v3  ;;  %4263 = vmatprep.subr.bf16.mxu1 %v4290_v3  ;;  %v292_v21 = vadd.f32 %v4441_v10, %v255_v13  ;;  %v278_v31 = vadd.f32 %v4441_v10, %v241_v22  ;;  %v279_v32 = vadd.f32 %v4441_v10, %v242_v23  ;;  %v4294_v55 = vld [vmem:[%s5894_s2 + $0xc8] sm:$0xff]   ;;  %v208_v61 = vld [vmem:[%s4407_s21 + $0x30] sm:$0xff]  ;;  %v209_v1 = vld [vmem:[%s4407_s21 + $0x38] sm:$0xff] }
  0x1d   : > { %v4459_v25 = vmax.f32 %v276_v16, 0.0  ;;  %v4461_v26 = vmax.f32 %v277_v17, 0.0  ;;  %v4482_v39 = vmax.f32 %v293_v27, 0.0  ;;  %v294_v45 = vadd.f32 %v4441_v10, %v257_v28  ;;  %v223_v60 = vld [vmem:[%s4407_s21 + $0xa8] sm:$0xff]  ;;  %v224_v6 = vld [vmem:[%s4407_s21 + $0xb0] sm:$0xff]  ;;  %v225_v16 = vld [vmem:[%s4407_s21 + $0xb8] sm:$0xff] }
  0x1e   : > { %v4468_v30 = vmax.f32 %v292_v21, 0.0  ;;  %v4485_v41 = vmax.f32 %v278_v31, 0.0  ;;  %v4487_v42 = vmax.f32 %v279_v32, 0.0  ;;  %v295_v46 = vadd.f32 %v4441_v10, %v258_v33  ;;  %v4295_v17 = vld [vmem:[%s5894_s2 + $0xc0] sm:$0xff]   ;;  %v4297_v31 = vld [vmem:[%s5894_s2 + $0x1b8] sm:$0xff]   ;;  %v211_v36 = vld [vmem:[%s4407_s21 + $0x48] sm:$0xff] }
  0x1f   : > { %3834 = vmatpush3.bf16.msra.mxu0 %v4290_v3  ;;  %4271 = vmatpush3.bf16.msra.mxu1 %v4290_v3  ;;  %v373_v34 = vrot.slane %v4459_v25, 7  ;;  %v374_v35 = vrot.slane %v4461_v26, 7  ;;  %v1986_v37 = vrot.slane %v4459_v25, 1  ;;  %v5897_v38 = vrot.slane %v4461_v26, 1  ;;  %v210_v28 = vld [vmem:[%s4407_s21 + $0x40] sm:$0xff]  ;;  %v4332_v48 = vld [vmem:[%s5894_s2 + $0x1e8] sm:$0xff]   ;;  %vm5140_vm5 = vmpackc.low %vm1985_vm1, %vm4369_vm3 }
  0x20   : > { %3835 = vmatprep.subr.bf16.mxu0 %v4291_v4  ;;  %4264 = vmatprep.subr.bf16.mxu1 %v4291_v4  ;;  %v397_v40 = vrot.slane %v4468_v30, 7  ;;  %v398_v50 = vrot.slane %v4482_v39, 7  ;;  %v376_v51 = vrot.slane %v4485_v41, 7  ;;  %v377_v52 = vrot.slane %v4487_v42, 7 }
  0x21   : > { %v375_v43 = vsel %vm372_vm0, %v373_v34, %v374_v35  ;;  %v4493_v44 = vsel %vm1985_vm1, %v1986_v37, %v5897_v38  ;;  %v4515_v56 = vmax.f32 %v294_v45, 0.0  ;;  %v4517_v57 = vmax.f32 %v295_v46, 0.0  ;;  %v226_v46 = vld [vmem:[%s4407_s21 + $0xc0] sm:$0xff] }
  0x22   : > { %v4505_v49 = vpack.c.bf16 %v375_v43, %v373_v34  ;;  %v243_v58 = vmul.f32 %v4434_v7, %v206_v47  ;;  %v244_v59 = vmul.f32 %v4434_v7, %v207_v53  ;;  %v399_v62 = vsel %vm372_vm0, %v397_v40, %v398_v50  ;;  %v227_v53 = vld [vmem:[%s4407_s21 + $0xc8] sm:$0xff] }
  0x23   : > { %3836 = vmatpush3.bf16.msra.mxu0 %v4291_v4  ;;  %4272 = vmatpush3.bf16.msra.mxu1 %v4291_v4  ;;  %v378_v63 = vsel %vm372_vm0, %v376_v51, %v377_v52  ;;  %v259_v0 = vmul.f32 %v4434_v7, %v222_v54  ;;  %v4530_v2 = vpack.c.bf16 %v399_v62, %v397_v40  ;;  %v400_v4 = vrot.slane %v4515_v56, 7 }
  0x24   : > { %3837 = vmatprep.subr.bf16.mxu0 %v4292_v15  ;;  %4265 = vmatprep.subr.bf16.mxu1 %v4292_v15  ;;  %v4532_v3 = vpack.c.bf16 %v378_v63, %v376_v51  ;;  %v401_v5 = vrot.slane %v4517_v57, 7  ;;  %v280_v8 = vadd.f32 %v4441_v10, %v243_v58  ;;  %v281_v9 = vadd.f32 %v4441_v10, %v244_v59 }
  0x25   : > { %3845 = vmatprep.mubr.msk.bf16.mxu0 %vm4501_vm4, %v4505_v49  ;;  %v260_v11 = vmul.f32 %v4434_v7, %v223_v60  ;;  %v296_v12 = vadd.f32 %v4441_v10, %v259_v0  ;;  %v245_v14 = vmul.f32 %v4434_v7, %v208_v61  ;;  %3861 = vmatprep.mubr.msk.bf16.mxu1 %vm4501_vm4, %v4530_v2  ;;  %v212_v60 = vld [vmem:[%s4407_s21 + $0x50] sm:$0xff] }
  0x26   : > { %v402_v13 = vsel %vm372_vm0, %v400_v4, %v401_v5  ;;  %v4550_v19 = vmax.f32 %v280_v8, 0.0  ;;  %v4552_v20 = vmax.f32 %v281_v9, 0.0  ;;  %v261_v27 = vmul.f32 %v4434_v7, %v224_v6  ;;  %v228_v9 = vld [vmem:[%s4407_s21 + $0xd0] sm:$0xff] }
  0x27   : > { %3838 = vmatpush3.bf16.msra.mxu0 %v4292_v15  ;;  %4273 = vmatpush3.bf16.msra.mxu1 %v4292_v15  ;;  %v246_v15 = vmul.f32 %v4434_v7, %v209_v1  ;;  %v4548_v18 = vpack.c.bf16 %v402_v13, %v400_v4  ;;  %v297_v21 = vadd.f32 %v4441_v10, %v260_v11  ;;  %v4558_v22 = vmax.f32 %v296_v12, 0.0  ;;  %v213_v1 = vld [vmem:[%s4407_s21 + $0x58] sm:$0xff]  ;;  %v4298_v11 = vld [vmem:[%s5894_s2 + $0x30] sm:$0xff]  }
  0x28   : > { %3839 = vmatprep.subr.bf16.mxu0 %v4293_v29  ;;  %4266 = vmatprep.subr.bf16.mxu1 %v4293_v29  ;;  %v282_v23 = vadd.f32 %v4441_v10, %v245_v14  ;;  %v379_v32 = vrot.slane %v4550_v19, 7  ;;  %v380_v33 = vrot.slane %v4552_v20, 7  ;;  %v262_v35 = vmul.f32 %v4434_v7, %v225_v16  ;;  %v4299_v12 = vld [vmem:[%s5894_s2 + $0x1b0] sm:$0xff]  }
  0x29   : > { %v283_v24 = vadd.f32 %v4441_v10, %v246_v15  ;;  %v4572_v34 = vmax.f32 %v297_v21, 0.0  ;;  %v403_v37 = vrot.slane %v4558_v22, 7  ;;  %v298_v45 = vadd.f32 %v4441_v10, %v261_v27  ;;  %v229_v27 = vld [vmem:[%s4407_s21 + $0xd8] sm:$0xff] }
  0x2a   : > { %v4577_v40 = vmax.f32 %v282_v23, 0.0  ;;  %v381_v47 = vsel %vm372_vm0, %v379_v32, %v380_v33  ;;  %v299_v51 = vadd.f32 %v4441_v10, %v262_v35  ;;  %v247_v52 = vmul.f32 %v4434_v7, %v210_v28  ;;  %v4301_v33 = vld [vmem:[%s5894_s2 + $0x1a8] sm:$0xff]  }
  0x2b   : > { %3840 = vmatpush3.bf16.msra.mxu0 %v4293_v29  ;;  %4274 = vmatpush3.bf16.msra.mxu1 %v4293_v29  ;;  %v4296_v29 = vld [vmem:[%s5894_s2 + $0x38] sm:$0xff]   ;;  %v4579_v43 = vmax.f32 %v283_v24, 0.0  ;;  %v404_v50 = vrot.slane %v4572_v34, 7  ;;  %v4588_v54 = vpack.c.bf16 %v381_v47, %v379_v32  ;;  %v4592_v59 = vmax.f32 %v298_v45, 0.0  ;;  %v4300_v32 = vld [vmem:[%s5894_s2 + $0x28] sm:$0xff]   ;;  %v214_v45 = vld [vmem:[%s4407_s21 + $0x60] sm:$0xff] }
  0x2c   : > { %3841 = vmatprep.subr.bf16.mxu0 %v4294_v55  ;;  %4267 = vmatprep.subr.bf16.mxu1 %v4294_v55  ;;  %v4596_v62 = vmax.f32 %v299_v51, 0.0  ;;  %v248_v63 = vmul.f32 %v4434_v7, %v211_v36  ;;  %v284_v0 = vadd.f32 %v4441_v10, %v247_v52  ;;  %v263_v8 = vmul.f32 %v4434_v7, %v226_v46  ;;  %v215_v52 = vld [vmem:[%s4407_s21 + $0x68] sm:$0xff] }
  0x2d   : > { %v383_v58 = vrot.slane %v4579_v43, 7  ;;  %v405_v61 = vsel %vm372_vm0, %v403_v37, %v404_v50  ;;  %v406_v6 = vrot.slane %v4592_v59, 7  ;;  %v249_v23 = vmul.f32 %v4434_v7, %v212_v60 }
  0x2e   : > { %v4601_v4 = vpack.c.bf16 %v405_v61, %v403_v37  ;;  %v407_v14 = vrot.slane %v4596_v62, 7  ;;  %v285_v15 = vadd.f32 %v4441_v10, %v248_v63  ;;  %v4617_v16 = vmax.f32 %v284_v0, 0.0 }
  0x2f   : > { %3842 = vmatpush3.bf16.msra.mxu0 %v4294_v55  ;;  %4275 = vmatpush3.bf16.msra.mxu1 %v4294_v55  ;;  %v382_v55 = vrot.slane %v4577_v40, 7  ;;  %v300_v21 = vadd.f32 %v4441_v10, %v263_v8  ;;  %v250_v24 = vmul.f32 %v4434_v7, %v213_v1  ;;  %v265_v37 = vmul.f32 %v4434_v7, %v228_v9  ;;  %v231_v1 = vld [vmem:[%s4407_s21 + $0xe8] sm:$0xff] }
  0x30   : > { %3843 = vmatprep.subr.bf16.mxu0 %v4295_v17  ;;  %4268 = vmatprep.subr.bf16.mxu1 %v4295_v17  ;;  %v408_v28 = vsel %vm372_vm0, %v406_v6, %v407_v14  ;;  %v4637_v35 = vmax.f32 %v285_v15, 0.0  ;;  %v385_v36 = vrot.slane %v4617_v16, 7  ;;  %v286_v51 = vadd.f32 %v4441_v10, %v249_v23 }
  0x31   : > { %v384_v5 = vsel %vm372_vm0, %v382_v55, %v383_v58  ;;  %v4642_v46 = vpack.c.bf16 %v408_v28, %v406_v6  ;;  %v4645_v50 = vmax.f32 %v300_v21, 0.0  ;;  %v266_v58 = vmul.f32 %v4434_v7, %v229_v27  ;;  %v4303_v6 = vld [vmem:[%s5894_s2 + $0x1a0] sm:$0xff]  }
  0x32   : > { %v4613_v13 = vpack.c.bf16 %v384_v5, %v382_v55  ;;  %v287_v55 = vadd.f32 %v4441_v10, %v250_v24  ;;  %v4663_v63 = vmax.f32 %v286_v51, 0.0  ;;  %v251_v0 = vmul.f32 %v4434_v7, %v214_v45  ;;  %v4302_v5 = vld [vmem:[%s5894_s2 + $0x20] sm:$0xff]  }
  0x33   : > { %3844 = vmatpush3.bf16.msra.mxu0 %v4295_v17  ;;  %4276 = vmatpush3.bf16.msra.mxu1 %v4295_v17  ;;  %v264_v17 = vmul.f32 %v4434_v7, %v227_v53  ;;  %v386_v53 = vrot.slane %v4637_v35, 7  ;;  %v409_v61 = vrot.slane %v4645_v50, 7  ;;  %v303_v14 = vadd.f32 %v4441_v10, %v266_v58 }
  0x34   : > { %3877 = vmatprep.subr.bf16.mxu1 %v4296_v29  ;;  %3925 = vmatprep.subr.bf16.mxu0 %v4297_v31  ;;  %v4674_v9 = vmax.f32 %v287_v55, 0.0  ;;  %v388_v23 = vrot.slane %v4663_v63, 7  ;;  %v252_v24 = vmul.f32 %v4434_v7, %v215_v52  ;;  %v268_v51 = vmul.f32 %v4434_v7, %v231_v1  ;;  %v217_v52 = vld [vmem:[%s4407_s21 + $0x78] sm:$0xff] }
  0x35   : > { %v301_v47 = vadd.f32 %v4441_v10, %v264_v17  ;;  %v387_v8 = vsel %vm372_vm0, %v385_v36, %v386_v53  ;;  %v4685_v28 = vmax.f32 %v303_v14, 0.0 }
  0x36   : > { %3846 = vmatmul.mubr.msk.bf16.vlgmr.msra.gmra.mxu0 %vm4501_vm4, %v4532_v3  ;;  %3862 = vmatmul.mubr.msk.bf16.vlgmr.msra.gmra.mxu1 %vm4501_vm4, %v4548_v18  ;;  %v4679_v17 = vpack.c.bf16 %v387_v8, %v385_v36  ;;  %v389_v27 = vrot.slane %v4674_v9, 7  ;;  %v289_v45 = vadd.f32 %v4441_v10, %v252_v24  ;;  %v305_v14 = vadd.f32 %v4441_v10, %v268_v51 }
  0x37   : > { %3878 = vmatpush3.bf16.msra.mxu1 %v4296_v29  ;;  %3926 = vmatpush3.bf16.msra.mxu0 %v4297_v31  ;;  %v302_v29 = vadd.f32 %v4441_v10, %v265_v37  ;;  %v230_v31 = vld [vmem:[%s4407_s21 + $0xe0] sm:$0xff]  ;;  %v4660_v60 = vmax.f32 %v301_v47, 0.0  ;;  %5910 = vst [vmem:[#allocation2_spill] sm:$0xff] %v4685_v28  ;;  %v413_v58 = vrot.slane %v4685_v28, 7 }
  0x38   : > { %3879 = vmatprep.subr.bf16.mxu1 %v4298_v11  ;;  %3927 = vmatprep.subr.bf16.mxu0 %v4299_v12  ;;  %v267_v47 = vmul.f32 %v4434_v7, %v230_v31  ;;  %v390_v55 = vsel %vm372_vm0, %v388_v23, %v389_v27  ;;  %v4713_v8 = vmax.f32 %v289_v45, 0.0  ;;  %v4305_v27 = vld [vmem:[%s5894_s2 + $0x198] sm:$0xff]   ;;  %v4311_v28 = vld [vmem:[%s5894_s2 + $0x180] sm:$0xff]  }
  0x39   : > { %3849 = vmatprep.mubr.msk.bf16.mxu0 %vm4501_vm4, %v4588_v54  ;;  %3865 = vmatprep.mubr.msk.bf16.mxu1 %vm4501_vm4, %v4601_v4  ;;  %v4677_v15 = vmax.f32 %v302_v29, 0.0  ;;  %v410_v21 = vrot.slane %v4660_v60, 7  ;;  %v4304_v29 = vld [vmem:[%s5894_s2 + $0x18] sm:$0xff]   ;;  %v4711_v1 = vpack.c.bf16 %v390_v55, %v388_v23  ;;  %v254_v23 = vmul.f32 %v4434_v7, %v217_v52 }
  0x3b   : > { %3880 = vmatpush3.bf16.msra.mxu1 %v4298_v11  ;;  %3928 = vmatpush3.bf16.msra.mxu0 %v4299_v12  ;;  %v412_v37 = vrot.slane %v4677_v15, 7  ;;  %v288_v11 = vadd.f32 %v4441_v10, %v251_v0  ;;  %v216_v12 = vld [vmem:[%s4407_s21 + $0x70] sm:$0xff]  ;;  %v411_v36 = vsel %vm372_vm0, %v409_v61, %v410_v21  ;;  %v233_v21 = vld [vmem:[%s4407_s21 + $0xf8] sm:$0xff]  ;;  %v291_v51 = vadd.f32 %v4441_v10, %v254_v23 }
  0x3c   : > { %3881 = vmatprep.subr.bf16.mxu1 %v4300_v32  ;;  %3929 = vmatprep.subr.bf16.mxu0 %v4301_v33  ;;  %v4701_v53 = vpack.c.bf16 %v411_v36, %v409_v61  ;;  %v232_v0 = vld [vmem:[%s4407_s21 + $0xf0] sm:$0xff]  ;;  %v304_v61 = vadd.f32 %v4441_v10, %v267_v47  ;;  %v392_v36 = vrot.slane %v4713_v8, 7  ;;  %v4736_v47 = vmax.f32 %v305_v14, 0.0 }
  0x3d   : > { %v4708_v31 = vmax.f32 %v288_v11, 0.0  ;;  %v414_v24 = vsel %vm372_vm0, %v412_v37, %v413_v58  ;;  %v269_v52 = vmul.f32 %v4434_v7, %v232_v0  ;;  %v270_v55 = vmul.f32 %v4434_v7, %v233_v21  ;;  %v4306_v0 = vld [vmem:[%s5894_s2 + $0x10] sm:$0xff]  }
  0x3e   : > { %3850 = vmatmul.mubr.msk.bf16.gmra.mxu0 %vm4501_vm4, %v4613_v13  ;;  %3866 = vmatmul.mubr.msk.bf16.gmra.mxu1 %vm4501_vm4, %v4642_v46  ;;  %v4731_v11 = vpack.c.bf16 %v414_v24, %v412_v37  ;;  %v4734_v45 = vmax.f32 %v304_v61, 0.0  ;;  %5912 = vst [vmem:[#allocation4_spill] sm:$0xff] %v4736_v47  ;;  %v416_v24 = vrot.slane %v4736_v47, 7  ;;  %v4747_v61 = vpack.c.bf16 %v4461_v26, %v4459_v25  ;;  %v4310_v47 = vld [vmem:[%s5894_s2] sm:$0xff]  }
  0x3f   : > { %3882 = vmatpush3.bf16.msra.mxu1 %v4300_v32  ;;  %3930 = vmatpush3.bf16.msra.mxu0 %v4301_v33  ;;  %v391_v32 = vrot.slane %v4708_v31, 7  ;;  %v253_v33 = vmul.f32 %v4434_v7, %v216_v12  ;;  %v4307_v7 = vld [vmem:[%s5894_s2 + $0x190] sm:$0xff]   ;;  %v4759_v14 = vmax.f32 %v291_v51, 0.0  ;;  %v306_v21 = vadd.f32 %v4441_v10, %v269_v52 }
  0x40   : > { %3883 = vmatprep.subr.bf16.mxu1 %v4302_v5  ;;  %3931 = vmatprep.subr.bf16.mxu0 %v4303_v6  ;;  %5911 = vst [vmem:[#allocation3_spill] sm:$0xff] %v4734_v45  ;;  %v415_v37 = vrot.slane %v4734_v45, 7  ;;  %v4766_v23 = vpack.c.bf16 %v4487_v42, %v4485_v41 }
  0x41   : > { %3853 = vmatprep.mubr.msk.bf16.mxu0 %vm4501_vm4, %v4679_v17  ;;  %3869 = vmatprep.mubr.msk.bf16.mxu1 %vm4501_vm4, %v4701_v53  ;;  %v290_v12 = vadd.f32 %v4441_v10, %v253_v33  ;;  %v393_v58 = vsel %vm372_vm0, %v391_v32, %v392_v36  ;;  %v307_v33 = vadd.f32 %v4441_v10, %v270_v55  ;;  %v4782_v51 = vmax.f32 %v306_v21, 0.0  ;;  %v4308_v55 = vld [vmem:[%s5894_s2 + $0x8] sm:$0xff]  }
  0x42   : > { %v417_v25 = vsel %vm372_vm0, %v415_v37, %v416_v24  ;;  %v4770_v36 = vpack.c.bf16 %v4552_v20, %v4550_v19  ;;  %v4799_v24 = vpack.c.bf16 %v4674_v9, %v4663_v63  ;;  %v4309_v21 = vld [vmem:[%s5894_s2 + $0x188] sm:$0xff]  }
  0x43   : > { %3884 = vmatpush3.bf16.msra.mxu1 %v4302_v5  ;;  %3932 = vmatpush3.bf16.msra.mxu0 %v4303_v6  ;;  %v4755_v5 = vpack.c.bf16 %v393_v58, %v391_v32  ;;  %v4757_v6 = vmax.f32 %v290_v12, 0.0  ;;  %v4778_v32 = vpack.c.bf16 %v417_v25, %v415_v37  ;;  %v395_v12 = vrot.slane %v4759_v14, 7  ;;  %5913 = vst [vmem:[#allocation5_spill] sm:$0xff] %v4782_v51 }
  0x44   : > { %3885 = vmatprep.subr.bf16.mxu1 %v4304_v29  ;;  %3933 = vmatprep.subr.bf16.mxu0 %v4305_v27  ;;  %v4784_v52 = vmax.f32 %v307_v33, 0.0  ;;  %v4791_v58 = vpack.c.bf16 %v4579_v43, %v4577_v40  ;;  %v4795_v37 = vpack.c.bf16 %v4637_v35, %v4617_v16  ;;  %v4808_v25 = vpack.c.bf16 %v4713_v8, %v4708_v31 }
  0x45   : > { %v394_v10 = vrot.slane %v4757_v6, 7  ;;  %v4812_v33 = vpack.c.bf16 %v4759_v14, %v4757_v6 }
  0x46   : > { %3854 = vmatmul.mubr.msk.bf16.gmra.mxu0 %vm4501_vm4, %v4711_v1  ;;  %3870 = vmatmul.mubr.msk.bf16.gmra.mxu1 %vm4501_vm4, %v4731_v11 }
  0x47   : > { %3886 = vmatpush3.bf16.msra.mxu1 %v4304_v29  ;;  %3934 = vmatpush3.bf16.msra.mxu0 %v4305_v27  ;;  %v396_v29 = vsel %vm372_vm0, %v394_v10, %v395_v12  ;;  %v418_v27 = vrot.slane %v4782_v51, 7  ;;  %v419_v12 = vrot.slane %v4784_v52, 7 }
  0x48   : > { %3887 = vmatprep.subr.bf16.mxu1 %v4306_v0  ;;  %3935 = vmatprep.subr.bf16.mxu0 %v4307_v7  ;;  %v4821_v38 = vpack.c.bf16 %v396_v29, %v394_v10  ;;  %v4370_v10 = vmov 0.0|0.0  }
  0x49   : > { %3857 = vmatprep.mubr.msk.bf16.mxu0 %vm4501_vm4, %v4755_v5  ;;  %3873 = vmatprep.mubr.msk.bf16.mxu1 %vm4501_vm4, %v4778_v32  ;;  %v420_v51 = vsel %vm372_vm0, %v418_v27, %v419_v12  ;;  %v4318_v12 = vld [vmem:[%s5894_s2 + $0x60] sm:$0xff]  }
  0x4a   : > { %v4827_v45 = vpack.c.bf16 %v420_v51, %v418_v27  ;;  %v4314_v51 = vld [vmem:[%s5894_s2 + $0x70] sm:$0xff]  }
  0x4b   : > { %3888 = vmatpush3.bf16.msra.mxu1 %v4306_v0  ;;  %3936 = vmatpush3.bf16.msra.mxu0 %v4307_v7  ;;  %v4312_v0 = vld [vmem:[%s5894_s2 + $0x78] sm:$0xff]   ;;  %v4315_v27 = vld [vmem:[%s5894_s2 + $0x130] sm:$0xff]  }
  0x4c   : > { %3889 = vmatprep.subr.bf16.mxu1 %v4308_v55  ;;  %3937 = vmatprep.subr.bf16.mxu0 %v4309_v21  ;;  %v4313_v7 = vld [vmem:[%s5894_s2 + $0x138] sm:$0xff]  }
  0x4e   : > { %3858 = vmatmul.mubr.msk.bf16.gmra.mxu0 %vm4501_vm4, %v4821_v38  ;;  %3874 = vmatmul.mubr.msk.bf16.gmra.mxu1 %vm4501_vm4, %v4827_v45 }
  0x4f   : > { %3890 = vmatpush3.bf16.msra.mxu1 %v4308_v55  ;;  %3938 = vmatpush3.bf16.msra.mxu0 %v4309_v21  ;;  %v5914_v55 = vrot.slane %v4461_v26, 1  ;;  %v4316_v26 = vld [vmem:[%s5894_s2 + $0x68] sm:$0xff]   ;;  %v1993_v21 = vrot.slane %v4552_v20, 1  ;;  %v4320_v20 = vld [vmem:[%s5894_s2 + $0x58] sm:$0xff]  }
  0x50   : > { %3891 = vmatprep.subr.bf16.mxu1 %v4310_v47  ;;  %3939 = vmatprep.subr.bf16.mxu0 %v4311_v28 }
  0x51   : > { %3893 = vmatprep.mubr.bf16.mxu1 %v4370_v10  ;;  %3941 = vmatprep.mubr.msk.bf16.mxu0 %vm4501_vm4, %v4532_v3  ;;  %v4854_v29 = vpack.c.bf16 %v5914_v55, %v4493_v44  ;;  %v4317_v44 = vld [vmem:[%s5894_s2 + $0x128] sm:$0xff]   ;;  %v1999_v55 = vrot.slane %v4637_v35, 1 }
  0x52   : > { %v4325_v35 = vld [vmem:[%s5894_s2 + $0x108] sm:$0xff]  }
  0x53   : > { %3892 = vmatpush3.bf16.msra.mxu1 %v4310_v47  ;;  %3940 = vmatpush3.bf16.msra.mxu0 %v4311_v28  ;;  %v1990_v28 = vrot.slane %v4487_v42, 1  ;;  %v1992_v47 = vrot.slane %v4550_v19, 1 }
  0x54   : > { %3973 = vmatprep.subr.bf16.mxu1 %v4312_v0  ;;  %4021 = vmatprep.subr.bf16.mxu0 %v4313_v7 }
  0x55   : > { %v1994_v42 = vsel %vm1985_vm1, %v1992_v47, %v1993_v21  ;;  %v2004_v47 = vrot.slane %v4708_v31, 1  ;;  %v2007_v31 = vrot.slane %v4757_v6, 1  ;;  %v4339_v6 = vld [vmem:[%s5894_s2 + $0x90] sm:$0xff]  }
  0x56   : > { %3894 = vmatmul.mubr.msk.bf16.vlgmr.msra.gmra.mxu1 %vm4501_vm4, %v4505_v49  ;;  %3942 = vmatmul.mubr.msk.bf16.vlgmr.msra.gmra.mxu0 %vm4501_vm4, %v4588_v54  ;;  %v1989_v49 = vrot.slane %v4485_v41, 1  ;;  %v4319_v41 = vld [vmem:[%s5894_s2 + $0x120] sm:$0xff]   ;;  %v4897_v19 = vpack.c.bf16 %v1993_v21, %v1994_v42 }
  0x57   : > { %3974 = vmatpush3.bf16.msra.mxu1 %v4312_v0  ;;  %4022 = vmatpush3.bf16.msra.mxu0 %v4313_v7  ;;  %v4321_v7 = vld [vmem:[%s5894_s2 + $0x118] sm:$0xff]  }
  0x58   : > { %3897 = vmatprep.mubr.msk.bf16.mxu1 %vm4501_vm4, %v4532_v3  ;;  %3945 = vmatprep.mubr.msk.bf16.mxu0 %vm4501_vm4, %v4613_v13  ;;  %v1991_v3 = vsel %vm1985_vm1, %v1989_v49, %v1990_v28 }
  0x59   : > { %3975 = vmatprep.subr.bf16.mxu1 %v4314_v51  ;;  %4023 = vmatprep.subr.bf16.mxu0 %v4315_v27  ;;  %v4885_v0 = vpack.c.bf16 %v1990_v28, %v1991_v3  ;;  %v2002_v28 = vrot.slane %v4674_v9, 1  ;;  %v2005_v3 = vrot.slane %v4713_v8, 1  ;;  %v4327_v9 = vld [vmem:[%s5894_s2 + $0x100] sm:$0xff]   ;;  %v2008_v8 = vrot.slane %v4759_v14, 1  ;;  %v4340_v14 = vld [vmem:[%s5894_s2 + $0x1c8] sm:$0xff]  }
  0x5b   : > { %3976 = vmatpush3.bf16.msra.mxu1 %v4314_v51  ;;  %4024 = vmatpush3.bf16.msra.mxu0 %v4315_v27  ;;  %v1996_v51 = vrot.slane %v4579_v43, 1  ;;  %v2009_v42 = vsel %vm1985_vm1, %v2007_v31, %v2008_v8  ;;  %v4351_v31 = vld [vmem:[%s5894_s2 + $0x220] sm:$0xff]  }
  0x5c   : > { %3977 = vmatprep.subr.bf16.mxu1 %v4316_v26  ;;  %4025 = vmatprep.subr.bf16.mxu0 %v4317_v44 }
  0x5e   : > { %3898 = vmatmul.mubr.msk.bf16.gmra.mxu1 %vm4501_vm4, %v4588_v54  ;;  %3946 = vmatmul.mubr.msk.bf16.gmra.mxu0 %vm4501_vm4, %v4679_v17  ;;  %v1995_v54 = vrot.slane %v4577_v40, 1  ;;  %v4322_v40 = vld [vmem:[%s5894_s2 + $0x50] sm:$0xff]  }
  0x5f   : > { %3901 = vmatprep.mubr.msk.bf16.mxu1 %vm4501_vm4, %v4613_v13  ;;  %3949 = vmatprep.mubr.msk.bf16.mxu0 %vm4501_vm4, %v4711_v1  ;;  %v1998_v13 = vrot.slane %v4617_v16, 1  ;;  %v4324_v16 = vld [vmem:[%s5894_s2 + $0x48] sm:$0xff]  }
  0x60   : > { %3978 = vmatpush3.bf16.msra.mxu1 %v4316_v26  ;;  %4026 = vmatpush3.bf16.msra.mxu0 %v4317_v44  ;;  %v1997_v27 = vsel %vm1985_vm1, %v1995_v54, %v1996_v51  ;;  %v4323_v26 = vld [vmem:[%s5894_s2 + $0x110] sm:$0xff]   ;;  %v5076_v54 = vpack.c.bf16 %v4482_v39, %v4468_v30 }
  0x61   : > { %3979 = vmatprep.subr.bf16.mxu1 %v4318_v12  ;;  %4027 = vmatprep.subr.bf16.mxu0 %v4319_v41  ;;  %v4922_v44 = vpack.c.bf16 %v1996_v51, %v1997_v27  ;;  %v2000_v43 = vsel %vm1985_vm1, %v1998_v13, %v1999_v55  ;;  %v4343_v51 = vld [vmem:[%s5894_s2 + $0x80] sm:$0xff]   ;;  %v4344_v13 = vld [vmem:[%s5894_s2 + $0x178] sm:$0xff]   ;;  %v5096_v27 = vpack.c.bf16 %v4517_v57, %v4515_v56 }
  0x62   : > { %v4925_v49 = vpack.c.bf16 %v1999_v55, %v2000_v43  ;;  %v4345_v55 = vld [vmem:[%s5894_s2 + $0x238] sm:$0xff]   ;;  %v5112_v43 = vpack.c.bf16 %v4660_v60, %v4645_v50 }
  0x64   : > { %3980 = vmatpush3.bf16.msra.mxu1 %v4318_v12  ;;  %4028 = vmatpush3.bf16.msra.mxu0 %v4319_v41  ;;  %v2006_v12 = vsel %vm1985_vm1, %v2004_v47, %v2005_v3  ;;  %v5918_v47 = vld [vmem:[#allocation5_spill] sm:$0xff] }
  0x65   : > { %3981 = vmatprep.subr.bf16.mxu1 %v4320_v20  ;;  %4029 = vmatprep.subr.bf16.mxu0 %v4321_v7  ;;  %v4953_v41 = vpack.c.bf16 %v2005_v3, %v2006_v12  ;;  %v5132_v3 = vpack.c.bf16 %v4784_v52, %v5918_v47 }
  0x66   : > { %3902 = vmatmul.mubr.msk.bf16.gmra.mxu1 %vm4501_vm4, %v4679_v17  ;;  %3950 = vmatmul.mubr.msk.bf16.gmra.mxu0 %vm4501_vm4, %v4755_v5  ;;  %v2001_v17 = vrot.slane %v4663_v63, 1  ;;  %v4326_v63 = vld [vmem:[%s5894_s2 + $0x40] sm:$0xff]  }
  0x67   : > { %3905 = vmatprep.mubr.msk.bf16.mxu1 %vm4501_vm4, %v4711_v1  ;;  %3953 = vmatprep.mubr.msk.bf16.mxu0 %vm4501_vm4, %v4821_v38 }
  0x68   : > { %3982 = vmatpush3.bf16.msra.mxu1 %v4320_v20  ;;  %4030 = vmatpush3.bf16.msra.mxu0 %v4321_v7  ;;  %v2003_v1 = vsel %vm1985_vm1, %v2001_v17, %v2002_v28  ;;  %v4982_v20 = vpack.c.bf16 %v2008_v8, %v2009_v42  ;;  %v4342_v7 = vld [vmem:[%s5894_s2 + $0x1c0] sm:$0xff]   ;;  %v5916_v17 = vld [vmem:[#allocation3_spill] sm:$0xff]  ;;  %v4352_v8 = vld [vmem:[%s5894_s2 + $0x158] sm:$0xff]   ;;  %v2010_v42 = vrot.slane %v4468_v30, 1 }
  0x69   : > { %3983 = vmatprep.subr.bf16.mxu1 %v4322_v40  ;;  %4031 = vmatprep.subr.bf16.mxu0 %v4323_v26  ;;  %v4950_v21 = vpack.c.bf16 %v2002_v28, %v2003_v1  ;;  %v5917_v28 = vld [vmem:[#allocation4_spill] sm:$0xff] }
  0x6a   : > { %v5124_v1 = vpack.c.bf16 %v5917_v28, %v5916_v17 }
  0x6c   : > { %3984 = vmatpush3.bf16.msra.mxu1 %v4322_v40  ;;  %4032 = vmatpush3.bf16.msra.mxu0 %v4323_v26  ;;  %v5100_v40 = vpack.c.bf16 %v4572_v34, %v4558_v22  ;;  %v5108_v26 = vpack.c.bf16 %v4596_v62, %v4592_v59 }
  0x6d   : > { %3985 = vmatprep.subr.bf16.mxu1 %v4324_v16  ;;  %4033 = vmatprep.subr.bf16.mxu0 %v4325_v35 }
  0x6e   : > { %3906 = vmatmul.mubr.msk.bf16.gmra.mxu1 %vm4501_vm4, %v4755_v5  ;;  %3954 = vmatmul.mubr.msk.bf16.gmra.mxu0 %vm4501_vm4, %v4530_v2  ;;  %v4328_v5 = vld [vmem:[%s5894_s2 + $0x1f8] sm:$0xff]  }
  0x6f   : > { %3909 = vmatprep.mubr.msk.bf16.mxu1 %vm4501_vm4, %v4821_v38  ;;  %3957 = vmatprep.mubr.msk.bf16.mxu0 %vm4501_vm4, %v4548_v18  ;;  %v4329_v38 = vld [vmem:[%s5894_s2 + $0xb8] sm:$0xff]  }
  0x70   : > { %3986 = vmatpush3.bf16.msra.mxu1 %v4324_v16  ;;  %4034 = vmatpush3.bf16.msra.mxu0 %v4325_v35  ;;  %v5915_v16 = vld [vmem:[#allocation2_spill] sm:$0xff] }
  0x71   : > { %3987 = vmatprep.subr.bf16.mxu1 %v4326_v63  ;;  %4035 = vmatprep.subr.bf16.mxu0 %v4327_v9  ;;  %v5120_v35 = vpack.c.bf16 %v5915_v16, %v4677_v15 }
  0x74   : > { %3988 = vmatpush3.bf16.msra.mxu1 %v4326_v63  ;;  %4036 = vmatpush3.bf16.msra.mxu0 %v4327_v9  ;;  %v4346_v63 = vld [vmem:[%s5894_s2 + $0x170] sm:$0xff]  }
  0x75   : > { %4069 = vmatprep.subr.bf16.mxu1 %v4328_v5  ;;  %4117 = vmatprep.subr.bf16.mxu0 %v4329_v38  ;;  %v4347_v9 = vld [vmem:[%s5894_s2 + $0x230] sm:$0xff]  }
  0x76   : > { %3910 = vmatmul.mubr.msk.bf16.gmra.mxu1 %vm4501_vm4, %v4530_v2  ;;  %3958 = vmatmul.mubr.msk.bf16.gmra.mxu0 %vm4501_vm4, %v4601_v4  ;;  %v4330_v2 = vld [vmem:[%s5894_s2 + $0x1f0] sm:$0xff]  }
  0x77   : > { %3913 = vmatprep.mubr.msk.bf16.mxu1 %vm4501_vm4, %v4548_v18  ;;  %3961 = vmatprep.mubr.msk.bf16.mxu0 %vm4501_vm4, %v4642_v46  ;;  %v4331_v18 = vld [vmem:[%s5894_s2 + $0xb0] sm:$0xff]  }
  0x7e   : > { %3914 = vmatmul.mubr.msk.bf16.gmra.mxu1 %vm4501_vm4, %v4601_v4  ;;  %3962 = vmatmul.mubr.msk.bf16.gmra.mxu0 %vm4501_vm4, %v4701_v53  ;;  %v4333_v4 = vld [vmem:[%s5894_s2 + $0xa8] sm:$0xff]  }
  0x7f   : > { %3917 = vmatprep.mubr.msk.bf16.mxu1 %vm4501_vm4, %v4642_v46  ;;  %3965 = vmatprep.mubr.msk.bf16.mxu0 %vm4501_vm4, %v4731_v11  ;;  %v4334_v46 = vld [vmem:[%s5894_s2 + $0x1e0] sm:$0xff]  }
  0x86   : > { %3918 = vmatmul.mubr.msk.bf16.gmra.mxu1 %vm4501_vm4, %v4701_v53  ;;  %3966 = vmatmul.mubr.msk.bf16.gmra.mxu0 %vm4501_vm4, %v4778_v32  ;;  %v4335_v53 = vld [vmem:[%s5894_s2 + $0xa0] sm:$0xff]  }
  0x87   : > { %3921 = vmatprep.mubr.msk.bf16.mxu1 %vm4501_vm4, %v4731_v11  ;;  %3969 = vmatprep.mubr.msk.bf16.mxu0 %vm4501_vm4, %v4827_v45  ;;  %v4336_v11 = vld [vmem:[%s5894_s2 + $0x1d8] sm:$0xff]  }
  0x88   : > { %v4337_v45 = vld [vmem:[%s5894_s2 + $0x98] sm:$0xff]  }
  0x8e   : > { %3922 = vmatmul.mubr.msk.bf16.gmra.mxu1 %vm4501_vm4, %v4778_v32  ;;  %3970 = vmatmul.mubr.bf16.gmra.mxu0 %v4370_v10  ;;  %v4341_v32 = vld [vmem:[%s5894_s2 + $0x88] sm:$0xff]  }
  0x8f   : > { %3989 = vmatprep.mubr.bf16.mxu1 %v4370_v10  ;;  %4037 = vmatprep.mubr.bf16.mxu0 %v4747_v61 }
  0x96   : > { %3990 = vmatmul.mubr.bf16.vlgmr.msra.gmra.mxu1 %v4747_v61  ;;  %4038 = vmatmul.mubr.bf16.vlgmr.msra.gmra.mxu0 %v4766_v23  ;;  %v4338_v61 = vld [vmem:[%s5894_s2 + $0x1d0] sm:$0xff]  }
  0x97   : > { %4070 = vmatpush3.bf16.msra.mxu1 %v4328_v5  ;;  %4118 = vmatpush3.bf16.msra.mxu0 %v4329_v38  ;;  %v4355_v5 = vld [vmem:[%s5894_s2 + $0x210] sm:$0xff]   ;;  %v4356_v38 = vld [vmem:[%s5894_s2 + $0x148] sm:$0xff]  }
  0x98   : > { %3993 = vmatprep.mubr.bf16.mxu1 %v4766_v23  ;;  %4041 = vmatprep.mubr.bf16.mxu0 %v4770_v36 }
  0x99   : > { %4071 = vmatprep.subr.bf16.mxu1 %v4330_v2  ;;  %4119 = vmatprep.subr.bf16.mxu0 %v4331_v18 }
  0x9b   : > { %4072 = vmatpush3.bf16.msra.mxu1 %v4330_v2  ;;  %4120 = vmatpush3.bf16.msra.mxu0 %v4331_v18  ;;  %v2013_v2 = vrot.slane %v4515_v56, 1  ;;  %v2014_v18 = vrot.slane %v4517_v57, 1 }
  0x9c   : > { %4073 = vmatprep.subr.bf16.mxu1 %v4332_v48  ;;  %4121 = vmatprep.subr.bf16.mxu0 %v4333_v4 }
  0x9e   : > { %3994 = vmatmul.mubr.bf16.gmra.mxu1 %v4770_v36  ;;  %4042 = vmatmul.mubr.bf16.gmra.mxu0 %v4791_v58 }
  0x9f   : > { %3997 = vmatprep.mubr.bf16.mxu1 %v4791_v58  ;;  %4045 = vmatprep.mubr.bf16.mxu0 %v4795_v37 }
  0xa0   : > { %4074 = vmatpush3.bf16.msra.mxu1 %v4332_v48  ;;  %4122 = vmatpush3.bf16.msra.mxu0 %v4333_v4  ;;  %v4358_v48 = vld [vmem:[%s5894_s2 + $0x140] sm:$0xff]  }
  0xa1   : > { %4075 = vmatprep.subr.bf16.mxu1 %v4334_v46  ;;  %4123 = vmatprep.subr.bf16.mxu0 %v4335_v53  ;;  %v4359_v4 = vld [vmem:[%s5894_s2 + $0x200] sm:$0xff]  }
  0xa4   : > { %4076 = vmatpush3.bf16.msra.mxu1 %v4334_v46  ;;  %4124 = vmatpush3.bf16.msra.mxu0 %v4335_v53  ;;  %v2016_v46 = vrot.slane %v4558_v22, 1  ;;  %v2017_v53 = vrot.slane %v4572_v34, 1 }
  0xa5   : > { %4077 = vmatprep.subr.bf16.mxu1 %v4336_v11  ;;  %4125 = vmatprep.subr.bf16.mxu0 %v4337_v45 }
  0xa6   : > { %3998 = vmatmul.mubr.bf16.gmra.mxu1 %v4795_v37  ;;  %4046 = vmatmul.mubr.bf16.gmra.mxu0 %v4799_v24  ;;  %v2018_v22 = vsel %vm1985_vm1, %v2016_v46, %v2017_v53 }
  0xa7   : > { %4001 = vmatprep.mubr.bf16.mxu1 %v4799_v24  ;;  %4049 = vmatprep.mubr.bf16.mxu0 %v4808_v25 }
  0xa8   : > { %4078 = vmatpush3.bf16.msra.mxu1 %v4336_v11  ;;  %4126 = vmatpush3.bf16.msra.mxu0 %v4337_v45  ;;  %v2019_v11 = vrot.slane %v4592_v59, 1  ;;  %v2020_v45 = vrot.slane %v4596_v62, 1 }
  0xa9   : > { %4079 = vmatprep.subr.bf16.mxu1 %v4338_v61  ;;  %4127 = vmatprep.subr.bf16.mxu0 %v4339_v6 }
  0xaa   : > { %v2021_v62 = vsel %vm1985_vm1, %v2019_v11, %v2020_v45 }
  0xac   : > { %4080 = vmatpush3.bf16.msra.mxu1 %v4338_v61  ;;  %4128 = vmatpush3.bf16.msra.mxu0 %v4339_v6 }
  0xad   : > { %4081 = vmatprep.subr.bf16.mxu1 %v4340_v14  ;;  %4129 = vmatprep.subr.bf16.mxu0 %v4341_v32 }
  0xae   : > { %4002 = vmatmul.mubr.bf16.gmra.mxu1 %v4808_v25  ;;  %4050 = vmatmul.mubr.bf16.gmra.mxu0 %v4812_v33 }
  0xaf   : > { %4005 = vmatprep.mubr.bf16.mxu1 %v4812_v33  ;;  %4053 = vmatprep.mubr.bf16.mxu0 %v5076_v54 }
  0xb0   : > { %4082 = vmatpush3.bf16.msra.mxu1 %v4340_v14  ;;  %4130 = vmatpush3.bf16.msra.mxu0 %v4341_v32 }
  0xb1   : > { %4083 = vmatprep.subr.bf16.mxu1 %v4342_v7  ;;  %4131 = vmatprep.subr.bf16.mxu0 %v4343_v51 }
  0xb4   : > { %4084 = vmatpush3.bf16.msra.mxu1 %v4342_v7  ;;  %4132 = vmatpush3.bf16.msra.mxu0 %v4343_v51  ;;  %v5256_v7 = vpack.c.bf16 %v2020_v45, %v2021_v62  ;;  %v2022_v51 = vrot.slane %v4645_v50, 1 }
  0xb5   : > { %4165 = vmatprep.subr.bf16.mxu1 %v4344_v13  ;;  %4213 = vmatprep.subr.bf16.mxu0 %v4345_v55 }
  0xb6   : > { %4006 = vmatmul.mubr.bf16.gmra.mxu1 %v5076_v54  ;;  %4054 = vmatmul.mubr.bf16.gmra.mxu0 %v5096_v27 }
  0xb7   : > { %4009 = vmatprep.mubr.bf16.mxu1 %v5096_v27  ;;  %4057 = vmatprep.mubr.bf16.mxu0 %v5100_v40 }
  0xbe   : > { %4010 = vmatmul.mubr.bf16.gmra.mxu1 %v5100_v40  ;;  %4058 = vmatmul.mubr.bf16.gmra.mxu0 %v5108_v26 }
  0xbf   : > { %4013 = vmatprep.mubr.bf16.mxu1 %v5108_v26  ;;  %4061 = vmatprep.mubr.bf16.mxu0 %v5112_v43 }
  0xc6   : > { %4014 = vmatmul.mubr.bf16.gmra.mxu1 %v5112_v43  ;;  %4062 = vmatmul.mubr.bf16.gmra.mxu0 %v5120_v35 }
  0xc7   : > { %4017 = vmatprep.mubr.bf16.mxu1 %v5120_v35  ;;  %4065 = vmatprep.mubr.bf16.mxu0 %v5124_v1 }
  0xce   : > { %4018 = vmatmul.mubr.bf16.gmra.mxu1 %v5124_v1  ;;  %4066 = vmatmul.mubr.bf16.gmra.mxu0 %v5132_v3 }
  0xcf   : > { %4085 = vmatprep.mubr.bf16.mxu1 %v4766_v23  ;;  %4133 = vmatprep.mubr.bf16.mxu0 %v4370_v10  ;;  %v4348_v23 = vld [vmem:[%s5894_s2 + $0x168] sm:$0xff]  }
  0xd6   : > { %4086 = vmatmul.mubr.bf16.vlgmr.msra.gmra.mxu1 %v4770_v36  ;;  %4134 = vmatmul.mubr.msk.bf16.vlgmr.msra.gmra.mxu0 %vm5140_vm5, %v4854_v29  ;;  %v4349_v36 = vld [vmem:[%s5894_s2 + $0x228] sm:$0xff]  }
  0xd7   : > { %4166 = vmatpush3.bf16.msra.mxu1 %v4344_v13  ;;  %4214 = vmatpush3.bf16.msra.mxu0 %v4345_v55  ;;  %v2023_v13 = vrot.slane %v4660_v60, 1 }
  0xd8   : > { %4089 = vmatprep.mubr.bf16.mxu1 %v4791_v58  ;;  %4137 = vmatprep.mubr.msk.bf16.mxu0 %vm5140_vm5, %v4885_v0  ;;  %v4350_v58 = vld [vmem:[%s5894_s2 + $0x160] sm:$0xff]  }
  0xd9   : > { %4167 = vmatprep.subr.bf16.mxu1 %v4346_v63  ;;  %4215 = vmatprep.subr.bf16.mxu0 %v4347_v9  ;;  %v2024_v50 = vsel %vm1985_vm1, %v2022_v51, %v2023_v13 }
  0xdb   : > { %4168 = vmatpush3.bf16.msra.mxu1 %v4346_v63  ;;  %4216 = vmatpush3.bf16.msra.mxu0 %v4347_v9 }
  0xdc   : > { %4169 = vmatprep.subr.bf16.mxu1 %v4348_v23  ;;  %4217 = vmatprep.subr.bf16.mxu0 %v4349_v36 }
  0xde   : > { %4090 = vmatmul.mubr.bf16.gmra.mxu1 %v4795_v37  ;;  %4138 = vmatmul.mubr.msk.bf16.gmra.mxu0 %vm5140_vm5, %v4897_v19  ;;  %v4353_v37 = vld [vmem:[%s5894_s2 + $0x218] sm:$0xff]  }
  0xdf   : > { %4093 = vmatprep.mubr.bf16.mxu1 %v4799_v24  ;;  %4141 = vmatprep.mubr.msk.bf16.mxu0 %vm5140_vm5, %v4922_v44  ;;  %v4354_v24 = vld [vmem:[%s5894_s2 + $0x150] sm:$0xff]  }
  0xe0   : > { %4170 = vmatpush3.bf16.msra.mxu1 %v4348_v23  ;;  %4218 = vmatpush3.bf16.msra.mxu0 %v4349_v36  ;;  %v5288_v36 = vpack.c.bf16 %v2023_v13, %v2024_v50 }
  0xe1   : > { %4171 = vmatprep.subr.bf16.mxu1 %v4350_v58  ;;  %4219 = vmatprep.subr.bf16.mxu0 %v4351_v31 }
  0xe4   : > { %4172 = vmatpush3.bf16.msra.mxu1 %v4350_v58  ;;  %4220 = vmatpush3.bf16.msra.mxu0 %v4351_v31  ;;  %v2029_v31 = vrot.slane %v5917_v28, 1 }
  0xe5   : > { %4173 = vmatprep.subr.bf16.mxu1 %v4352_v8  ;;  %4221 = vmatprep.subr.bf16.mxu0 %v4353_v37 }
  0xe6   : > { %4094 = vmatmul.mubr.bf16.gmra.mxu1 %v4808_v25  ;;  %4142 = vmatmul.mubr.msk.bf16.gmra.mxu0 %vm5140_vm5, %v4925_v49  ;;  %v4357_v25 = vld [vmem:[%s5894_s2 + $0x208] sm:$0xff]  }
  0xe7   : > { %4097 = vmatprep.mubr.bf16.mxu1 %v4812_v33  ;;  %4145 = vmatprep.mubr.msk.bf16.mxu0 %vm5140_vm5, %v4950_v21  ;;  %v2011_v33 = vrot.slane %v4482_v39, 1  ;;  %v2015_v39 = vsel %vm1985_vm1, %v2013_v2, %v2014_v18 }
  0xe8   : > { %4174 = vmatpush3.bf16.msra.mxu1 %v4352_v8  ;;  %4222 = vmatpush3.bf16.msra.mxu0 %v4353_v37  ;;  %v5226_v57 = vpack.c.bf16 %v2014_v18, %v2015_v39 }
  0xe9   : > { %4175 = vmatprep.subr.bf16.mxu1 %v4354_v24  ;;  %4223 = vmatprep.subr.bf16.mxu0 %v4355_v5  ;;  %v2012_v30 = vsel %vm1985_vm1, %v2010_v42, %v2011_v33 }
  0xea   : > { %v5224_v56 = vpack.c.bf16 %v2011_v33, %v2012_v30 }
  0xec   : > { %4176 = vmatpush3.bf16.msra.mxu1 %v4354_v24  ;;  %4224 = vmatpush3.bf16.msra.mxu0 %v4355_v5 }
  0xed   : > { %4177 = vmatprep.subr.bf16.mxu1 %v4356_v38  ;;  %4225 = vmatprep.subr.bf16.mxu0 %v4357_v25 }
  0xee   : > { %4098 = vmatmul.mubr.bf16.gmra.mxu1 %v5076_v54  ;;  %4146 = vmatmul.mubr.msk.bf16.gmra.mxu0 %vm5140_vm5, %v4953_v41  ;;  %v5254_v54 = vpack.c.bf16 %v2017_v53, %v2018_v22 }
  0xef   : > { %4101 = vmatprep.mubr.bf16.mxu1 %v5096_v27  ;;  %4149 = vmatprep.mubr.msk.bf16.mxu0 %vm5140_vm5, %v4982_v20 }
  0xf0   : > { %4178 = vmatpush3.bf16.msra.mxu1 %v4356_v38  ;;  %4226 = vmatpush3.bf16.msra.mxu0 %v4357_v25 }
  0xf1   : > { %4179 = vmatprep.subr.bf16.mxu1 %v4358_v48  ;;  %4227 = vmatprep.subr.bf16.mxu0 %v4359_v4 }
  0xf4   : > { %4180 = vmatpush3.bf16.msra.mxu1 %v4358_v48  ;;  %4228 = vmatpush3.bf16.msra.mxu0 %v4359_v4 }
  0xf6   : > { %v5232_v61 = vpop.f32.mrf.mxu0  ;;  %v5234_v6 = vpop.f32.mrf.mxu1  ;;  %4102 = vmatmul.mubr.bf16.gmra.mxu1 %v5100_v40  ;;  %4150 = vmatmul.mubr.msk.bf16.gmra.mxu0 %vm5140_vm5, %v5224_v56  ;;  %v2025_v40 = vrot.slane %v4677_v15, 1 }
  0xf7   : > { %4105 = vmatprep.mubr.bf16.mxu1 %v5108_v26  ;;  %4153 = vmatprep.mubr.msk.bf16.mxu0 %vm5140_vm5, %v5226_v57  ;;  %v2026_v26 = vrot.slane %v5915_v16, 1 }
  0xf8   : > { %v5245_v34 = vpop.f32.mrf.mxu0  ;;  %v5247_v59 = vpop.f32.mrf.mxu1 }
  0xf9   : > { %v2027_v16 = vsel %vm1985_vm1, %v2025_v40, %v2026_v26 }
  0xfa   : > { %v5250_v14 = vpop.f32.mrf.mxu0  ;;  %v5252_v32 = vpop.f32.mrf.mxu1  ;;  %v5290_v58 = vpack.c.bf16 %v2026_v26, %v2027_v16 }
  0xfc   : > { %v5260_v55 = vpop.f32.mrf.mxu0  ;;  %v5262_v27 = vpop.f32.mrf.mxu1 }
  0xfe   : > { %v5266_v63 = vpop.f32.mrf.mxu0  ;;  %v5268_v9 = vpop.f32.mrf.mxu1  ;;  %4106 = vmatmul.mubr.bf16.gmra.mxu1 %v5112_v43  ;;  %4154 = vmatmul.mubr.msk.bf16.gmra.mxu0 %vm5140_vm5, %v5254_v54 }
  0xff   : > { %4109 = vmatprep.mubr.bf16.mxu1 %v5120_v35  ;;  %4157 = vmatprep.mubr.msk.bf16.mxu0 %vm5140_vm5, %v5256_v7  ;;  %v2028_v35 = vrot.slane %v5916_v17, 1 }
 0x100   : > { %v5279_v60 = vpop.f32.mrf.mxu0  ;;  %v5281_v15 = vpop.f32.mrf.mxu1 }
 0x101   : > { %v2030_v17 = vsel %vm1985_vm1, %v2028_v35, %v2029_v31 }
 0x102   : > { %v5284_v23 = vpop.f32.mrf.mxu0  ;;  %v5286_v43 = vpop.f32.mrf.mxu1 }
 0x104   : > { %v5294_v8 = vpop.f32.mrf.mxu0  ;;  %v5296_v37 = vpop.f32.mrf.mxu1 }
 0x106   : > { %v5298_v24 = vpop.f32.mrf.mxu0  ;;  %v5300_v5 = vpop.f32.mrf.mxu1  ;;  %4110 = vmatmul.mubr.bf16.gmra.mxu1 %v5124_v1  ;;  %4158 = vmatmul.mubr.msk.bf16.gmra.mxu0 %vm5140_vm5, %v5288_v36  ;;  %v5319_v1 = vpack.c.bf16 %v2029_v31, %v2030_v17 }
 0x107   : > { %4113 = vmatprep.mubr.bf16.mxu1 %v5132_v3  ;;  %4161 = vmatprep.mubr.msk.bf16.mxu0 %vm5140_vm5, %v5290_v58 }
 0x108   : > { %v5311_v28 = vpop.f32.mrf.mxu0  ;;  %v5313_v38 = vpop.f32.mrf.mxu1 }
 0x10a   : > { %v5315_v25 = vpop.f32.mrf.mxu0  ;;  %v5317_v42 = vpop.f32.mrf.mxu1 }
 0x10c   : > { %v5321_v33 = vpop.f32.mrf.mxu0  ;;  %v5323_v2 = vpop.f32.mrf.mxu1 }
 0x10e   : > { %v5325_v3 = vpop.f32.mrf.mxu0  ;;  %v5327_v18 = vpop.f32.mrf.mxu1  ;;  %4114 = vmatmul.mubr.bf16.gmra.mxu1 %v4370_v10  ;;  %4162 = vmatmul.mubr.msk.bf16.gmra.mxu0 %vm5140_vm5, %v5319_v1 }
 0x10f   : > { %4181 = vmatprep.mubr.msk.bf16.mxu1 %vm5140_vm5, %v4854_v29  ;;  %4229 = vmatprep.mubr.msk.bf16.mxu0 %vm5140_vm5, %v4885_v0 }
 0x110   : > { %v5339_v48 = vpop.f32.mrf.mxu0  ;;  %v5341_v4 = vpop.f32.mrf.mxu1 }
 0x112   : > { %v5343_v30 = vpop.f32.mrf.mxu0  ;;  %v5345_v39 = vpop.f32.mrf.mxu1 }
 0x114   : > { %v5347_v46 = vpop.f32.mrf.mxu0  ;;  %v5349_v53 = vpop.f32.mrf.mxu1 }
 0x116   : > { %v3895_v11 = vpop.f32.mrf.mxu1  ;;  %v3943_v45 = vpop.f32.mrf.mxu0  ;;  %4182 = vmatmul.mubr.msk.bf16.vlgmr.msra.gmra.mxu1 %vm5140_vm5, %v4885_v0  ;;  %4230 = vmatmul.mubr.msk.bf16.vlgmr.msra.gmra.mxu0 %vm5140_vm5, %v4897_v19 }
 0x117   : > { %v819_v29 = vadd.f32 %v3895_v11, %v5232_v61  ;;  %4185 = vmatprep.mubr.msk.bf16.mxu1 %vm5140_vm5, %v4897_v19  ;;  %4233 = vmatprep.mubr.msk.bf16.mxu0 %vm5140_vm5, %v4922_v44 }
 0x118   : > { %v810_v22 = vpop.f32.mrf.mxu1  ;;  %v1036_v62 = vpop.f32.mrf.mxu0 }
 0x119   : > { %v5364_v51 = vadd.f32 %v3943_v45, %v819_v29  ;;  %v811_v0 = vadd.f32 %v810_v22, %v5245_v34 }
 0x11a   : > { %v3896_v13 = vpop.f32.mrf.mxu1  ;;  %v3944_v40 = vpop.f32.mrf.mxu0 }
 0x11b   : > { %v5367_v26 = vadd.f32 %v1036_v62, %v811_v0  ;;  %v822_v61 = vadd.f32 %v3896_v13, %v5250_v14 }
 0x11c   : > { %v813_v50 = vpop.f32.mrf.mxu1  ;;  %v1039_v16 = vpop.f32.mrf.mxu0 }
 0x11d   : > { %v5370_v35 = vadd.f32 %v3944_v40, %v822_v61  ;;  %v814_v19 = vadd.f32 %v813_v50, %v5260_v55 }
 0x11e   : > { %v3899_v31 = vpop.f32.mrf.mxu1  ;;  %v3947_v17 = vpop.f32.mrf.mxu0  ;;  %4186 = vmatmul.mubr.msk.bf16.gmra.mxu1 %vm5140_vm5, %v4922_v44  ;;  %4234 = vmatmul.mubr.msk.bf16.gmra.mxu0 %vm5140_vm5, %v4925_v49 }
 0x11f   : > { %v5379_v34 = vadd.f32 %v1039_v16, %v814_v19  ;;  %v835_v14 = vadd.f32 %v3899_v31, %v5266_v63  ;;  %4189 = vmatprep.mubr.msk.bf16.mxu1 %vm5140_vm5, %v4925_v49  ;;  %4237 = vmatprep.mubr.msk.bf16.mxu0 %vm5140_vm5, %v4950_v21 }
 0x120   : > { %v826_v55 = vpop.f32.mrf.mxu1  ;;  %v1052_v11 = vpop.f32.mrf.mxu0 }
 0x121   : > { %v5388_v45 = vadd.f32 %v3947_v17, %v835_v14  ;;  %v827_v44 = vadd.f32 %v826_v55, %v5279_v60 }
 0x122   : > { %v3900_v29 = vpop.f32.mrf.mxu1  ;;  %v3948_v22 = vpop.f32.mrf.mxu0 }
 0x123   : > { %v5391_v62 = vadd.f32 %v1052_v11, %v827_v44  ;;  %v838_v63 = vadd.f32 %v3900_v29, %v5284_v23 }
 0x124   : > { %v829_v0 = vpop.f32.mrf.mxu1  ;;  %v1055_v13 = vpop.f32.mrf.mxu0 }
 0x125   : > { %v5394_v40 = vadd.f32 %v3948_v22, %v838_v63  ;;  %v830_v49 = vadd.f32 %v829_v0, %v5294_v8 }
 0x126   : > { %v3903_v61 = vpop.f32.mrf.mxu1  ;;  %v3951_v50 = vpop.f32.mrf.mxu0  ;;  %4190 = vmatmul.mubr.msk.bf16.gmra.mxu1 %vm5140_vm5, %v4950_v21  ;;  %4238 = vmatmul.mubr.msk.bf16.gmra.mxu0 %vm5140_vm5, %v4953_v41 }
 0x127   : > { %v5403_v60 = vadd.f32 %v1055_v13, %v830_v49  ;;  %v851_v23 = vadd.f32 %v3903_v61, %v5298_v24  ;;  %4193 = vmatprep.mubr.msk.bf16.mxu1 %vm5140_vm5, %v4953_v41  ;;  %4241 = vmatprep.mubr.msk.bf16.mxu0 %vm5140_vm5, %v4982_v20 }
 0x128   : > { %v842_v8 = vpop.f32.mrf.mxu1  ;;  %v1068_v16 = vpop.f32.mrf.mxu0 }
 0x129   : > { %v5412_v19 = vadd.f32 %v3951_v50, %v851_v23  ;;  %v843_v21 = vadd.f32 %v842_v8, %v5311_v28 }
 0x12a   : > { %v3904_v31 = vpop.f32.mrf.mxu1  ;;  %v3952_v17 = vpop.f32.mrf.mxu0 }
 0x12b   : > { %v5415_v14 = vadd.f32 %v1068_v16, %v843_v21  ;;  %v854_v24 = vadd.f32 %v3904_v31, %v5315_v25 }
 0x12c   : > { %v845_v55 = vpop.f32.mrf.mxu1  ;;  %v1071_v11 = vpop.f32.mrf.mxu0 }
 0x12d   : > { %v5418_v44 = vadd.f32 %v3952_v17, %v854_v24  ;;  %v846_v41 = vadd.f32 %v845_v55, %v5321_v33 }
 0x12e   : > { %v3907_v29 = vpop.f32.mrf.mxu1  ;;  %v3955_v22 = vpop.f32.mrf.mxu0  ;;  %4194 = vmatmul.mubr.msk.bf16.gmra.mxu1 %vm5140_vm5, %v4982_v20  ;;  %4242 = vmatmul.mubr.msk.bf16.gmra.mxu0 %vm5140_vm5, %v5224_v56 }
 0x12f   : > { %v5427_v28 = vadd.f32 %v1071_v11, %v846_v41  ;;  %v867_v25 = vadd.f32 %v3907_v29, %v5325_v3  ;;  %4197 = vmatprep.mubr.msk.bf16.mxu1 %vm5140_vm5, %v5224_v56  ;;  %4245 = vmatprep.mubr.msk.bf16.mxu0 %vm5140_vm5, %v5226_v57 }
 0x130   : > { %v858_v33 = vpop.f32.mrf.mxu1  ;;  %v1084_v63 = vpop.f32.mrf.mxu0 }
 0x131   : > { %v5436_v0 = vadd.f32 %v3955_v22, %v867_v25  ;;  %v859_v20 = vadd.f32 %v858_v33, %v5339_v48  ;;  %v2032_v22 = vrot.slane %v4784_v52, 1 }
 0x132   : > { %v3908_v13 = vpop.f32.mrf.mxu1  ;;  %v3956_v49 = vpop.f32.mrf.mxu0 }
 0x133   : > { %v5439_v61 = vadd.f32 %v1084_v63, %v859_v20  ;;  %v870_v3 = vadd.f32 %v3908_v13, %v5343_v30 }
 0x134   : > { %v861_v50 = vpop.f32.mrf.mxu1  ;;  %v1087_v23 = vpop.f32.mrf.mxu0 }
 0x135   : > { %v5442_v8 = vadd.f32 %v3956_v49, %v870_v3  ;;  %v862_v56 = vadd.f32 %v861_v50, %v5347_v46 }
 0x136   : > { %v3911_v16 = vpop.f32.mrf.mxu1  ;;  %v3959_v21 = vpop.f32.mrf.mxu0  ;;  %4198 = vmatmul.mubr.msk.bf16.gmra.mxu1 %vm5140_vm5, %v5226_v57  ;;  %4246 = vmatmul.mubr.msk.bf16.gmra.mxu0 %vm5140_vm5, %v5254_v54 }
 0x137   : > { %v5451_v48 = vadd.f32 %v1087_v23, %v862_v56  ;;  %v883_v30 = vadd.f32 %v3911_v16, %v5234_v6  ;;  %4201 = vmatprep.mubr.msk.bf16.mxu1 %vm5140_vm5, %v5254_v54  ;;  %4249 = vmatprep.mubr.msk.bf16.mxu0 %vm5140_vm5, %v5256_v7  ;;  %v2031_v54 = vrot.slane %v5918_v47, 1 }
 0x138   : > { %v874_v46 = vpop.f32.mrf.mxu1  ;;  %v1100_v31 = vpop.f32.mrf.mxu0 }
 0x139   : > { %v5460_v17 = vadd.f32 %v3959_v21, %v883_v30  ;;  %v875_v57 = vadd.f32 %v874_v46, %v5247_v59 }
 0x13a   : > { %v3912_v24 = vpop.f32.mrf.mxu1  ;;  %v3960_v55 = vpop.f32.mrf.mxu0 }
 0x13b   : > { %v5463_v11 = vadd.f32 %v1100_v31, %v875_v57  ;;  %v886_v6 = vadd.f32 %v3912_v24, %v5252_v32 }
 0x13c   : > { %v877_v41 = vpop.f32.mrf.mxu1  ;;  %v1103_v29 = vpop.f32.mrf.mxu0 }
 0x13d   : > { %v5468_v25 = vadd.f32 %v3960_v55, %v886_v6  ;;  %v878_v33 = vadd.f32 %v877_v41, %v5262_v27 }
 0x13e   : > { %v3915_v63 = vpop.f32.mrf.mxu1  ;;  %v3963_v20 = vpop.f32.mrf.mxu0  ;;  %4202 = vmatmul.mubr.msk.bf16.gmra.mxu1 %vm5140_vm5, %v5256_v7  ;;  %4250 = vmatmul.mubr.msk.bf16.gmra.mxu0 %vm5140_vm5, %v5288_v36  ;;  %v2033_v7 = vsel %vm1985_vm1, %v2031_v54, %v2032_v22 }
 0x13f   : > { %v5477_v59 = vadd.f32 %v1103_v29, %v878_v33  ;;  %v899_v47 = vadd.f32 %v3915_v63, %v5268_v9  ;;  %4205 = vmatprep.mubr.msk.bf16.mxu1 %vm5140_vm5, %v5288_v36  ;;  %4253 = vmatprep.mubr.msk.bf16.mxu0 %vm5140_vm5, %v5290_v58  ;;  %v3538_v23 = vpack.c.bf16 %v2032_v22, %v2033_v7 }
 0x140   : > { %v890_v52 = vpop.f32.mrf.mxu1  ;;  %v1116_v32 = vpop.f32.mrf.mxu0 }
 0x141   : > { %v5487_v27 = vadd.f32 %v3963_v20, %v899_v47  ;;  %v891_v13 = vadd.f32 %v890_v52, %v5281_v15 }
 0x142   : > { %v3916_v49 = vpop.f32.mrf.mxu1  ;;  %v3964_v3 = vpop.f32.mrf.mxu0 }
 0x143   : > { %v5490_v50 = vadd.f32 %v1116_v32, %v891_v13  ;;  %v902_v9 = vadd.f32 %v3916_v49, %v5286_v43 }
 0x144   : > { %v893_v36 = vpop.f32.mrf.mxu1  ;;  %v1119_v56 = vpop.f32.mrf.mxu0 }
 0x145   : > { %v5493_v16 = vadd.f32 %v3964_v3, %v902_v9  ;;  %v894_v21 = vadd.f32 %v893_v36, %v5296_v37 }
 0x146   : > { %v3919_v30 = vpop.f32.mrf.mxu1  ;;  %v3967_v46 = vpop.f32.mrf.mxu0  ;;  %4206 = vmatmul.mubr.msk.bf16.gmra.mxu1 %vm5140_vm5, %v5290_v58  ;;  %4254 = vmatmul.mubr.msk.bf16.gmra.mxu0 %vm5140_vm5, %v5319_v1 }
 0x147   : > { %v5502_v15 = vadd.f32 %v1119_v56, %v894_v21  ;;  %v915_v43 = vadd.f32 %v3919_v30, %v5300_v5  ;;  %4209 = vmatprep.mubr.msk.bf16.mxu1 %vm5140_vm5, %v5319_v1  ;;  %4257 = vmatprep.mubr.msk.bf16.mxu0 %vm5140_vm5, %v3538_v23 }
 0x148   : > { %v906_v37 = vpop.f32.mrf.mxu1  ;;  %v1132_v31 = vpop.f32.mrf.mxu0 }
 0x149   : > { %v5510_v57 = vadd.f32 %v3967_v46, %v915_v43  ;;  %v907_v58 = vadd.f32 %v906_v37, %v5313_v38 }
 0x14a   : > { %v3920_v24 = vpop.f32.mrf.mxu1  ;;  %v3968_v55 = vpop.f32.mrf.mxu0 }
 0x14b   : > { %v5513_v6 = vadd.f32 %v1132_v31, %v907_v58  ;;  %v918_v41 = vadd.f32 %v3920_v24, %v5317_v42 }
 0x14c   : > { %v909_v5 = vpop.f32.mrf.mxu1  ;;  %v1135_v29 = vpop.f32.mrf.mxu0 }
 0x14d   : > { %v5516_v54 = vadd.f32 %v3968_v55, %v918_v41  ;;  %v910_v1 = vadd.f32 %v909_v5, %v5323_v2 }
 0x14e   : > { %v3923_v22 = vpop.f32.mrf.mxu1  ;;  %v3971_v33 = vpop.f32.mrf.mxu0  ;;  %4210 = vmatmul.mubr.msk.bf16.gmra.mxu1 %vm5140_vm5, %v3538_v23  ;;  %4258 = vmatmul.mubr.bf16.gmra.mxu0 %v4370_v10 }
 0x14f   : > { %v5522_v38 = vadd.f32 %v1135_v29, %v910_v1  ;;  %v931_v63 = vadd.f32 %v3923_v22, %v5327_v18 }
 0x150   : > { %v922_v20 = vpop.f32.mrf.mxu1  ;;  %v1148_v47 = vpop.f32.mrf.mxu0 }
 0x151   : > { %v5525_v42 = vadd.f32 %v3971_v33, %v931_v63  ;;  %v923_v52 = vadd.f32 %v922_v20, %v5341_v4 }
 0x152   : > { %v3924_v32 = vpop.f32.mrf.mxu1  ;;  %v3972_v7 = vpop.f32.mrf.mxu0 }
 0x153   : > { %v5528_v2 = vadd.f32 %v1148_v47, %v923_v52  ;;  %v934_v13 = vadd.f32 %v3924_v32, %v5345_v39 }
 0x154   : > { %v925_v12 = vpop.f32.mrf.mxu1  ;;  %v1151_v49 = vpop.f32.mrf.mxu0 }
 0x155   : > { %v5531_v3 = vadd.f32 %v3972_v7, %v934_v13  ;;  %v926_v10 = vadd.f32 %v925_v12, %v5349_v53 }
 0x156   : > { %v3991_v9 = vpop.f32.mrf.mxu1  ;;  %v4039_v18 = vpop.f32.mrf.mxu0 }
 0x157   : > { %v5534_v23 = vadd.f32 %v1151_v49, %v926_v10  ;;  %v1438_v36 = vadd.f32 %v3991_v9, %v5364_v51 }
 0x158   : > { %v1309_v56 = vpop.f32.mrf.mxu1  ;;  %v1568_v4 = vpop.f32.mrf.mxu0 }
 0x159   : > { %v5537_v21 = vadd.f32 %v4039_v18, %v1438_v36  ;;  %v1436_v30 = vadd.f32 %v1309_v56, %v5367_v26 }
 0x15a   : > { %v3992_v46 = vpop.f32.mrf.mxu1  ;;  %v4040_v39 = vpop.f32.mrf.mxu0 }
 0x15b   : > { %v5540_v43 = vadd.f32 %v1568_v4, %v1436_v30  ;;  %v1439_v37 = vadd.f32 %v3992_v46, %v5370_v35 }
 0x15c   : > { %v1312_v31 = vpop.f32.mrf.mxu1  ;;  %v1571_v53 = vpop.f32.mrf.mxu0 }
 0x15d   : > { %v5543_v58 = vadd.f32 %v4040_v39, %v1439_v37  ;;  %v1437_v24 = vadd.f32 %v1312_v31, %v5379_v34 }
 0x15e   : > { %v3995_v55 = vpop.f32.mrf.mxu1  ;;  %v4043_v51 = vpop.f32.mrf.mxu0 }
 0x15f   : > { %v5546_v41 = vadd.f32 %v1571_v53, %v1437_v24  ;;  %v1442_v5 = vadd.f32 %v3995_v55, %v5388_v45 }
 0x160   : > { %v1325_v29 = vpop.f32.mrf.mxu1  ;;  %v1584_v26 = vpop.f32.mrf.mxu0 }
 0x161   : > { %v5549_v1 = vadd.f32 %v4043_v51, %v1442_v5  ;;  %v1440_v22 = vadd.f32 %v1325_v29, %v5391_v62 }
 0x162   : > { %v3996_v33 = vpop.f32.mrf.mxu1  ;;  %v4044_v35 = vpop.f32.mrf.mxu0 }
 0x163   : > { %v5552_v63 = vadd.f32 %v1584_v26, %v1440_v22  ;;  %v1443_v20 = vadd.f32 %v3996_v33, %v5394_v40 }
 0x164   : > { %v1328_v47 = vpop.f32.mrf.mxu1  ;;  %v1587_v34 = vpop.f32.mrf.mxu0 }
 0x165   : > { %v5555_v52 = vadd.f32 %v4044_v35, %v1443_v20  ;;  %v1441_v32 = vadd.f32 %v1328_v47, %v5403_v60 }
 0x166   : > { %v3999_v7 = vpop.f32.mrf.mxu1  ;;  %v4047_v45 = vpop.f32.mrf.mxu0 }
 0x167   : > { %v5558_v13 = vadd.f32 %v1587_v34, %v1441_v32  ;;  %v1446_v12 = vadd.f32 %v3999_v7, %v5412_v19 }
 0x168   : > { %v1341_v49 = vpop.f32.mrf.mxu1  ;;  %v1600_v62 = vpop.f32.mrf.mxu0 }
 0x169   : > { %v5561_v10 = vadd.f32 %v4047_v45, %v1446_v12  ;;  %v1444_v9 = vadd.f32 %v1341_v49, %v5415_v14 }
 0x16a   : > { %v4000_v18 = vpop.f32.mrf.mxu1  ;;  %v4048_v40 = vpop.f32.mrf.mxu0 }
 0x16b   : > { %v5564_v36 = vadd.f32 %v1600_v62, %v1444_v9  ;;  %v1447_v56 = vadd.f32 %v4000_v18, %v5418_v44 }
 0x16c   : > { %v1344_v4 = vpop.f32.mrf.mxu1  ;;  %v1603_v60 = vpop.f32.mrf.mxu0 }
 0x16d   : > { %v5567_v30 = vadd.f32 %v4048_v40, %v1447_v56  ;;  %v1445_v46 = vadd.f32 %v1344_v4, %v5427_v28 }
 0x16e   : > { %v4003_v39 = vpop.f32.mrf.mxu1  ;;  %v4051_v19 = vpop.f32.mrf.mxu0 }
 0x16f   : > { %v5570_v37 = vadd.f32 %v1603_v60, %v1445_v46  ;;  %v1450_v31 = vadd.f32 %v4003_v39, %v5436_v0 }
 0x170   : > { %v1357_v53 = vpop.f32.mrf.mxu1  ;;  %v1616_v14 = vpop.f32.mrf.mxu0 }
 0x171   : > { %v5573_v24 = vadd.f32 %v4051_v19, %v1450_v31  ;;  %v1448_v55 = vadd.f32 %v1357_v53, %v5439_v61 }
 0x172   : > { %v4004_v51 = vpop.f32.mrf.mxu1  ;;  %v4052_v44 = vpop.f32.mrf.mxu0 }
 0x173   : > { %v5576_v5 = vadd.f32 %v1616_v14, %v1448_v55  ;;  %v1451_v29 = vadd.f32 %v4004_v51, %v5442_v8 }
 0x174   : > { %v1360_v26 = vpop.f32.mrf.mxu1  ;;  %v1619_v28 = vpop.f32.mrf.mxu0 }
 0x175   : > { %v5579_v22 = vadd.f32 %v4052_v44, %v1451_v29  ;;  %v1449_v33 = vadd.f32 %v1360_v26, %v5451_v48 }
 0x176   : > { %v4007_v35 = vpop.f32.mrf.mxu1  ;;  %v4055_v0 = vpop.f32.mrf.mxu0 }
 0x177   : > { %v5582_v20 = vadd.f32 %v1619_v28, %v1449_v33  ;;  %v1454_v47 = vadd.f32 %v4007_v35, %v5460_v17 }
 0x178   : > { %v1373_v34 = vpop.f32.mrf.mxu1  ;;  %v1632_v61 = vpop.f32.mrf.mxu0 }
 0x179   : > { %v5585_v32 = vadd.f32 %v4055_v0, %v1454_v47  ;;  %v1452_v7 = vadd.f32 %v1373_v34, %v5463_v11 }
 0x17a   : > { %v4008_v45 = vpop.f32.mrf.mxu1  ;;  %v4056_v8 = vpop.f32.mrf.mxu0 }
 0x17b   : > { %v5588_v12 = vadd.f32 %v1632_v61, %v1452_v7  ;;  %v1455_v49 = vadd.f32 %v4008_v45, %v5468_v25 }
 0x17c   : > { %v1376_v62 = vpop.f32.mrf.mxu1  ;;  %v1635_v48 = vpop.f32.mrf.mxu0 }
 0x17d   : > { %v5591_v9 = vadd.f32 %v4056_v8, %v1455_v49  ;;  %v1453_v18 = vadd.f32 %v1376_v62, %v5477_v59 }
 0x17e   : > { %v4011_v40 = vpop.f32.mrf.mxu1  ;;  %v4059_v17 = vpop.f32.mrf.mxu0 }
 0x17f   : > { %5921 = vst [vmem:[#allocation2_spill] sm:$0xff] %v5591_v9  ;;  %v5594_v56 = vadd.f32 %v1635_v48, %v1453_v18  ;;  %v1458_v4 = vadd.f32 %v4011_v40, %v5487_v27 }
 0x180   : > { %v1389_v60 = vpop.f32.mrf.mxu1  ;;  %v1648_v11 = vpop.f32.mrf.mxu0 }
 0x181   : > { %5922 = vst [vmem:[#allocation3_spill] sm:$0xff] %v5594_v56  ;;  %v5597_v46 = vadd.f32 %v4059_v17, %v1458_v4  ;;  %v1456_v39 = vadd.f32 %v1389_v60, %v5490_v50 }
 0x182   : > { %v4012_v19 = vpop.f32.mrf.mxu1  ;;  %v4060_v25 = vpop.f32.mrf.mxu0 }
 0x183   : > { %5923 = vst [vmem:[#allocation4_spill] sm:$0xff] %v5597_v46  ;;  %v5600_v31 = vadd.f32 %v1648_v11, %v1456_v39  ;;  %v1459_v53 = vadd.f32 %v4012_v19, %v5493_v16 }
 0x184   : > { %v1392_v14 = vpop.f32.mrf.mxu1  ;;  %v1651_v59 = vpop.f32.mrf.mxu0 }
 0x185   : > { %5924 = vst [vmem:[#allocation5_spill] sm:$0xff] %v5600_v31  ;;  %v5603_v55 = vadd.f32 %v4060_v25, %v1459_v53  ;;  %v1457_v51 = vadd.f32 %v1392_v14, %v5502_v15 }
 0x186   : > { %v4015_v44 = vpop.f32.mrf.mxu1  ;;  %v4063_v27 = vpop.f32.mrf.mxu0 }
 0x187   : > { %5925 = vst [vmem:[#allocation6_spill] sm:$0xff] %v5603_v55  ;;  %v5606_v29 = vadd.f32 %v1651_v59, %v1457_v51  ;;  %v1462_v26 = vadd.f32 %v4015_v44, %v5510_v57 }
 0x188   : > { %v1405_v28 = vpop.f32.mrf.mxu1  ;;  %v1664_v50 = vpop.f32.mrf.mxu0 }
 0x189   : > { %5926 = vst [vmem:[#allocation7_spill] sm:$0xff] %v5606_v29  ;;  %v5609_v33 = vadd.f32 %v4063_v27, %v1462_v26  ;;  %v1460_v35 = vadd.f32 %v1405_v28, %v5513_v6 }
 0x18a   : > { %v4016_v0 = vpop.f32.mrf.mxu1  ;;  %v4064_v16 = vpop.f32.mrf.mxu0 }
 0x18b   : > { %5927 = vst [vmem:[#allocation8_spill] sm:$0xff] %v5609_v33  ;;  %v5612_v47 = vadd.f32 %v1664_v50, %v1460_v35  ;;  %v1463_v34 = vadd.f32 %v4016_v0, %v5516_v54 }
 0x18c   : > { %v1408_v61 = vpop.f32.mrf.mxu1  ;;  %v1667_v15 = vpop.f32.mrf.mxu0 }
 0x18d   : > { %5928 = vst [vmem:[#allocation9_spill] sm:$0xff] %v5612_v47  ;;  %v5615_v7 = vadd.f32 %v4064_v16, %v1463_v34  ;;  %v1461_v45 = vadd.f32 %v1408_v61, %v5522_v38 }
 0x18e   : > { %v4019_v8 = vpop.f32.mrf.mxu1  ;;  %v4067_v57 = vpop.f32.mrf.mxu0 }
 0x18f   : > { %5929 = vst [vmem:[#allocation10_spill] sm:$0xff] %v5615_v7  ;;  %v5618_v49 = vadd.f32 %v1667_v15, %v1461_v45  ;;  %v1466_v62 = vadd.f32 %v4019_v8, %v5525_v42 }
 0x190   : > { %v1421_v48 = vpop.f32.mrf.mxu1  ;;  %v1680_v6 = vpop.f32.mrf.mxu0 }
 0x191   : > { %5930 = vst [vmem:[#allocation11_spill] sm:$0xff] %v5618_v49  ;;  %v5621_v18 = vadd.f32 %v4067_v57, %v1466_v62  ;;  %v1464_v40 = vadd.f32 %v1421_v48, %v5528_v2 }
 0x192   : > { %v4020_v17 = vpop.f32.mrf.mxu1  ;;  %v4068_v54 = vpop.f32.mrf.mxu0 }
 0x193   : > { %5931 = vst [vmem:[#allocation12_spill] sm:$0xff] %v5621_v18  ;;  %v5624_v4 = vadd.f32 %v1680_v6, %v1464_v40  ;;  %v1467_v60 = vadd.f32 %v4020_v17, %v5531_v3 }
 0x194   : > { %v1424_v11 = vpop.f32.mrf.mxu1  ;;  %v1683_v38 = vpop.f32.mrf.mxu0 }
 0x195   : > { %5932 = vst [vmem:[#allocation13_spill] sm:$0xff] %v5624_v4  ;;  %v5627_v39 = vadd.f32 %v4068_v54, %v1467_v60  ;;  %v1465_v19 = vadd.f32 %v1424_v11, %v5534_v23 }
 0x196   : > { %v4087_v25 = vpop.f32.mrf.mxu1  ;;  %v5630_v42 = vpop.f32.mrf.mxu0 }
 0x197   : > { %5933 = vst [vmem:[#allocation14_spill] sm:$0xff] %v5627_v39  ;;  %v5632_v53 = vadd.f32 %v1683_v38, %v1465_v19 }
 0x198   : > { %v1826_v14 = vpop.f32.mrf.mxu1  ;;  %v5634_v59 = vpop.f32.mrf.mxu0 }
 0x199   : > { %5934 = vst [vmem:[#allocation15_spill] sm:$0xff] %v5632_v53 }
 0x19a   : > { %v5636_v2 = vpop.f32.mrf.mxu1  ;;  %v5638_v51 = vpop.f32.mrf.mxu0 }
 0x19c   : > { %v5640_v44 = vpop.f32.mrf.mxu1  ;;  %v5642_v3 = vpop.f32.mrf.mxu0 }
 0x19e   : > { %v5644_v27 = vpop.f32.mrf.mxu1  ;;  %v5646_v26 = vpop.f32.mrf.mxu0 }
 0x1a0   : > { %v5648_v23 = vpop.f32.mrf.mxu1  ;;  %v5650_v28 = vpop.f32.mrf.mxu0 }
 0x1a2   : > { %v5652_v50 = vpop.f32.mrf.mxu1  ;;  %v5654_v35 = vpop.f32.mrf.mxu0 }
 0x1a4   : > { %v5656_v0 = vpop.f32.mrf.mxu1  ;;  %v5658_v16 = vpop.f32.mrf.mxu0 }
 0x1a6   : > { %v5660_v34 = vpop.f32.mrf.mxu1  ;;  %v5662_v61 = vpop.f32.mrf.mxu0 }
 0x1a8   : > { %v5664_v15 = vpop.f32.mrf.mxu1  ;;  %v5666_v45 = vpop.f32.mrf.mxu0 }
 0x1aa   : > { %v5668_v8 = vpop.f32.mrf.mxu1  ;;  %v5670_v57 = vpop.f32.mrf.mxu0 }
 0x1ac   : > { %v5672_v62 = vpop.f32.mrf.mxu1  ;;  %v5674_v48 = vpop.f32.mrf.mxu0 }
 0x1ae   : > { %v5676_v6 = vpop.f32.mrf.mxu1  ;;  %v5678_v40 = vpop.f32.mrf.mxu0 }
 0x1b0   : > { %v5680_v17 = vpop.f32.mrf.mxu1  ;;  %v5682_v54 = vpop.f32.mrf.mxu0 }
 0x1b2   : > { %v5684_v60 = vpop.f32.mrf.mxu1  ;;  %v5686_v11 = vpop.f32.mrf.mxu0 }
 0x1b4   : > { %v5688_v38 = vpop.f32.mrf.mxu1  ;;  %v5690_v19 = vpop.f32.mrf.mxu0 }
 0x1b6   : > { %v5692_v53 = vpop.f32.mrf.mxu1  ;;  %v5694_v39 = vpop.f32.mrf.mxu0 }
 0x1b8   : > { %v5696_v4 = vpop.f32.mrf.mxu1  ;;  %v5698_v18 = vpop.f32.mrf.mxu0 }
 0x1b9   : > { %5935 = vst [vmem:[#allocation16_spill] sm:$0xff] %v5698_v18 }
 0x1ba   : > { %v5700_v49 = vpop.f32.mrf.mxu1  ;;  %v5702_v7 = vpop.f32.mrf.mxu0 }
 0x1bb   : > { %5936 = vst [vmem:[#allocation17_spill] sm:$0xff] %v5700_v49  ;;  %5937 = vst [vmem:[#allocation18_spill] sm:$0xff] %v5702_v7 }
 0x1bc   : > { %v5704_v47 = vpop.f32.mrf.mxu1  ;;  %v5706_v33 = vpop.f32.mrf.mxu0 }
 0x1bd   : > { %5938 = vst [vmem:[#allocation19_spill] sm:$0xff] %v5704_v47  ;;  %5939 = vst [vmem:[#allocation20_spill] sm:$0xff] %v5706_v33 }
 0x1be   : > { %v5708_v29 = vpop.f32.mrf.mxu1  ;;  %v5710_v55 = vpop.f32.mrf.mxu0 }
 0x1bf   : > { %5940 = vst [vmem:[#allocation21_spill] sm:$0xff] %v5708_v29  ;;  %5941 = vst [vmem:[#allocation22_spill] sm:$0xff] %v5710_v55 }
 0x1c0   : > { %v5712_v31 = vpop.f32.mrf.mxu1  ;;  %v5714_v46 = vpop.f32.mrf.mxu0 }
 0x1c1   : > { %5942 = vst [vmem:[#allocation23_spill] sm:$0xff] %v5712_v31  ;;  %5943 = vst [vmem:[#allocation24_spill] sm:$0xff] %v5714_v46 }
 0x1c2   : > { %v5716_v56 = vpop.f32.mrf.mxu1  ;;  %v5718_v9 = vpop.f32.mrf.mxu0 }
 0x1c3   : > { %5944 = vst [vmem:[#allocation25_spill] sm:$0xff] %v5716_v56  ;;  %5945 = vst [vmem:[#allocation26_spill] sm:$0xff] %v5718_v9 }
 0x1c4   : > { %v5720_v18 = vpop.f32.mrf.mxu1  ;;  %v5722_v49 = vpop.f32.mrf.mxu0 }
 0x1c5   : > { %5946 = vst [vmem:[#allocation27_spill] sm:$0xff] %v5720_v18  ;;  %5947 = vst [vmem:[#allocation28_spill] sm:$0xff] %v5722_v49 }
 0x1c6   : > { %v5724_v7 = vpop.f32.mrf.mxu1  ;;  %v5726_v47 = vpop.f32.mrf.mxu0 }
 0x1c7   : > { %5948 = vst [vmem:[#allocation29_spill] sm:$0xff] %v5724_v7  ;;  %5949 = vst [vmem:[#allocation30_spill] sm:$0xff] %v5726_v47  ;;  %v1955_v47 = vadd.f32 %v4087_v25, %v5537_v21  ;;  %v1954_v25 = vadd.f32 %v5640_v44, %v5546_v41 }
 0x1c8   : > { %v5728_v33 = vpop.f32.mrf.mxu1  ;;  %v5730_v29 = vpop.f32.mrf.mxu0 }
 0x1c9   : > { %5950 = vst [vmem:[#allocation31_spill] sm:$0xff] %v5728_v33  ;;  %5951 = vst [vmem:[#allocation32_spill] sm:$0xff] %v5730_v29 }
 0x1ca   : > { %v5732_v55 = vpop.f32.mrf.mxu1  ;;  %v5734_v31 = vpop.f32.mrf.mxu0 }
 0x1cb   : > { %5952 = vst [vmem:[#allocation33_spill] sm:$0xff] %v5732_v55  ;;  %5953 = vst [vmem:[#allocation34_spill] sm:$0xff] %v5734_v31  ;;  %v1953_v31 = vadd.f32 %v1826_v14, %v5540_v43 }
 0x1cc   : > { %v5736_v46 = vpop.f32.mrf.mxu1  ;;  %v5738_v56 = vpop.f32.mrf.mxu0 }
 0x1cd   : > { %5954 = vst [vmem:[#allocation35_spill] sm:$0xff] %v5736_v46  ;;  %5955 = vst [vmem:[#allocation36_spill] sm:$0xff] %v5738_v56  ;;  %v2325_v56 = vadd.f32 %v5630_v42, %v1955_v47  ;;  %v2323_v21 = vadd.f32 %v5634_v59, %v1953_v31  ;;  %v1959_v47 = vadd.f32 %v5644_v27, %v5549_v1 }
 0x1ce   : > { %v5740_v9 = vpop.f32.mrf.mxu1  ;;  %v5742_v18 = vpop.f32.mrf.mxu0  ;;  %v1957_v31 = vadd.f32 %v5648_v23, %v5552_v63  ;;  %v1963_v27 = vadd.f32 %v5660_v34, %v5561_v10 }
 0x1cf   : > { %5956 = vst [vmem:[#allocation37_spill] sm:$0xff] %v5742_v18  ;;  %v1956_v18 = vadd.f32 %v5636_v2, %v5543_v58 }
 0x1d0   : > { %v5744_v49 = vpop.f32.mrf.mxu1  ;;  %v5746_v7 = vpop.f32.mrf.mxu0  ;;  %v2327_v63 = vadd.f32 %v5650_v28, %v1957_v31  ;;  %v2333_v34 = vadd.f32 %v5662_v61, %v1963_v27  ;;  %v1964_v31 = vadd.f32 %v5668_v8, %v5567_v30 }
 0x1d1   : > { %5957 = vst [vmem:[#allocation38_spill] sm:$0xff] %v5744_v49  ;;  %5958 = vst [vmem:[#allocation39_spill] sm:$0xff] %v5746_v7  ;;  %v2326_v14 = vadd.f32 %v5638_v51, %v1956_v18  ;;  %v2329_v18 = vadd.f32 %v5646_v26, %v1959_v47 }
 0x1d2   : > { %v5749_v33 = vpop.f32.mrf.mxu1  ;;  %v5751_v29 = vpop.f32.mrf.mxu0 }
 0x1d3   : > { %5959 = vst [vmem:[#allocation40_spill] sm:$0xff] %v5749_v33  ;;  %5960 = vst [vmem:[#allocation41_spill] sm:$0xff] %v5751_v29 }
 0x1d4   : > { %v5754_v55 = vpop.f32.mrf.mxu1  ;;  %v5756_v46 = vpop.f32.mrf.mxu0 }
 0x1d5   : > { %5961 = vst [vmem:[#allocation42_spill] sm:$0xff] %v5754_v55  ;;  %5962 = vst [vmem:[#allocation43_spill] sm:$0xff] %v5756_v46  ;;  %v2324_v55 = vadd.f32 %v5642_v3, %v1954_v25 }
 0x1d6   : > { %v4183_v49 = vpop.f32.mrf.mxu1  ;;  %v4231_v7 = vpop.f32.mrf.mxu0 }
 0x1d7   : > { %v2584_v29 = vadd.f32 %v4183_v49, %v2325_v56 }
 0x1d8   : > { %v2455_v33 = vpop.f32.mrf.mxu1  ;;  %v2713_v43 = vpop.f32.mrf.mxu0 }
 0x1d9   : > { %v2842_v42 = vadd.f32 %v4231_v7, %v2584_v29  ;;  %v2582_v46 = vadd.f32 %v2455_v33, %v2323_v21  ;;  %v1960_v33 = vadd.f32 %v5652_v50, %v5555_v52  ;;  %v1958_v7 = vadd.f32 %v5656_v0, %v5558_v13 }
 0x1da   : > { %v4184_v58 = vpop.f32.mrf.mxu1  ;;  %v4232_v2 = vpop.f32.mrf.mxu0 }
 0x1db   : > { %2874 = vst [vmem:[%s4412_s24 + $0x10] sm:$0xff] %v2842_v42  ;;  %v2840_v41 = vadd.f32 %v2713_v43, %v2582_v46  ;;  %v2585_v56 = vadd.f32 %v4184_v58, %v2326_v14  ;;  %v2330_v13 = vadd.f32 %v5654_v35, %v1960_v33  ;;  %v2328_v0 = vadd.f32 %v5658_v16, %v1958_v7 }
 0x1dc   : > { %v2458_v49 = vpop.f32.mrf.mxu1  ;;  %v2716_v59 = vpop.f32.mrf.mxu0  ;;  %v2944_v14 = vmul.f32 %v2842_v42, %v2842_v42 }
 0x1dd   : > { %2872 = vst [vmem:[%s4412_s24] sm:$0xff] %v2840_v41  ;;  %v2843_v1 = vadd.f32 %v4232_v2, %v2585_v56  ;;  %v2583_v29 = vadd.f32 %v2458_v49, %v2324_v55  ;;  %v2942_v26 = vmul.f32 %v2840_v41, %v2840_v41  ;;  %v1961_v2 = vadd.f32 %v5664_v15, %v5564_v36 }
 0x1de   : > { %v4187_v51 = vpop.f32.mrf.mxu1  ;;  %v4235_v44 = vpop.f32.mrf.mxu0 }
 0x1df   : > { %2875 = vst [vmem:[%s4412_s24 + $0x18] sm:$0xff] %v2843_v1  ;;  %v2841_v46 = vadd.f32 %v2716_v59, %v2583_v29  ;;  %v2588_v3 = vadd.f32 %v4187_v51, %v2329_v18  ;;  %v2945_v16 = vmul.f32 %v2843_v1, %v2843_v1  ;;  %v1962_v18 = vadd.f32 %v5672_v62, %v5570_v37 }
 0x1e0   : > { %v2471_v23 = vpop.f32.mrf.mxu1  ;;  %v2729_v55 = vpop.f32.mrf.mxu0  ;;  %v2331_v51 = vadd.f32 %v5666_v45, %v1961_v2 }
 0x1e1   : > { %2873 = vst [vmem:[%s4412_s24 + $0x8] sm:$0xff] %v2841_v46  ;;  %v2905_v21 = vadd.f32 %v2841_v46, %v2840_v41  ;;  %v2943_v52 = vmul.f32 %v2841_v46, %v2841_v46  ;;  %v2846_v50 = vadd.f32 %v4235_v44, %v2588_v3  ;;  %v2586_v25 = vadd.f32 %v2471_v23, %v2327_v63 }
 0x1e2   : > { %v4188_v28 = vpop.f32.mrf.mxu1  ;;  %v4236_v43 = vpop.f32.mrf.mxu0  ;;  %v2334_v44 = vadd.f32 %v5670_v57, %v1964_v31  ;;  %v2332_v27 = vadd.f32 %v5674_v48, %v1962_v18  ;;  %v1965_v23 = vadd.f32 %v5680_v17, %v5576_v5  ;;  %v1969_v18 = vadd.f32 %v5696_v4, %v5588_v12 }
 0x1e3   : > { %v2906_v47 = vadd.f32 %v2905_v21, %v2842_v42  ;;  %v2974_v58 = vadd.f32 %v2943_v52, %v2942_v26  ;;  %2878 = vst [vmem:[%s4412_s24 + $0x30] sm:$0xff] %v2846_v50  ;;  %v2844_v10 = vadd.f32 %v2729_v55, %v2586_v25  ;;  %v2589_v41 = vadd.f32 %v4188_v28, %v2330_v13 }
 0x1e4   : > { %v2474_v35 = vpop.f32.mrf.mxu1  ;;  %v2732_v56 = vpop.f32.mrf.mxu0  ;;  %v1967_v26 = vadd.f32 %v5676_v6, %v5573_v24  ;;  %v2948_v21 = vmul.f32 %v2846_v50, %v2846_v50 }
 0x1e5   : > { %v2975_v49 = vadd.f32 %v2974_v58, %v2944_v14  ;;  %2876 = vst [vmem:[%s4412_s24 + $0x20] sm:$0xff] %v2844_v10  ;;  %v2907_v59 = vadd.f32 %v2906_v47, %v2843_v1  ;;  %v2587_v42 = vadd.f32 %v2474_v35, %v2328_v0  ;;  %v2946_v61 = vmul.f32 %v2844_v10, %v2844_v10 }
 0x1e6   : > { %v2847_v29 = vadd.f32 %v4236_v43, %v2589_v41  ;;  %v4191_v33 = vpop.f32.mrf.mxu1  ;;  %v4239_v36 = vpop.f32.mrf.mxu0  ;;  %v1968_v0 = vadd.f32 %v5684_v60, %v5579_v22  ;;  %v2337_v47 = vadd.f32 %v5678_v40, %v1967_v26  ;;  %v2335_v58 = vadd.f32 %v5682_v54, %v1965_v23 }
 0x1e7   : > { %v2908_v15 = vadd.f32 %v2907_v59, %v2844_v10  ;;  %v2976_v7 = vadd.f32 %v2975_v49, %v2945_v16  ;;  %v2845_v30 = vadd.f32 %v2732_v56, %v2587_v42  ;;  %v2592_v8 = vadd.f32 %v4191_v33, %v2333_v34 }
 0x1e8   : > { %2879 = vst [vmem:[%s4412_s24 + $0x38] sm:$0xff] %v2847_v29  ;;  %v2487_v63 = vpop.f32.mrf.mxu1  ;;  %v2745_v1 = vpop.f32.mrf.mxu0  ;;  %v2949_v28 = vmul.f32 %v2847_v29, %v2847_v29  ;;  %v2338_v31 = vadd.f32 %v5686_v11, %v1968_v0  ;;  %v1966_v41 = vadd.f32 %v5688_v38, %v5582_v20  ;;  %v1971_v35 = vadd.f32 %v5692_v53, %v5585_v32 }
 0x1e9   : > { %v2977_v46 = vadd.f32 %v2976_v7, %v2946_v61  ;;  %2877 = vst [vmem:[%s4412_s24 + $0x28] sm:$0xff] %v2845_v30  ;;  %v2909_v3 = vadd.f32 %v2908_v15, %v2845_v30  ;;  %v2947_v37 = vmul.f32 %v2845_v30, %v2845_v30  ;;  %v2850_v62 = vadd.f32 %v4239_v36, %v2592_v8  ;;  %v5963_v7 = vld [vmem:[#allocation2_spill] sm:$0xff]  ;;  %v5964_v30 = vld [vmem:[#allocation17_spill] sm:$0xff] }
 0x1ea   : > { %v2590_v45 = vadd.f32 %v2487_v63, %v2331_v51  ;;  %v4192_v55 = vpop.f32.mrf.mxu1  ;;  %v4240_v57 = vpop.f32.mrf.mxu0  ;;  %v2336_v36 = vadd.f32 %v5690_v19, %v1966_v41  ;;  %v2341_v15 = vadd.f32 %v5694_v39, %v1971_v35  ;;  %v1972_v8 = vadd.f32 %v5964_v30, %v5963_v7  ;;  %v5974_v41 = vld [vmem:[#allocation6_spill] sm:$0xff]  ;;  %v5975_v35 = vld [vmem:[#allocation25_spill] sm:$0xff]  ;;  %v5978_v7 = vld [vmem:[#allocation7_spill] sm:$0xff] }
 0x1eb   : > { %v2910_v52 = vadd.f32 %v2909_v3, %v2846_v50  ;;  %v2978_v25 = vadd.f32 %v2977_v46, %v2947_v37  ;;  %2882 = vst [vmem:[%s4412_s24 + $0x50] sm:$0xff] %v2850_v62  ;;  %v2593_v13 = vadd.f32 %v4192_v55, %v2334_v44  ;;  %v2952_v61 = vmul.f32 %v2850_v62, %v2850_v62  ;;  %v5965_v46 = vld [vmem:[#allocation16_spill] sm:$0xff]  ;;  %v5966_v37 = vld [vmem:[#allocation3_spill] sm:$0xff] }
 0x1ec   : > { %v2848_v48 = vadd.f32 %v2745_v1, %v2590_v45  ;;  %v2490_v43 = vpop.f32.mrf.mxu1  ;;  %v2748_v24 = vpop.f32.mrf.mxu0  ;;  %v2339_v3 = vadd.f32 %v5965_v46, %v1969_v18  ;;  %v5979_v30 = vld [vmem:[#allocation27_spill] sm:$0xff] }
 0x1ed   : > { %v2979_v6 = vadd.f32 %v2978_v25, %v2948_v21  ;;  %v2911_v14 = vadd.f32 %v2910_v52, %v2847_v29  ;;  %v2851_v5 = vadd.f32 %v4240_v57, %v2593_v13  ;;  %v2591_v17 = vadd.f32 %v2490_v43, %v2332_v27  ;;  %v5968_v21 = vld [vmem:[#allocation18_spill] sm:$0xff] }
 0x1ee   : > { %2880 = vst [vmem:[%s4412_s24 + $0x40] sm:$0xff] %v2848_v48  ;;  %v4195_v50 = vpop.f32.mrf.mxu1  ;;  %v4243_v10 = vpop.f32.mrf.mxu0  ;;  %v2950_v2 = vmul.f32 %v2848_v48, %v2848_v48  ;;  %v2342_v52 = vadd.f32 %v5968_v21, %v1972_v8  ;;  %v1974_v8 = vadd.f32 %v5979_v30, %v5978_v7  ;;  %v5983_v21 = vld [vmem:[#allocation28_spill] sm:$0xff] }
 0x1ef   : > { %v2912_v34 = vadd.f32 %v2911_v14, %v2848_v48  ;;  %v2980_v22 = vadd.f32 %v2979_v6, %v2949_v28  ;;  %2883 = vst [vmem:[%s4412_s24 + $0x58] sm:$0xff] %v2851_v5  ;;  %v2849_v60 = vadd.f32 %v2748_v24, %v2591_v17  ;;  %v2596_v40 = vadd.f32 %v4195_v50, %v2337_v47  ;;  %v5969_v28 = vld [vmem:[#allocation4_spill] sm:$0xff]  ;;  %v5970_v48 = vld [vmem:[#allocation21_spill] sm:$0xff] }
 0x1f0   : > { %v2503_v56 = vpop.f32.mrf.mxu1  ;;  %v2761_v54 = vpop.f32.mrf.mxu0  ;;  %v2953_v4 = vmul.f32 %v2851_v5, %v2851_v5  ;;  %v1975_v43 = vadd.f32 %v5970_v48, %v5969_v28  ;;  %v5971_v50 = vld [vmem:[#allocation20_spill] sm:$0xff] }
 0x1f1   : > { %v2981_v16 = vadd.f32 %v2980_v22, %v2950_v2  ;;  %2881 = vst [vmem:[%s4412_s24 + $0x48] sm:$0xff] %v2849_v60  ;;  %v2913_v49 = vadd.f32 %v2912_v34, %v2849_v60  ;;  %v2951_v59 = vmul.f32 %v2849_v60, %v2849_v60  ;;  %v2594_v42 = vadd.f32 %v2503_v56, %v2335_v58  ;;  %v5972_v34 = vld [vmem:[#allocation5_spill] sm:$0xff]  ;;  %v5973_v2 = vld [vmem:[#allocation23_spill] sm:$0xff] }
 0x1f2   : > { %v2854_v11 = vadd.f32 %v4243_v10, %v2596_v40  ;;  %v4196_v29 = vpop.f32.mrf.mxu1  ;;  %v4244_v20 = vpop.f32.mrf.mxu0  ;;  %v1973_v22 = vadd.f32 %v5973_v2, %v5972_v34  ;;  %v1976_v40 = vadd.f32 %v5975_v35, %v5974_v41 }
 0x1f3   : > { %v2914_v38 = vadd.f32 %v2913_v49, %v2850_v62  ;;  %v2982_v33 = vadd.f32 %v2981_v16, %v2951_v59  ;;  %v2852_v32 = vadd.f32 %v2761_v54, %v2594_v42  ;;  %v2597_v53 = vadd.f32 %v4196_v29, %v2338_v31  ;;  %v5967_v62 = vld [vmem:[#allocation19_spill] sm:$0xff]  ;;  %v5976_v42 = vld [vmem:[#allocation22_spill] sm:$0xff] }
 0x1f4   : > { %2886 = vst [vmem:[%s4412_s24 + $0x70] sm:$0xff] %v2854_v11  ;;  %v2506_v51 = vpop.f32.mrf.mxu1  ;;  %v2764_v12 = vpop.f32.mrf.mxu0  ;;  %v1970_v27 = vadd.f32 %v5967_v62, %v5966_v37  ;;  %v2956_v56 = vmul.f32 %v2854_v11, %v2854_v11  ;;  %v2345_v18 = vadd.f32 %v5976_v42, %v1975_v43  ;;  %v5981_v62 = vld [vmem:[#allocation8_spill] sm:$0xff]  ;;  %v5986_v43 = vld [vmem:[#allocation10_spill] sm:$0xff] }
 0x1f5   : > { %v2983_v44 = vadd.f32 %v2982_v33, %v2952_v61  ;;  %2884 = vst [vmem:[%s4412_s24 + $0x60] sm:$0xff] %v2852_v32  ;;  %v2915_v63 = vadd.f32 %v2914_v38, %v2851_v5  ;;  %v2855_v1 = vadd.f32 %v4244_v20, %v2597_v53  ;;  %v2595_v19 = vadd.f32 %v2506_v51, %v2336_v36  ;;  %v5977_v36 = vld [vmem:[#allocation24_spill] sm:$0xff] }
 0x1f6   : > { %v4199_v39 = vpop.f32.mrf.mxu1  ;;  %v4247_v26 = vpop.f32.mrf.mxu0  ;;  %v2954_v45 = vmul.f32 %v2852_v32, %v2852_v32  ;;  %v2340_v10 = vadd.f32 %v5971_v50, %v1970_v27 }
 0x1f7   : > { %v2916_v23 = vadd.f32 %v2915_v63, %v2852_v32  ;;  %v2984_v55 = vadd.f32 %v2983_v44, %v2953_v4  ;;  %2887 = vst [vmem:[%s4412_s24 + $0x78] sm:$0xff] %v2855_v1  ;;  %v2600_v57 = vadd.f32 %v4199_v39, %v2341_v15  ;;  %v2853_v25 = vadd.f32 %v2764_v12, %v2595_v19  ;;  %v5980_v12 = vld [vmem:[#allocation26_spill] sm:$0xff] }
 0x1f8   : > { %v2519_v13 = vpop.f32.mrf.mxu1  ;;  %v2777_v0 = vpop.f32.mrf.mxu0  ;;  %v2957_v20 = vmul.f32 %v2855_v1, %v2855_v1  ;;  %v2343_v15 = vadd.f32 %v5977_v36, %v1973_v22  ;;  %v2346_v4 = vadd.f32 %v5980_v12, %v1976_v40  ;;  %v5993_v36 = vld [vmem:[#allocation12_spill] sm:$0xff] }
 0x1f9   : > { %v2985_v24 = vadd.f32 %v2984_v55, %v2954_v45  ;;  %v2858_v6 = vadd.f32 %v4247_v26, %v2600_v57  ;;  %v2598_v14 = vadd.f32 %v2519_v13, %v2339_v3  ;;  %2885 = vst [vmem:[%s4412_s24 + $0x68] sm:$0xff] %v2853_v25  ;;  %v2917_v5 = vadd.f32 %v2916_v23, %v2853_v25  ;;  %v5985_v13 = vld [vmem:[#allocation31_spill] sm:$0xff] }
 0x1fa   : > { %v2955_v17 = vmul.f32 %v2853_v25, %v2853_v25  ;;  %v4200_v47 = vpop.f32.mrf.mxu1  ;;  %v4248_v58 = vpop.f32.mrf.mxu0  ;;  %v5984_v25 = vld [vmem:[#allocation9_spill] sm:$0xff] }
 0x1fb   : > { %2890 = vst [vmem:[%s4412_s24 + $0x90] sm:$0xff] %v2858_v6  ;;  %v2856_v60 = vadd.f32 %v2777_v0, %v2598_v14  ;;  %v2601_v31 = vadd.f32 %v4200_v47, %v2342_v52  ;;  %v2918_v54 = vadd.f32 %v2917_v5, %v2854_v11  ;;  %v2344_v52 = vadd.f32 %v5983_v21, %v1974_v8 }
 0x1fc   : > { %v2986_v16 = vadd.f32 %v2985_v24, %v2955_v17  ;;  %v2522_v49 = vpop.f32.mrf.mxu1  ;;  %v2780_v59 = vpop.f32.mrf.mxu0  ;;  %v1977_v0 = vadd.f32 %v5985_v13, %v5984_v25  ;;  %v5987_v24 = vld [vmem:[#allocation33_spill] sm:$0xff]  ;;  %v2960_v5 = vmul.f32 %v2858_v6, %v2858_v6 }
 0x1fd   : > { %2888 = vst [vmem:[%s4412_s24 + $0x80] sm:$0xff] %v2856_v60  ;;  %v2859_v61 = vadd.f32 %v4248_v58, %v2601_v31  ;;  %v2599_v29 = vadd.f32 %v2522_v49, %v2340_v10  ;;  %v2919_v33 = vadd.f32 %v2918_v54, %v2855_v1  ;;  %v2958_v63 = vmul.f32 %v2856_v60, %v2856_v60  ;;  %v5982_v1 = vld [vmem:[#allocation29_spill] sm:$0xff]  ;;  %v5988_v10 = vld [vmem:[#allocation30_spill] sm:$0xff]  ;;  %v5991_v49 = vld [vmem:[#allocation35_spill] sm:$0xff] }
 0x1fe   : > { %v2987_v38 = vadd.f32 %v2986_v16, %v2956_v56  ;;  %v4203_v32 = vpop.f32.mrf.mxu1  ;;  %v4251_v53 = vpop.f32.mrf.mxu0  ;;  %v1979_v27 = vadd.f32 %v5982_v1, %v5981_v62  ;;  %v1980_v14 = vadd.f32 %v5987_v24, %v5986_v43  ;;  %v5989_v56 = vld [vmem:[#allocation32_spill] sm:$0xff]  ;;  %v5990_v16 = vld [vmem:[#allocation11_spill] sm:$0xff] }
 0x1ff   : > { %2891 = vst [vmem:[%s4412_s24 + $0x98] sm:$0xff] %v2859_v61  ;;  %v2857_v11 = vadd.f32 %v2780_v59, %v2599_v29  ;;  %v2604_v51 = vadd.f32 %v4203_v32, %v2345_v18  ;;  %v2920_v44 = vadd.f32 %v2919_v33, %v2856_v60  ;;  %v2961_v60 = vmul.f32 %v2859_v61, %v2859_v61  ;;  %v5992_v18 = vld [vmem:[#allocation34_spill] sm:$0xff]  ;;  %v6000_v24 = vld [vmem:[#allocation39_spill] sm:$0xff] }
 0x200   : > { %v2988_v46 = vadd.f32 %v2987_v38, %v2957_v20  ;;  %v2535_v3 = vpop.f32.mrf.mxu1  ;;  %v2793_v37 = vpop.f32.mrf.mxu0  ;;  %v2349_v34 = vadd.f32 %v5988_v10, %v1979_v27  ;;  %v2347_v54 = vadd.f32 %v5989_v56, %v1977_v0  ;;  %v1978_v59 = vadd.f32 %v5991_v49, %v5990_v16 }
 0x201   : > { %2889 = vst [vmem:[%s4412_s24 + $0x88] sm:$0xff] %v2857_v11  ;;  %v2959_v19 = vmul.f32 %v2857_v11, %v2857_v11  ;;  %v2862_v39 = vadd.f32 %v4251_v53, %v2604_v51  ;;  %v2602_v26 = vadd.f32 %v2535_v3, %v2343_v15  ;;  %v2921_v45 = vadd.f32 %v2920_v44, %v2857_v11 }
 0x202   : > { %v2989_v23 = vadd.f32 %v2988_v46, %v2958_v63  ;;  %v4204_v55 = vpop.f32.mrf.mxu1  ;;  %v4252_v57 = vpop.f32.mrf.mxu0  ;;  %v2350_v29 = vadd.f32 %v5992_v18, %v1980_v14  ;;  %v5995_v63 = vld [vmem:[#allocation13_spill] sm:$0xff]  ;;  %v5996_v46 = vld [vmem:[#allocation38_spill] sm:$0xff]  ;;  %v6001_v14 = vld [vmem:[#allocation15_spill] sm:$0xff] }
 0x203   : > { %2894 = vst [vmem:[%s4412_s24 + $0xb0] sm:$0xff] %v2862_v39  ;;  %v2860_v28 = vadd.f32 %v2793_v37, %v2602_v26  ;;  %v2605_v48 = vadd.f32 %v4204_v55, %v2346_v4  ;;  %v2922_v17 = vadd.f32 %v2921_v45, %v2858_v6  ;;  %v5994_v4 = vld [vmem:[#allocation36_spill] sm:$0xff]  ;;  %v1981_v3 = vadd.f32 %v5996_v46, %v5995_v63  ;;  %v5998_v55 = vld [vmem:[#allocation14_spill] sm:$0xff] }
 0x204   : > { %v2990_v47 = vadd.f32 %v2989_v23, %v2959_v19  ;;  %v2538_v58 = vpop.f32.mrf.mxu1  ;;  %v2796_v50 = vpop.f32.mrf.mxu0  ;;  %v2348_v44 = vadd.f32 %v5994_v4, %v1978_v59  ;;  %v2964_v1 = vmul.f32 %v2862_v39, %v2862_v39  ;;  %v5997_v23 = vld [vmem:[#allocation37_spill] sm:$0xff]  ;;  %v6004_v59 = vld [vmem:[#allocation43_spill] sm:$0xff] }
 0x205   : > { %2892 = vst [vmem:[%s4412_s24 + $0xa0] sm:$0xff] %v2860_v28  ;;  %v2863_v2 = vadd.f32 %v4252_v57, %v2605_v48  ;;  %v2603_v22 = vadd.f32 %v2538_v58, %v2344_v52  ;;  %v2923_v41 = vadd.f32 %v2922_v17, %v2859_v61  ;;  %v2962_v38 = vmul.f32 %v2860_v28, %v2860_v28  ;;  %v5999_v57 = vld [vmem:[#allocation40_spill] sm:$0xff] }
 0x206   : > { %v2991_v31 = vadd.f32 %v2990_v47, %v2960_v5  ;;  %v4207_v35 = vpop.f32.mrf.mxu1  ;;  %v4255_v40 = vpop.f32.mrf.mxu0  ;;  %v1983_v61 = vadd.f32 %v5740_v9, %v5993_v36  ;;  %v1984_v21 = vadd.f32 %v5999_v57, %v5998_v55  ;;  %v6002_v5 = vld [vmem:[#allocation42_spill] sm:$0xff] }
 0x207   : > { %2895 = vst [vmem:[%s4412_s24 + $0xb8] sm:$0xff] %v2863_v2  ;;  %v2861_v6 = vadd.f32 %v2796_v50, %v2603_v22  ;;  %v2608_v42 = vadd.f32 %v4207_v35, %v2349_v34  ;;  %v2924_v20 = vadd.f32 %v2923_v41, %v2860_v28  ;;  %v2965_v13 = vmul.f32 %v2863_v2, %v2863_v2 }
 0x208   : > { %v2992_v33 = vadd.f32 %v2991_v31, %v2961_v60  ;;  %v2551_v32 = vpop.f32.mrf.mxu1  ;;  %v2809_v53 = vpop.f32.mrf.mxu0  ;;  %v2353_v45 = vadd.f32 %v5997_v23, %v1983_v61  ;;  %v1982_v17 = vadd.f32 %v6002_v5, %v6001_v14  ;;  %v6003_v31 = vld [vmem:[#allocation41_spill] sm:$0xff] }
 0x209   : > { %2893 = vst [vmem:[%s4412_s24 + $0xa8] sm:$0xff] %v2861_v6  ;;  %v2963_v15 = vmul.f32 %v2861_v6, %v2861_v6  ;;  %v2866_v7 = vadd.f32 %v4255_v40, %v2608_v42  ;;  %v2606_v30 = vadd.f32 %v2551_v32, %v2347_v54  ;;  %v2925_v11 = vadd.f32 %v2924_v20, %v2861_v6 }
 0x20a   : > { %v2993_v8 = vadd.f32 %v2992_v33, %v2962_v38  ;;  %v4208_v51 = vpop.f32.mrf.mxu1  ;;  %v4256_v12 = vpop.f32.mrf.mxu0  ;;  %v2354_v41 = vadd.f32 %v6003_v31, %v1984_v21  ;;  %v2352_v6 = vadd.f32 %v6004_v59, %v1982_v17 }
 0x20b   : > { %2898 = vst [vmem:[%s4412_s24 + $0xd0] sm:$0xff] %v2866_v7  ;;  %v2864_v37 = vadd.f32 %v2809_v53, %v2606_v30  ;;  %v2609_v62 = vadd.f32 %v4208_v51, %v2350_v29  ;;  %v2926_v27 = vadd.f32 %v2925_v11, %v2862_v39  ;;  %v2351_v39 = vadd.f32 %v6000_v24, %v1981_v3 }
 0x20c   : > { %v2994_v9 = vadd.f32 %v2993_v8, %v2963_v15  ;;  %v2554_v19 = vpop.f32.mrf.mxu1  ;;  %v2812_v26 = vpop.f32.mrf.mxu0  ;;  %v2968_v29 = vmul.f32 %v2866_v7, %v2866_v7 }
 0x20d   : > { %2896 = vst [vmem:[%s4412_s24 + $0xc0] sm:$0xff] %v2864_v37  ;;  %v2867_v52 = vadd.f32 %v4256_v12, %v2609_v62  ;;  %v2607_v25 = vadd.f32 %v2554_v19, %v2348_v44  ;;  %v2927_v28 = vadd.f32 %v2926_v27, %v2863_v2  ;;  %v2966_v10 = vmul.f32 %v2864_v37, %v2864_v37 }
 0x20e   : > { %v2995_v0 = vadd.f32 %v2994_v9, %v2964_v1  ;;  %v4211_v48 = vpop.f32.mrf.mxu1  ;;  %v4259_v43 = vpop.f32.mrf.mxu0 }
 0x20f   : > { %2899 = vst [vmem:[%s4412_s24 + $0xd8] sm:$0xff] %v2867_v52  ;;  %v2865_v47 = vadd.f32 %v2812_v26, %v2607_v25  ;;  %v2612_v58 = vadd.f32 %v4211_v48, %v2353_v45  ;;  %v2928_v50 = vadd.f32 %v2927_v28, %v2864_v37  ;;  %v2969_v36 = vmul.f32 %v2867_v52, %v2867_v52 }
 0x210   : > { %v2996_v34 = vadd.f32 %v2995_v0, %v2965_v13  ;;  %v2567_v22 = vpop.f32.mrf.mxu1  ;;  %v2825_v60 = vpop.f32.mrf.mxu0  ;;  %v2904_v13 = vld [vmem:[%s5896_s4] sm:$0x3] }
 0x211   : > { %2897 = vst [vmem:[%s4412_s24 + $0xc8] sm:$0xff] %v2865_v47  ;;  %v2967_v2 = vmul.f32 %v2865_v47, %v2865_v47  ;;  %v2870_v35 = vadd.f32 %v4259_v43, %v2612_v58  ;;  %v2610_v40 = vadd.f32 %v2567_v22, %v2351_v39  ;;  %v2929_v54 = vadd.f32 %v2928_v50, %v2865_v47 }
 0x212   : > { %v2997_v56 = vadd.f32 %v2996_v34, %v2966_v10  ;;  %v4212_v16 = vpop.f32.mrf.mxu1  ;;  %v4260_v49 = vpop.f32.mrf.mxu0 }
 0x213   : > { %2902 = vst [vmem:[%s4412_s24 + $0xf0] sm:$0xff] %v2870_v35  ;;  %v2868_v42 = vadd.f32 %v2825_v60, %v2610_v40  ;;  %v2613_v18 = vadd.f32 %v4212_v16, %v2354_v41  ;;  %v2930_v20 = vadd.f32 %v2929_v54, %v2866_v7  ;;  %v2972_v46 = vmul.f32 %v2870_v35, %v2870_v35 }
 0x214   : > { %v2998_v38 = vadd.f32 %v2997_v56, %v2967_v2  ;;  %v2570_v33 = vpop.f32.mrf.mxu1  ;;  %v2828_v30 = vpop.f32.mrf.mxu0 }
 0x215   : > { %2900 = vst [vmem:[%s4412_s24 + $0xe0] sm:$0xff] %v2868_v42  ;;  %v2871_v32 = vadd.f32 %v4260_v49, %v2613_v18  ;;  %v2611_v53 = vadd.f32 %v2570_v33, %v2352_v6  ;;  %v2931_v15 = vadd.f32 %v2930_v20, %v2867_v52  ;;  %v2970_v51 = vmul.f32 %v2868_v42, %v2868_v42 }
 0x216   : > { %v2999_v61 = vadd.f32 %v2998_v38, %v2968_v29 }
 0x217   : > { %2903 = vst [vmem:[%s4412_s24 + $0xf8] sm:$0xff] %v2871_v32  ;;  %v2869_v8 = vadd.f32 %v2828_v30, %v2611_v53  ;;  %v2932_v11 = vadd.f32 %v2931_v15, %v2868_v42  ;;  %v2973_v37 = vmul.f32 %v2871_v32, %v2871_v32 }
 0x218   : > { %v3000_v12 = vadd.f32 %v2999_v61, %v2969_v36 }
 0x219   : > { %2901 = vst [vmem:[%s4412_s24 + $0xe8] sm:$0xff] %v2869_v8  ;;  %v2971_v4 = vmul.f32 %v2869_v8, %v2869_v8  ;;  %v2933_v63 = vadd.f32 %v2932_v11, %v2869_v8 }
 0x21a   : > { %v3001_v44 = vadd.f32 %v3000_v12, %v2970_v51 }
 0x21b   : > { %v2934_v7 = vadd.f32 %v2933_v63, %v2870_v35 }
 0x21c   : > { %v3002_v3 = vadd.f32 %v3001_v44, %v2971_v4 }
 0x21d   : > { %v2935_v62 = vadd.f32 %v2934_v7, %v2871_v32 }
 0x21e   : > { %v3003_v1 = vadd.f32 %v3002_v3, %v2972_v46 }
 0x21f   : > { %v2936_v27 = vrot.slane %v2935_v62, 4 }
 0x220   : > { %v3004_v9 = vadd.f32 %v3003_v1, %v2973_v37 }
 0x221   : > { %v2937_v19 = vadd.f32 %v2936_v27, %v2935_v62 }
 0x222   : > { %v3005_v26 = vrot.slane %v3004_v9, 4 }
 0x223   : > { %v2938_v23 = vrot.slane %v2937_v19, 2 }
 0x224   : > { %v3006_v45 = vadd.f32 %v3005_v26, %v3004_v9 }
 0x225   : > { %v2939_v55 = vadd.f32 %v2938_v23, %v2937_v19 }
 0x226   : > { %v3007_v57 = vrot.slane %v3006_v45, 2 }
 0x227   : > { %v2940_v21 = vrot.slane %v2939_v55, 1 }
 0x228   : > { %v3008_v52 = vadd.f32 %v3007_v57, %v3006_v45 }
 0x229   : > { %v2941_v0 = vadd.f32 %v2940_v21, %v2939_v55 }
 0x22a   : > { %v3009_v25 = vrot.slane %v3008_v52, 1 }
 0x22c   : > { %v3010_v28 = vadd.f32 %v3009_v25, %v3008_v52 }
 0x22e   : > { %v3011_v48 = vsel %vm372_vm0, %v2941_v0, %v3010_v28 }
 0x22f   : > { %v3012_v43 = vadd.f32 %v3011_v48, %v2904_v13 }
 0x231   : > { %3013 = vst [vmem:[%s5896_s4] sm:$0x3] %v3012_v43 }
 0x232 PF: > { %s15_s15 = sadd.s32 1, %s4366_s15  }
 0x233   : > { %p12_p5 = scmp.ge.s32.totalorder %s15_s15, 4  }
 0x235   :  { %14 = sbr.rel (!%p12_p5) target bundleno = 1 (0x1), region = 82 }

</bundles_post_ra>
